<compile_context>
chip_gen: v7x
topology: tpu7x:2x2x1
jax: 0.10.0
libtpu: 0.0.40
codegen_flags: <defaults>
</compile_context>

<pallas_src>
from functools import partial

import jax
import jax.numpy as jnp
from jax.experimental import pallas as pl
from jax.experimental.pallas import tpu as pltpu

ACTION_NUM = 4
STATE_SIZE = 4
HID_TILE = 128   # fc hidden tile width (512 / 128 = 4 grid steps in kernel B)


# --------------------------------------------------------------------------- #
# Kernel A: fused conv1 + conv2 + conv3 (one grid step per block of bt images)
# --------------------------------------------------------------------------- #
def _conv_stack_kernel(x_ref, w1_ref, w2_ref, w3_ref, o_ref, h1_scr, h2_scr):
    bt = x_ref.shape[0]
    for im in range(bt):
        # ---- conv1: single K=1024 matmul (block-diagonal weight over the 4
        #      s2d parities).  Rows are flat (i, j) on the 11x11 s2d grid,
        #      128 channels ordered (p, q, c1).
        acc1 = jnp.dot(x_ref[im], w1_ref[...], preferred_element_type=jnp.float32)
        h1_scr[im] = jnp.maximum(acc1, 0.0).astype(h1_scr.dtype)          # (121,128)

        # ---- conv2: 4x4 stride-2 conv == 2x2 stride-1 conv on the s2d tensor.
        #      4 per-tap matmuls over contiguous 109-row slices; output row
        #      r = 11*oy + ox (rows with r % 11 == 10 are unused but finite).
        acc2 = None
        for a in range(2):
            for e in range(2):
                t = 2 * a + e
                part = jnp.dot(
                    h1_scr[im, pl.ds(11 * a + e, 109), :],                # (109,128)
                    w2_ref[pl.ds(128 * t, 128), :],                       # (128,64)
                    preferred_element_type=jnp.float32)
                acc2 = part if acc2 is None else acc2 + part
        h2_scr[im] = jnp.maximum(acc2, 0.0).astype(h2_scr.dtype)          # (109,64)

        # ---- conv3: 3x3 stride-1 conv, 9 per-tap matmuls over contiguous
        #      85-row slices of the same 11-wide flat layout; valid output
        #      rows are r = 11*y + x with x < 8.
        acc3 = None
        for dy in range(3):
            for dx in range(3):
                t = 3 * dy + dx
                part = jnp.dot(
                    h2_scr[im, pl.ds(11 * dy + dx, 85), :],               # (85,64)
                    w3_ref[pl.ds(64 * t, 64), :],                         # (64,64)
                    preferred_element_type=jnp.float32)
                acc3 = part if acc3 is None else acc3 + part
        act3 = jnp.maximum(acc3, 0.0)                                     # (85,64) f32

        # Compact the 8 valid 8-row groups into the (64,64) feature block.
        for oh in range(8):
            o_ref[im, pl.ds(8 * oh, 8), :] = (
                act3[11 * oh:11 * oh + 8, :].astype(o_ref.dtype))


def _conv_stack(p1, pk, bt):
    B = p1.shape[0]
    assert B % bt == 0
    nb = B // bt
    return pl.pallas_call(
        _conv_stack_kernel,
        out_shape=jax.ShapeDtypeStruct((B, 64, 64), jnp.bfloat16),
        grid=(nb,),
        in_specs=[
            pl.BlockSpec((bt, 121, 1024), lambda b: (b, 0, 0)),
            pl.BlockSpec((1024, 128), lambda b: (0, 0)),
            pl.BlockSpec((512, 64), lambda b: (0, 0)),
            pl.BlockSpec((576, 64), lambda b: (0, 0)),
        ],
        out_specs=pl.BlockSpec((bt, 64, 64), lambda b: (b, 0, 0)),
        scratch_shapes=[
            pltpu.VMEM((bt, 121, 128), jnp.bfloat16),   # conv1 out (s2d layout)
            pltpu.VMEM((bt, 109, 64), jnp.bfloat16),    # conv2 out (11-wide flat)
        ],
        compiler_params=pltpu.CompilerParams(dimension_semantics=("parallel",)),
    )(p1, pk["w1blk"], pk["w2p"], pk["w3p"])


# --------------------------------------------------------------------------- #
# Kernel B: fc1 + ReLU + fc2, pipelined over 128-wide hidden tiles (grid=(4,))
# --------------------------------------------------------------------------- #
def _fc_kernel(x_ref, w1_ref, b1_ref, w2_ref, b2_ref, o_ref, acc_ref):
    j = pl.program_id(0)

    @pl.when(j == 0)
    def _():
        acc_ref[...] = jnp.zeros_like(acc_ref)

    h = jnp.dot(x_ref[...], w1_ref[...], preferred_element_type=jnp.float32)
    h = jnp.maximum(h + b1_ref[...], 0.0).astype(jnp.bfloat16)            # (B,128)
    acc_ref[...] += jnp.dot(h, w2_ref[...], preferred_element_type=jnp.float32)

    @pl.when(j == pl.num_programs(0) - 1)
    def _():
        o_ref[...] = acc_ref[...] + b2_ref[...]


def _fc_head(flat, pk):
    B = flat.shape[0]
    n_tiles = 512 // HID_TILE
    return pl.pallas_call(
        _fc_kernel,
        out_shape=jax.ShapeDtypeStruct((B, 128), jnp.float32),
        grid=(n_tiles,),
        in_specs=[
            pl.BlockSpec((B, 4096), lambda j: (0, 0)),            # activations (resident)
            pl.BlockSpec((4096, HID_TILE), lambda j: (0, j)),     # fc1 weight tile (streamed)
            pl.BlockSpec((1, HID_TILE), lambda j: (0, j)),
            pl.BlockSpec((HID_TILE, 128), lambda j: (j, 0)),      # fc2 weight tile
            pl.BlockSpec((1, 128), lambda j: (0, 0)),
        ],
        out_specs=pl.BlockSpec((B, 128), lambda j: (0, 0)),
        scratch_shapes=[pltpu.VMEM((B, 128), jnp.float32)],
        compiler_params=pltpu.CompilerParams(dimension_semantics=("arbitrary",)),
    )(flat, pk["wfc1"], pk["bfc1"], pk["wfc2"], pk["bfc2"])


# --------------------------------------------------------------------------- #
# Wrapper: conv1 patch extraction in space-to-depth order (pure XLA, no gather)
# --------------------------------------------------------------------------- #
def _conv1_patches_s2d(x_bf16):
    """x: (B, C, 92, 92) raw 0..255 values in bf16 -> (B, 121, 1024) patches.

    Row (11*i + j) holds the four conv1 patches whose output positions are
    (2i+p, 2j+q); feature order is (p, q, kh, kw, c)."""
    B, C, H, W = x_bf16.shape
    groups = []
    for p in range(2):
        for q in range(2):
            g = x_bf16[:, :, 4 * p:4 * p + 88, 4 * q:4 * q + 88]   # (B, C, 88, 88)
            g = g.reshape(B, C, 11, 8, 11, 8)                       # (B, c, i, kh, j, kw)
            g = jnp.transpose(g, (0, 2, 4, 3, 5, 1))                # (B, i, j, kh, kw, c)
            groups.append(g.reshape(B, 11, 11, 8 * 8 * C))          # feature (kh, kw, c)
    p1 = jnp.concatenate(groups, axis=-1)                           # (B, 11, 11, 1024)
    return p1.reshape(B, 11 * 11, 4 * 8 * 8 * C)


def _pick_batch_tile(B):
    # Several images per grid step amortize per-step overhead, but keep >= 2
    # grid steps so v7x's two TensorCores both get work.
    for bt in (8, 4, 2, 1):
        if B % bt == 0 and B // bt >= 2:
            return bt
    return 1


@partial(jax.jit, static_argnames=("bt",))
def dqn_forward(x_nchw, pk, *, bt=1):
    B = x_nchw.shape[0]
    x = x_nchw.astype(jnp.bfloat16)            # 0..255 exact in bf16; 1/255 folded into w1
    p1 = _conv1_patches_s2d(x)                 # (B, 121, 1024) bf16
    feats = _conv_stack(p1, pk, bt)            # (B, 64, 64) bf16, Pallas kernel A
    flat = feats.reshape(B, 64 * 64)           # free reshape; order (h, w, c)
    q = _fc_head(flat, pk)                     # (B, 128) f32, Pallas kernel B
    return q[:, :ACTION_NUM]                   # drop the zero-padded lanes


# --------------------------------------------------------------------------- #
# One-time weight packing (done at init, never per forward)
# --------------------------------------------------------------------------- #
def pack_params(p):
    # conv1: (kh, kw, cin) -> cout matrix, 1/255 folded in, then block-diagonal
    # over the 4 spatial parities (p, q) so one matmul emits the s2d tensor.
    w1_mat = jnp.transpose(p["w1"], (2, 3, 1, 0)).reshape(256, 32) * (1.0 / 255.0)
    w1blk = jnp.zeros((4, 256, 4, 32), jnp.float32)
    for t in range(4):
        w1blk = w1blk.at[t, :, t, :].set(w1_mat)
    w1blk = w1blk.reshape(1024, 128).astype(jnp.bfloat16)

    # conv2: dy = 2a+p, dx = 2e+q; rows ordered (a, e, p, q, ci); 64 output
    # channels kept unpadded (no zero columns).
    w2r = p["w2"].reshape(64, 32, 2, 2, 2, 2)                   # (co, ci, a, p, e, q)
    w2p = jnp.transpose(w2r, (2, 4, 3, 5, 1, 0)).reshape(512, 64).astype(jnp.bfloat16)

    # conv3: rows ordered (dy, dx, ci), 64-wide K per tap (no zero padding).
    w3p = jnp.transpose(p["w3"], (2, 3, 1, 0)).reshape(576, 64).astype(jnp.bfloat16)

    # fc1: pre-transposed, bf16, with torch's NCHW flatten order (c, h, w)
    # re-permuted to the kernel's (h, w, c) feature order.
    wf1 = p["w_fc1"].reshape(512, 64, 8, 8)                     # (j, c, h, w)
    wfc1 = jnp.transpose(wf1, (2, 3, 1, 0)).reshape(4096, 512).astype(jnp.bfloat16)

    # fc2: pre-transposed, zero-padded to 128 output lanes, bf16.
    wfc2 = jnp.zeros((512, 128), jnp.float32).at[:, :ACTION_NUM].set(
        jnp.transpose(p["w_fc2"])).astype(jnp.bfloat16)
    bfc2 = jnp.zeros((1, 128), jnp.float32).at[0, :ACTION_NUM].set(p["b_fc2"])

    return {
        "w1blk": w1blk,
        "w2p": w2p,
        "w3p": w3p,
        "wfc1": wfc1,
        "bfc1": p["b_fc1"].reshape(1, 512).astype(jnp.float32),
        "wfc2": wfc2,
        "bfc2": bfc2,
    }


# --------------------------------------------------------------------------- #
# Parameter init (torch-like layouts) and pure-JAX reference
# --------------------------------------------------------------------------- #
def init_params(key):
    def kaiming(k, shape, fan_in):
        return jax.random.normal(k, shape, jnp.float32) * jnp.sqrt(2.0 / fan_in)

    k1, k2, k3, k4, k5 = jax.random.split(key, 5)
    return {
        "w1": kaiming(k1, (32, STATE_SIZE, 8, 8), STATE_SIZE * 8 * 8),
        "w2": kaiming(k2, (64, 32, 4, 4), 32 * 4 * 4),
        "w3": kaiming(k3, (64, 64, 3, 3), 64 * 3 * 3),
        "w_fc1": kaiming(k4, (512, 64 * 8 * 8), 64 * 8 * 8),
        "b_fc1": jnp.zeros((512,), jnp.float32),
        "w_fc2": kaiming(k5, (ACTION_NUM, 512), 512),
        "b_fc2": jnp.zeros((ACTION_NUM,), jnp.float32),
    }


def reference_forward(x_nchw, p):
    dn = ("NCHW", "OIHW", "NCHW")
    x = x_nchw.astype(jnp.float32) / 255.0
    h = jax.nn.relu(jax.lax.conv_general_dilated(x, p["w1"], (4, 4), "VALID", dimension_numbers=dn))
    h = jax.nn.relu(jax.lax.conv_general_dilated(h, p["w2"], (2, 2), "VALID", dimension_numbers=dn))
    h = jax.nn.relu(jax.lax.conv_general_dilated(h, p["w3"], (1, 1), "VALID", dimension_numbers=dn))
    flat = h.reshape(h.shape[0], -1)
    h = jax.nn.relu(flat @ p["w_fc1"].T + p["b_fc1"])
    return h @ p["w_fc2"].T + p["b_fc2"]


if __name__ == "__main__":
    key = jax.random.PRNGKey(0)
    kx, kp = jax.random.split(key)

    # Batch of 2 frames: 4 channels, 92x92 (the spatial size implied by fc1 = 64*8*8).
    x = jax.random.randint(kx, (2, STATE_SIZE, 92, 92), 0, 256, dtype=jnp.int32).astype(jnp.uint8)
    params = init_params(kp)
    packed = pack_params(params)                     # one-time packing
    bt = _pick_batch_tile(x.shape[0])                # 1 image per step here (2 grid steps)

    q = jax.block_until_ready(dqn_forward(x, packed, bt=bt))
    q_ref = jax.block_until_ready(reference_forward(x, params))

    assert q.shape == (2, ACTION_NUM) and q.dtype == jnp.float32
    # bf16 weights/activations vs. f32 reference: a ~1e-2 tolerance is expected.
    assert jnp.allclose(q, q_ref, rtol=2e-2, atol=2e-2), (q, q_ref)
    print("KERNEL_OK")
</pallas_src>

<mosaic_0001>
module attributes {stable_mosaic.version = 11 : i64} {
  func.func @_conv_stack_kernel(%arg0: i32, %arg1: memref<1x121x1024xbf16, #tpu.memory_space<vmem>>, %arg2: memref<1024x128xbf16, #tpu.memory_space<vmem>>, %arg3: memref<512x64xbf16, #tpu.memory_space<vmem>>, %arg4: memref<576x64xbf16, #tpu.memory_space<vmem>>, %arg5: memref<1x64x64xbf16, #tpu.memory_space<vmem>>, %arg6: memref<1x121x128xbf16, #tpu.memory_space<vmem>>, %arg7: memref<1x109x64xbf16, #tpu.memory_space<vmem>>) attributes {dimension_semantics = [#tpu.dimension_semantics<parallel>], iteration_bounds = array<i64: 2>, scalar_prefetch = 0 : i64, scratch_operands = 2 : i64, tpu.core_type = #tpu.core_type<tc>, window_params = [{transform_indices = @transform_0, window_bounds = array<i64: 1, 121, 1024>}, {pipeline_mode = #tpu.pipeline_mode<synchronous>, transform_indices = @transform_1, window_bounds = array<i64: 1024, 128>}, {pipeline_mode = #tpu.pipeline_mode<synchronous>, transform_indices = @transform_2, window_bounds = array<i64: 512, 64>}, {pipeline_mode = #tpu.pipeline_mode<synchronous>, transform_indices = @transform_3, window_bounds = array<i64: 576, 64>}, {transform_indices = @transform_4, window_bounds = array<i64: 1, 64, 64>}]} {
    %c0 = arith.constant 0 : index
    %c0_0 = arith.constant 0 : index
    %c0_1 = arith.constant 0 : index
    %0 = vector.load %arg1[%c0, %c0_0, %c0_1] : memref<1x121x1024xbf16, #tpu.memory_space<vmem>>, vector<1x121x1024xbf16>
    %1 = vector.shape_cast %0 : vector<1x121x1024xbf16> to vector<121x1024xbf16>
    %c0_2 = arith.constant 0 : index
    %c0_3 = arith.constant 0 : index
    %2 = vector.load %arg2[%c0_2, %c0_3] : memref<1024x128xbf16, #tpu.memory_space<vmem>>, vector<1024x128xbf16>
    %cst = arith.constant dense<0.000000e+00> : vector<121x128xf32>
    %3 = tpu.matmul %1, %2, %cst {dimension_numbers = #tpu.dot_dimension_numbers<[1], [0], [0], [1], [0, 0, 1, 1], [], []>} : vector<121x1024xbf16>, vector<1024x128xbf16>, vector<121x128xf32> -> vector<121x128xf32>
    %cst_4 = arith.constant 0.000000e+00 : f32
    %4 = vector.broadcast %cst_4 : f32 to vector<121x128xf32>
    %5 = arith.maximumf %3, %4 : vector<121x128xf32>
    %6 = arith.truncf %5 : vector<121x128xf32> to vector<121x128xbf16>
    %c0_5 = arith.constant 0 : index
    %c0_6 = arith.constant 0 : index
    %c0_7 = arith.constant 0 : index
    %7 = vector.load %arg6[%c0_5, %c0_6, %c0_7] : memref<1x121x128xbf16, #tpu.memory_space<vmem>>, vector<1x121x128xbf16>
    %8 = vector.shape_cast %7 : vector<1x121x128xbf16> to vector<121x128xbf16>
    %9 = vector.shape_cast %6 : vector<121x128xbf16> to vector<1x121x128xbf16>
    tpu.vector_store %arg6[%c0_5, %c0_6, %c0_7], %9 {strides = array<i32>} : memref<1x121x128xbf16, #tpu.memory_space<vmem>>, vector<1x121x128xbf16>,
    %c0_8 = arith.constant 0 : index
    %c0_9 = arith.constant 0 : index
    %c0_10 = arith.constant 0 : index
    %10 = vector.load %arg6[%c0_8, %c0_9, %c0_10] : memref<1x121x128xbf16, #tpu.memory_space<vmem>>, vector<1x109x128xbf16>
    %11 = vector.shape_cast %10 : vector<1x109x128xbf16> to vector<109x128xbf16>
    %c0_11 = arith.constant 0 : index
    %c0_12 = arith.constant 0 : index
    %12 = vector.load %arg3[%c0_11, %c0_12] : memref<512x64xbf16, #tpu.memory_space<vmem>>, vector<128x64xbf16>
    %cst_13 = arith.constant dense<0.000000e+00> : vector<109x64xf32>
    %13 = tpu.matmul %11, %12, %cst_13 {dimension_numbers = #tpu.dot_dimension_numbers<[1], [0], [0], [1], [0, 0, 1, 1], [], []>} : vector<109x128xbf16>, vector<128x64xbf16>, vector<109x64xf32> -> vector<109x64xf32>
    %c0_14 = arith.constant 0 : index
    %c1 = arith.constant 1 : index
    %c0_15 = arith.constant 0 : index
    %14 = vector.load %arg6[%c0_14, %c1, %c0_15] : memref<1x121x128xbf16, #tpu.memory_space<vmem>>, vector<1x109x128xbf16>
    %15 = vector.shape_cast %14 : vector<1x109x128xbf16> to vector<109x128xbf16>
    %c128 = arith.constant 128 : index
    %c0_16 = arith.constant 0 : index
    %16 = vector.load %arg3[%c128, %c0_16] : memref<512x64xbf16, #tpu.memory_space<vmem>>, vector<128x64xbf16>
    %cst_17 = arith.constant dense<0.000000e+00> : vector<109x64xf32>
    %17 = tpu.matmul %15, %16, %cst_17 {dimension_numbers = #tpu.dot_dimension_numbers<[1], [0], [0], [1], [0, 0, 1, 1], [], []>} : vector<109x128xbf16>, vector<128x64xbf16>, vector<109x64xf32> -> vector<109x64xf32>
    %18 = arith.addf %13, %17 : vector<109x64xf32>
    %c0_18 = arith.constant 0 : index
    %c11 = arith.constant 11 : index
    %c0_19 = arith.constant 0 : index
    %19 = vector.load %arg6[%c0_18, %c11, %c0_19] : memref<1x121x128xbf16, #tpu.memory_space<vmem>>, vector<1x109x128xbf16>
    %20 = vector.shape_cast %19 : vector<1x109x128xbf16> to vector<109x128xbf16>
    %c256 = arith.constant 256 : index
    %c0_20 = arith.constant 0 : index
    %21 = vector.load %arg3[%c256, %c0_20] : memref<512x64xbf16, #tpu.memory_space<vmem>>, vector<128x64xbf16>
    %cst_21 = arith.constant dense<0.000000e+00> : vector<109x64xf32>
    %22 = tpu.matmul %20, %21, %cst_21 {dimension_numbers = #tpu.dot_dimension_numbers<[1], [0], [0], [1], [0, 0, 1, 1], [], []>} : vector<109x128xbf16>, vector<128x64xbf16>, vector<109x64xf32> -> vector<109x64xf32>
    %23 = arith.addf %18, %22 : vector<109x64xf32>
    %c0_22 = arith.constant 0 : index
    %c12 = arith.constant 12 : index
    %c0_23 = arith.constant 0 : index
    %24 = vector.load %arg6[%c0_22, %c12, %c0_23] : memref<1x121x128xbf16, #tpu.memory_space<vmem>>, vector<1x109x128xbf16>
    %25 = vector.shape_cast %24 : vector<1x109x128xbf16> to vector<109x128xbf16>
    %c384 = arith.constant 384 : index
    %c0_24 = arith.constant 0 : index
    %26 = vector.load %arg3[%c384, %c0_24] : memref<512x64xbf16, #tpu.memory_space<vmem>>, vector<128x64xbf16>
    %cst_25 = arith.constant dense<0.000000e+00> : vector<109x64xf32>
    %27 = tpu.matmul %25, %26, %cst_25 {dimension_numbers = #tpu.dot_dimension_numbers<[1], [0], [0], [1], [0, 0, 1, 1], [], []>} : vector<109x128xbf16>, vector<128x64xbf16>, vector<109x64xf32> -> vector<109x64xf32>
    %28 = arith.addf %23, %27 : vector<109x64xf32>
    %cst_26 = arith.constant 0.000000e+00 : f32
    %29 = vector.broadcast %cst_26 : f32 to vector<109x64xf32>
    %30 = arith.maximumf %28, %29 : vector<109x64xf32>
    %31 = arith.truncf %30 : vector<109x64xf32> to vector<109x64xbf16>
    %c0_27 = arith.constant 0 : index
    %c0_28 = arith.constant 0 : index
    %c0_29 = arith.constant 0 : index
    %32 = vector.load %arg7[%c0_27, %c0_28, %c0_29] : memref<1x109x64xbf16, #tpu.memory_space<vmem>>, vector<1x109x64xbf16>
    %33 = vector.shape_cast %32 : vector<1x109x64xbf16> to vector<109x64xbf16>
    %34 = vector.shape_cast %31 : vector<109x64xbf16> to vector<1x109x64xbf16>
    tpu.vector_store %arg7[%c0_27, %c0_28, %c0_29], %34 {strides = array<i32>} : memref<1x109x64xbf16, #tpu.memory_space<vmem>>, vector<1x109x64xbf16>,
    %c0_30 = arith.constant 0 : index
    %c0_31 = arith.constant 0 : index
    %c0_32 = arith.constant 0 : index
    %35 = vector.load %arg7[%c0_30, %c0_31, %c0_32] : memref<1x109x64xbf16, #tpu.memory_space<vmem>>, vector<1x85x64xbf16>
    %36 = vector.shape_cast %35 : vector<1x85x64xbf16> to vector<85x64xbf16>
    %c0_33 = arith.constant 0 : index
    %c0_34 = arith.constant 0 : index
    %37 = vector.load %arg4[%c0_33, %c0_34] : memref<576x64xbf16, #tpu.memory_space<vmem>>, vector<64x64xbf16>
    %cst_35 = arith.constant dense<0.000000e+00> : vector<85x64xf32>
    %38 = tpu.matmul %36, %37, %cst_35 {dimension_numbers = #tpu.dot_dimension_numbers<[1], [0], [0], [1], [0, 0, 1, 1], [], []>} : vector<85x64xbf16>, vector<64x64xbf16>, vector<85x64xf32> -> vector<85x64xf32>
    %c0_36 = arith.constant 0 : index
    %c1_37 = arith.constant 1 : index
    %c0_38 = arith.constant 0 : index
    %39 = vector.load %arg7[%c0_36, %c1_37, %c0_38] : memref<1x109x64xbf16, #tpu.memory_space<vmem>>, vector<1x85x64xbf16>
    %40 = vector.shape_cast %39 : vector<1x85x64xbf16> to vector<85x64xbf16>
    %c64 = arith.constant 64 : index
    %c0_39 = arith.constant 0 : index
    %41 = vector.load %arg4[%c64, %c0_39] : memref<576x64xbf16, #tpu.memory_space<vmem>>, vector<64x64xbf16>
    %cst_40 = arith.constant dense<0.000000e+00> : vector<85x64xf32>
    %42 = tpu.matmul %40, %41, %cst_40 {dimension_numbers = #tpu.dot_dimension_numbers<[1], [0], [0], [1], [0, 0, 1, 1], [], []>} : vector<85x64xbf16>, vector<64x64xbf16>, vector<85x64xf32> -> vector<85x64xf32>
    %43 = arith.addf %38, %42 : vector<85x64xf32>
    %c0_41 = arith.constant 0 : index
    %c2 = arith.constant 2 : index
    %c0_42 = arith.constant 0 : index
    %44 = vector.load %arg7[%c0_41, %c2, %c0_42] : memref<1x109x64xbf16, #tpu.memory_space<vmem>>, vector<1x85x64xbf16>
    %45 = vector.shape_cast %44 : vector<1x85x64xbf16> to vector<85x64xbf16>
    %c128_43 = arith.constant 128 : index
    %c0_44 = arith.constant 0 : index
    %46 = vector.load %arg4[%c128_43, %c0_44] : memref<576x64xbf16, #tpu.memory_space<vmem>>, vector<64x64xbf16>
    %cst_45 = arith.constant dense<0.000000e+00> : vector<85x64xf32>
    %47 = tpu.matmul %45, %46, %cst_45 {dimension_numbers = #tpu.dot_dimension_numbers<[1], [0], [0], [1], [0, 0, 1, 1], [], []>} : vector<85x64xbf16>, vector<64x64xbf16>, vector<85x64xf32> -> vector<85x64xf32>
    %48 = arith.addf %43, %47 : vector<85x64xf32>
    %c0_46 = arith.constant 0 : index
    %c11_47 = arith.constant 11 : index
    %c0_48 = arith.constant 0 : index
    %49 = vector.load %arg7[%c0_46, %c11_47, %c0_48] : memref<1x109x64xbf16, #tpu.memory_space<vmem>>, vector<1x85x64xbf16>
    %50 = vector.shape_cast %49 : vector<1x85x64xbf16> to vector<85x64xbf16>
    %c192 = arith.constant 192 : index
    %c0_49 = arith.constant 0 : index
    %51 = vector.load %arg4[%c192, %c0_49] : memref<576x64xbf16, #tpu.memory_space<vmem>>, vector<64x64xbf16>
    %cst_50 = arith.constant dense<0.000000e+00> : vector<85x64xf32>
    %52 = tpu.matmul %50, %51, %cst_50 {dimension_numbers = #tpu.dot_dimension_numbers<[1], [0], [0], [1], [0, 0, 1, 1], [], []>} : vector<85x64xbf16>, vector<64x64xbf16>, vector<85x64xf32> -> vector<85x64xf32>
    %53 = arith.addf %48, %52 : vector<85x64xf32>
    %c0_51 = arith.constant 0 : index
    %c12_52 = arith.constant 12 : index
    %c0_53 = arith.constant 0 : index
    %54 = vector.load %arg7[%c0_51, %c12_52, %c0_53] : memref<1x109x64xbf16, #tpu.memory_space<vmem>>, vector<1x85x64xbf16>
    %55 = vector.shape_cast %54 : vector<1x85x64xbf16> to vector<85x64xbf16>
    %c256_54 = arith.constant 256 : index
    %c0_55 = arith.constant 0 : index
    %56 = vector.load %arg4[%c256_54, %c0_55] : memref<576x64xbf16, #tpu.memory_space<vmem>>, vector<64x64xbf16>
    %cst_56 = arith.constant dense<0.000000e+00> : vector<85x64xf32>
    %57 = tpu.matmul %55, %56, %cst_56 {dimension_numbers = #tpu.dot_dimension_numbers<[1], [0], [0], [1], [0, 0, 1, 1], [], []>} : vector<85x64xbf16>, vector<64x64xbf16>, vector<85x64xf32> -> vector<85x64xf32>
    %58 = arith.addf %53, %57 : vector<85x64xf32>
    %c0_57 = arith.constant 0 : index
    %c13 = arith.constant 13 : index
    %c0_58 = arith.constant 0 : index
    %59 = vector.load %arg7[%c0_57, %c13, %c0_58] : memref<1x109x64xbf16, #tpu.memory_space<vmem>>, vector<1x85x64xbf16>
    %60 = vector.shape_cast %59 : vector<1x85x64xbf16> to vector<85x64xbf16>
    %c320 = arith.constant 320 : index
    %c0_59 = arith.constant 0 : index
    %61 = vector.load %arg4[%c320, %c0_59] : memref<576x64xbf16, #tpu.memory_space<vmem>>, vector<64x64xbf16>
    %cst_60 = arith.constant dense<0.000000e+00> : vector<85x64xf32>
    %62 = tpu.matmul %60, %61, %cst_60 {dimension_numbers = #tpu.dot_dimension_numbers<[1], [0], [0], [1], [0, 0, 1, 1], [], []>} : vector<85x64xbf16>, vector<64x64xbf16>, vector<85x64xf32> -> vector<85x64xf32>
    %63 = arith.addf %58, %62 : vector<85x64xf32>
    %c0_61 = arith.constant 0 : index
    %c22 = arith.constant 22 : index
    %c0_62 = arith.constant 0 : index
    %64 = vector.load %arg7[%c0_61, %c22, %c0_62] : memref<1x109x64xbf16, #tpu.memory_space<vmem>>, vector<1x85x64xbf16>
    %65 = vector.shape_cast %64 : vector<1x85x64xbf16> to vector<85x64xbf16>
    %c384_63 = arith.constant 384 : index
    %c0_64 = arith.constant 0 : index
    %66 = vector.load %arg4[%c384_63, %c0_64] : memref<576x64xbf16, #tpu.memory_space<vmem>>, vector<64x64xbf16>
    %cst_65 = arith.constant dense<0.000000e+00> : vector<85x64xf32>
    %67 = tpu.matmul %65, %66, %cst_65 {dimension_numbers = #tpu.dot_dimension_numbers<[1], [0], [0], [1], [0, 0, 1, 1], [], []>} : vector<85x64xbf16>, vector<64x64xbf16>, vector<85x64xf32> -> vector<85x64xf32>
    %68 = arith.addf %63, %67 : vector<85x64xf32>
    %c0_66 = arith.constant 0 : index
    %c23 = arith.constant 23 : index
    %c0_67 = arith.constant 0 : index
    %69 = vector.load %arg7[%c0_66, %c23, %c0_67] : memref<1x109x64xbf16, #tpu.memory_space<vmem>>, vector<1x85x64xbf16>
    %70 = vector.shape_cast %69 : vector<1x85x64xbf16> to vector<85x64xbf16>
    %c448 = arith.constant 448 : index
    %c0_68 = arith.constant 0 : index
    %71 = vector.load %arg4[%c448, %c0_68] : memref<576x64xbf16, #tpu.memory_space<vmem>>, vector<64x64xbf16>
    %cst_69 = arith.constant dense<0.000000e+00> : vector<85x64xf32>
    %72 = tpu.matmul %70, %71, %cst_69 {dimension_numbers = #tpu.dot_dimension_numbers<[1], [0], [0], [1], [0, 0, 1, 1], [], []>} : vector<85x64xbf16>, vector<64x64xbf16>, vector<85x64xf32> -> vector<85x64xf32>
    %73 = arith.addf %68, %72 : vector<85x64xf32>
    %c0_70 = arith.constant 0 : index
    %c24 = arith.constant 24 : index
    %c0_71 = arith.constant 0 : index
    %74 = vector.load %arg7[%c0_70, %c24, %c0_71] : memref<1x109x64xbf16, #tpu.memory_space<vmem>>, vector<1x85x64xbf16>
    %75 = vector.shape_cast %74 : vector<1x85x64xbf16> to vector<85x64xbf16>
    %c512 = arith.constant 512 : index
    %c0_72 = arith.constant 0 : index
    %76 = vector.load %arg4[%c512, %c0_72] : memref<576x64xbf16, #tpu.memory_space<vmem>>, vector<64x64xbf16>
    %cst_73 = arith.constant dense<0.000000e+00> : vector<85x64xf32>
    %77 = tpu.matmul %75, %76, %cst_73 {dimension_numbers = #tpu.dot_dimension_numbers<[1], [0], [0], [1], [0, 0, 1, 1], [], []>} : vector<85x64xbf16>, vector<64x64xbf16>, vector<85x64xf32> -> vector<85x64xf32>
    %78 = arith.addf %73, %77 : vector<85x64xf32>
    %cst_74 = arith.constant 0.000000e+00 : f32
    %79 = vector.broadcast %cst_74 : f32 to vector<85x64xf32>
    %80 = arith.maximumf %78, %79 : vector<85x64xf32>
    %81 = vector.extract_strided_slice %80 {offsets = [0, 0], sizes = [8, 64], strides = [1, 1]} : vector<85x64xf32> to vector<8x64xf32>
    %82 = arith.truncf %81 : vector<8x64xf32> to vector<8x64xbf16>
    %c0_75 = arith.constant 0 : index
    %c0_76 = arith.constant 0 : index
    %c0_77 = arith.constant 0 : index
    %83 = vector.load %arg5[%c0_75, %c0_76, %c0_77] : memref<1x64x64xbf16, #tpu.memory_space<vmem>>, vector<1x8x64xbf16>
    %84 = vector.shape_cast %83 : vector<1x8x64xbf16> to vector<8x64xbf16>
    %85 = vector.shape_cast %82 : vector<8x64xbf16> to vector<1x8x64xbf16>
    tpu.vector_store %arg5[%c0_75, %c0_76, %c0_77], %85 {strides = array<i32>} : memref<1x64x64xbf16, #tpu.memory_space<vmem>>, vector<1x8x64xbf16>,
    %86 = vector.extract_strided_slice %80 {offsets = [11, 0], sizes = [8, 64], strides = [1, 1]} : vector<85x64xf32> to vector<8x64xf32>
    %87 = arith.truncf %86 : vector<8x64xf32> to vector<8x64xbf16>
    %c0_78 = arith.constant 0 : index
    %c8 = arith.constant 8 : index
    %c0_79 = arith.constant 0 : index
    %88 = vector.load %arg5[%c0_78, %c8, %c0_79] : memref<1x64x64xbf16, #tpu.memory_space<vmem>>, vector<1x8x64xbf16>
    %89 = vector.shape_cast %88 : vector<1x8x64xbf16> to vector<8x64xbf16>
    %90 = vector.shape_cast %87 : vector<8x64xbf16> to vector<1x8x64xbf16>
    tpu.vector_store %arg5[%c0_78, %c8, %c0_79], %90 {strides = array<i32>} : memref<1x64x64xbf16, #tpu.memory_space<vmem>>, vector<1x8x64xbf16>,
    %91 = vector.extract_strided_slice %80 {offsets = [22, 0], sizes = [8, 64], strides = [1, 1]} : vector<85x64xf32> to vector<8x64xf32>
    %92 = arith.truncf %91 : vector<8x64xf32> to vector<8x64xbf16>
    %c0_80 = arith.constant 0 : index
    %c16 = arith.constant 16 : index
    %c0_81 = arith.constant 0 : index
    %93 = vector.load %arg5[%c0_80, %c16, %c0_81] : memref<1x64x64xbf16, #tpu.memory_space<vmem>>, vector<1x8x64xbf16>
    %94 = vector.shape_cast %93 : vector<1x8x64xbf16> to vector<8x64xbf16>
    %95 = vector.shape_cast %92 : vector<8x64xbf16> to vector<1x8x64xbf16>
    tpu.vector_store %arg5[%c0_80, %c16, %c0_81], %95 {strides = array<i32>} : memref<1x64x64xbf16, #tpu.memory_space<vmem>>, vector<1x8x64xbf16>,
    %96 = vector.extract_strided_slice %80 {offsets = [33, 0], sizes = [8, 64], strides = [1, 1]} : vector<85x64xf32> to vector<8x64xf32>
    %97 = arith.truncf %96 : vector<8x64xf32> to vector<8x64xbf16>
    %c0_82 = arith.constant 0 : index
    %c24_83 = arith.constant 24 : index
    %c0_84 = arith.constant 0 : index
    %98 = vector.load %arg5[%c0_82, %c24_83, %c0_84] : memref<1x64x64xbf16, #tpu.memory_space<vmem>>, vector<1x8x64xbf16>
    %99 = vector.shape_cast %98 : vector<1x8x64xbf16> to vector<8x64xbf16>
    %100 = vector.shape_cast %97 : vector<8x64xbf16> to vector<1x8x64xbf16>
    tpu.vector_store %arg5[%c0_82, %c24_83, %c0_84], %100 {strides = array<i32>} : memref<1x64x64xbf16, #tpu.memory_space<vmem>>, vector<1x8x64xbf16>,
    %101 = vector.extract_strided_slice %80 {offsets = [44, 0], sizes = [8, 64], strides = [1, 1]} : vector<85x64xf32> to vector<8x64xf32>
    %102 = arith.truncf %101 : vector<8x64xf32> to vector<8x64xbf16>
    %c0_85 = arith.constant 0 : index
    %c32 = arith.constant 32 : index
    %c0_86 = arith.constant 0 : index
    %103 = vector.load %arg5[%c0_85, %c32, %c0_86] : memref<1x64x64xbf16, #tpu.memory_space<vmem>>, vector<1x8x64xbf16>
    %104 = vector.shape_cast %103 : vector<1x8x64xbf16> to vector<8x64xbf16>
    %105 = vector.shape_cast %102 : vector<8x64xbf16> to vector<1x8x64xbf16>
    tpu.vector_store %arg5[%c0_85, %c32, %c0_86], %105 {strides = array<i32>} : memref<1x64x64xbf16, #tpu.memory_space<vmem>>, vector<1x8x64xbf16>,
    %106 = vector.extract_strided_slice %80 {offsets = [55, 0], sizes = [8, 64], strides = [1, 1]} : vector<85x64xf32> to vector<8x64xf32>
    %107 = arith.truncf %106 : vector<8x64xf32> to vector<8x64xbf16>
    %c0_87 = arith.constant 0 : index
    %c40 = arith.constant 40 : index
    %c0_88 = arith.constant 0 : index
    %108 = vector.load %arg5[%c0_87, %c40, %c0_88] : memref<1x64x64xbf16, #tpu.memory_space<vmem>>, vector<1x8x64xbf16>
    %109 = vector.shape_cast %108 : vector<1x8x64xbf16> to vector<8x64xbf16>
    %110 = vector.shape_cast %107 : vector<8x64xbf16> to vector<1x8x64xbf16>
    tpu.vector_store %arg5[%c0_87, %c40, %c0_88], %110 {strides = array<i32>} : memref<1x64x64xbf16, #tpu.memory_space<vmem>>, vector<1x8x64xbf16>,
    %111 = vector.extract_strided_slice %80 {offsets = [66, 0], sizes = [8, 64], strides = [1, 1]} : vector<85x64xf32> to vector<8x64xf32>
    %112 = arith.truncf %111 : vector<8x64xf32> to vector<8x64xbf16>
    %c0_89 = arith.constant 0 : index
    %c48 = arith.constant 48 : index
    %c0_90 = arith.constant 0 : index
    %113 = vector.load %arg5[%c0_89, %c48, %c0_90] : memref<1x64x64xbf16, #tpu.memory_space<vmem>>, vector<1x8x64xbf16>
    %114 = vector.shape_cast %113 : vector<1x8x64xbf16> to vector<8x64xbf16>
    %115 = vector.shape_cast %112 : vector<8x64xbf16> to vector<1x8x64xbf16>
    tpu.vector_store %arg5[%c0_89, %c48, %c0_90], %115 {strides = array<i32>} : memref<1x64x64xbf16, #tpu.memory_space<vmem>>, vector<1x8x64xbf16>,
    %116 = vector.extract_strided_slice %80 {offsets = [77, 0], sizes = [8, 64], strides = [1, 1]} : vector<85x64xf32> to vector<8x64xf32>
    %117 = arith.truncf %116 : vector<8x64xf32> to vector<8x64xbf16>
    %c0_91 = arith.constant 0 : index
    %c56 = arith.constant 56 : index
    %c0_92 = arith.constant 0 : index
    %118 = vector.load %arg5[%c0_91, %c56, %c0_92] : memref<1x64x64xbf16, #tpu.memory_space<vmem>>, vector<1x8x64xbf16>
    %119 = vector.shape_cast %118 : vector<1x8x64xbf16> to vector<8x64xbf16>
    %120 = vector.shape_cast %117 : vector<8x64xbf16> to vector<1x8x64xbf16>
    tpu.vector_store %arg5[%c0_91, %c56, %c0_92], %120 {strides = array<i32>} : memref<1x64x64xbf16, #tpu.memory_space<vmem>>, vector<1x8x64xbf16>,
    return
  }
  func.func @transform_0(%arg0: i32) -> (i32, i32, i32) {
    %c0_i32 = arith.constant 0 : i32
    %c0_i32_0 = arith.constant 0 : i32
    %c0_i32_1 = arith.constant 0 : i32
    return %arg0, %c0_i32, %c0_i32_0 : i32, i32, i32
  }
  func.func @transform_1(%arg0: i32) -> (i32, i32) {
    %c0_i32 = arith.constant 0 : i32
    %c0_i32_0 = arith.constant 0 : i32
    %c0_i32_1 = arith.constant 0 : i32
    return %c0_i32, %c0_i32_0 : i32, i32
  }
  func.func @transform_2(%arg0: i32) -> (i32, i32) {
    %c0_i32 = arith.constant 0 : i32
    %c0_i32_0 = arith.constant 0 : i32
    %c0_i32_1 = arith.constant 0 : i32
    return %c0_i32, %c0_i32_0 : i32, i32
  }
  func.func @transform_3(%arg0: i32) -> (i32, i32) {
    %c0_i32 = arith.constant 0 : i32
    %c0_i32_0 = arith.constant 0 : i32
    %c0_i32_1 = arith.constant 0 : i32
    return %c0_i32, %c0_i32_0 : i32, i32
  }
  func.func @transform_4(%arg0: i32) -> (i32, i32, i32) {
    %c0_i32 = arith.constant 0 : i32
    %c0_i32_0 = arith.constant 0 : i32
    %c0_i32_1 = arith.constant 0 : i32
    return %arg0, %c0_i32, %c0_i32_0 : i32, i32, i32
  }
}

module attributes {stable_mosaic.version = 11 : i64} {
  func.func @_fc_kernel(%arg0: i32, %arg1: memref<2x4096xbf16, #tpu.memory_space<vmem>>, %arg2: memref<4096x128xbf16, #tpu.memory_space<vmem>>, %arg3: memref<1x128xf32, #tpu.memory_space<vmem>>, %arg4: memref<128x128xbf16, #tpu.memory_space<vmem>>, %arg5: memref<1x128xf32, #tpu.memory_space<vmem>>, %arg6: memref<2x128xf32, #tpu.memory_space<vmem>>, %arg7: memref<2x128xf32, #tpu.memory_space<vmem>>) attributes {dimension_semantics = [#tpu.dimension_semantics<arbitrary>], iteration_bounds = array<i64: 4>, scalar_prefetch = 0 : i64, scratch_operands = 1 : i64, tpu.core_type = #tpu.core_type<tc>, window_params = [{pipeline_mode = #tpu.pipeline_mode<synchronous>, transform_indices = @transform_0, window_bounds = array<i64: 2, 4096>}, {transform_indices = @transform_1, window_bounds = array<i64: 4096, 128>}, {transform_indices = @transform_2, window_bounds = array<i64: 1, 128>}, {transform_indices = @transform_3, window_bounds = array<i64: 128, 128>}, {pipeline_mode = #tpu.pipeline_mode<synchronous>, transform_indices = @transform_4, window_bounds = array<i64: 1, 128>}, {pipeline_mode = #tpu.pipeline_mode<synchronous>, transform_indices = @transform_5, window_bounds = array<i64: 2, 128>}]} {
    %c0_i32 = arith.constant 0 : i32
    %0 = arith.cmpi eq, %arg0, %c0_i32 : i32
    %1 = arith.extui %0 : i1 to i32
    %c0_i32_0 = arith.constant 0 : i32
    %2 = arith.cmpi ne, %1, %c0_i32_0 : i32
    scf.if %2 {
      %cst_15 = arith.constant 0.000000e+00 : f32
      %20 = vector.broadcast %cst_15 : f32 to vector<2x128xf32>
      %c0_16 = arith.constant 0 : index
      %c0_17 = arith.constant 0 : index
      %21 = vector.load %arg7[%c0_16, %c0_17] : memref<2x128xf32, #tpu.memory_space<vmem>>, vector<2x128xf32>
      tpu.vector_store %arg7[%c0_16, %c0_17], %20 {strides = array<i32>} : memref<2x128xf32, #tpu.memory_space<vmem>>, vector<2x128xf32>,
    } else {
    }
    %c0 = arith.constant 0 : index
    %c0_1 = arith.constant 0 : index
    %3 = vector.load %arg1[%c0, %c0_1] : memref<2x4096xbf16, #tpu.memory_space<vmem>>, vector<2x4096xbf16>
    %c0_2 = arith.constant 0 : index
    %c0_3 = arith.constant 0 : index
    %4 = vector.load %arg2[%c0_2, %c0_3] : memref<4096x128xbf16, #tpu.memory_space<vmem>>, vector<4096x128xbf16>
    %cst = arith.constant dense<0.000000e+00> : vector<2x128xf32>
    %5 = tpu.matmul %3, %4, %cst {dimension_numbers = #tpu.dot_dimension_numbers<[1], [0], [0], [1], [0, 0, 1, 1], [], []>} : vector<2x4096xbf16>, vector<4096x128xbf16>, vector<2x128xf32> -> vector<2x128xf32>
    %c0_4 = arith.constant 0 : index
    %c0_5 = arith.constant 0 : index
    %6 = vector.load %arg3[%c0_4, %c0_5] : memref<1x128xf32, #tpu.memory_space<vmem>>, vector<1x128xf32>
    %7 = vector.broadcast %6 : vector<1x128xf32> to vector<2x128xf32>
    %8 = arith.addf %5, %7 : vector<2x128xf32>
    %cst_6 = arith.constant 0.000000e+00 : f32
    %9 = vector.broadcast %cst_6 : f32 to vector<2x128xf32>
    %10 = arith.maximumf %8, %9 : vector<2x128xf32>
    %11 = arith.truncf %10 : vector<2x128xf32> to vector<2x128xbf16>
    %c0_7 = arith.constant 0 : index
    %c0_8 = arith.constant 0 : index
    %12 = vector.load %arg7[%c0_7, %c0_8] : memref<2x128xf32, #tpu.memory_space<vmem>>, vector<2x128xf32>
    %c0_9 = arith.constant 0 : index
    %c0_10 = arith.constant 0 : index
    %13 = vector.load %arg4[%c0_9, %c0_10] : memref<128x128xbf16, #tpu.memory_space<vmem>>, vector<128x128xbf16>
    %cst_11 = arith.constant dense<0.000000e+00> : vector<2x128xf32>
    %14 = tpu.matmul %11, %13, %cst_11 {dimension_numbers = #tpu.dot_dimension_numbers<[1], [0], [0], [1], [0, 0, 1, 1], [], []>} : vector<2x128xbf16>, vector<128x128xbf16>, vector<2x128xf32> -> vector<2x128xf32>
    %15 = arith.addf %12, %14 : vector<2x128xf32>
    %c0_12 = arith.constant 0 : index
    %c0_13 = arith.constant 0 : index
    %16 = vector.load %arg7[%c0_12, %c0_13] : memref<2x128xf32, #tpu.memory_space<vmem>>, vector<2x128xf32>
    tpu.vector_store %arg7[%c0_12, %c0_13], %15 {strides = array<i32>} : memref<2x128xf32, #tpu.memory_space<vmem>>, vector<2x128xf32>,
    %c3_i32 = arith.constant 3 : i32
    %17 = arith.cmpi eq, %arg0, %c3_i32 : i32
    %18 = arith.extui %17 : i1 to i32
    %c0_i32_14 = arith.constant 0 : i32
    %19 = arith.cmpi ne, %18, %c0_i32_14 : i32
    scf.if %19 {
      %c0_15 = arith.constant 0 : index
      %c0_16 = arith.constant 0 : index
      %20 = vector.load %arg7[%c0_15, %c0_16] : memref<2x128xf32, #tpu.memory_space<vmem>>, vector<2x128xf32>
      %c0_17 = arith.constant 0 : index
      %c0_18 = arith.constant 0 : index
      %21 = vector.load %arg5[%c0_17, %c0_18] : memref<1x128xf32, #tpu.memory_space<vmem>>, vector<1x128xf32>
      %22 = vector.broadcast %21 : vector<1x128xf32> to vector<2x128xf32>
      %23 = arith.addf %20, %22 : vector<2x128xf32>
      %c0_19 = arith.constant 0 : index
      %c0_20 = arith.constant 0 : index
      %24 = vector.load %arg6[%c0_19, %c0_20] : memref<2x128xf32, #tpu.memory_space<vmem>>, vector<2x128xf32>
      tpu.vector_store %arg6[%c0_19, %c0_20], %23 {strides = array<i32>} : memref<2x128xf32, #tpu.memory_space<vmem>>, vector<2x128xf32>,
    } else {
    }
    return
  }
  func.func @transform_0(%arg0: i32) -> (i32, i32) {
    %c0_i32 = arith.constant 0 : i32
    %c0_i32_0 = arith.constant 0 : i32
    %c0_i32_1 = arith.constant 0 : i32
    return %c0_i32, %c0_i32_0 : i32, i32
  }
  func.func @transform_1(%arg0: i32) -> (i32, i32) {
    %c0_i32 = arith.constant 0 : i32
    %c0_i32_0 = arith.constant 0 : i32
    return %c0_i32, %arg0 : i32, i32
  }
  func.func @transform_2(%arg0: i32) -> (i32, i32) {
    %c0_i32 = arith.constant 0 : i32
    %c0_i32_0 = arith.constant 0 : i32
    return %c0_i32, %arg0 : i32, i32
  }
  func.func @transform_3(%arg0: i32) -> (i32, i32) {
    %c0_i32 = arith.constant 0 : i32
    %c0_i32_0 = arith.constant 0 : i32
    return %arg0, %c0_i32 : i32, i32
  }
  func.func @transform_4(%arg0: i32) -> (i32, i32) {
    %c0_i32 = arith.constant 0 : i32
    %c0_i32_0 = arith.constant 0 : i32
    %c0_i32_1 = arith.constant 0 : i32
    return %c0_i32, %c0_i32_0 : i32, i32
  }
  func.func @transform_5(%arg0: i32) -> (i32, i32) {
    %c0_i32 = arith.constant 0 : i32
    %c0_i32_0 = arith.constant 0 : i32
    %c0_i32_1 = arith.constant 0 : i32
    return %c0_i32, %c0_i32_0 : i32, i32
  }
}

</mosaic_0001>

<bundles_post_ra>
// kernel: dqn_forward.3
= control target key start
LH: loop header
LB: loop body
LE: loop exit
PB: predicated region body
PF: predicated region fallthrough
CT: control target
= control target key end

     0   :  { %10 = vsyncpa [#allocation5], 0  ;;  %s8605_s18 = smov 0   ;;  %s8607_s19 = smov 0   ;;  %s10053_s0 = inlined_call_operand.vmem [shape: bf16[2,4096], index: 0, kind: input, shape index: {}]   ;;  %s10054_s1 = inlined_call_operand.vmem [shape: bf16[4096,512], index: 1, kind: input, shape index: {}]   ;;  %s10055_s2 = inlined_call_operand.vmem [shape: f32[1,512], index: 2, kind: input, shape index: {}]   ;;  %s10056_s3 = inlined_call_operand.vmem [shape: bf16[512,128], index: 3, kind: input, shape index: {}]   ;;  %s10057_s4 = inlined_call_operand.vmem [shape: f32[1,128], index: 4, kind: input, shape index: {}]   ;;  %s10058_s5 = inlined_call_operand.hbm [shape: f32[2,128], index: 5, kind: output, shape index: {}]  }
   0x1   :  { %s8609_s20 = smov 0  }
   0x2 LB: > { %s8621_s21 = sadd.s32 4294967295, %s8568_s20   ;;  %s8624_s22 = sadd.s32 1, %s8568_s20   ;;  %s8568_s20 = sphi %s8609_s20, %s10061_s20   ;;  %s8564_s19 = sphi %s8607_s19, %s10060_s19   ;;  %s8560_s18 = sphi %s8605_s18, %s10059_s18  }
   0x3   : > { %s41_s23 = ssub.s32 %s8568_s20, %s8624_s22  ;;  %s44_s24 = sadd.s32 1, %s8564_s19 }
   0x4   : > { %p42_p0 = scmp.eq.s32.totalorder %s41_s23, 0  ;;  %p51_p1 = scmp.ne.s32.totalorder %s8564_s19, %s8560_s18 }
   0x5   : > { %p52_p2 = scmp.eq.s32.totalorder %s8568_s20, 0  ;;  %p7553_p4 = scmp.ge.s32.totalorder %s8568_s20, 4 }
   0x6   : > { %s8633_s25 = scalar_select %p42_p0, %s8564_s19, %s44_s24  }
   0x7   : > { %p53_p3 = por %p52_p2, %p51_p1  ;;  %177 = sbr.rel (%p7553_p4) target bundleno = 359 (0x167), region = 24 }
   0xe   : > { %180 = sbr.rel (!%p53_p3) target bundleno = 359 (0x167), region = 28  ;;  %s182_s26 = sand.u32 (%p53_p3), 1, %s8564_s19  }
   0xf   : > { %s7555_s27 = sshll.u32 (%p53_p3), %s8568_s20, 2  ;;  %s7554_s28 = sshll.u32 (%p53_p3), %s182_s26, 11 }
  0x10   : > { %s8641_s6 = scalar_lea.vmem (%p53_p3), %s10054_s1, %s7555_s27  ;;  %s8645_s7 = scalar_lea.vmem (%p53_p3), [#allocation3], %s7554_s28 }
  0x11   : > { %v202_v0 = vld [vmem:[%s8641_s6] sm:$0xf] (%p53_p3)  ;;  %v204_v1 = vld [vmem:[%s8641_s6 + $0x10] sm:$0xf] (%p53_p3) }
  0x12   : > { %203 = vst [vmem:[%s8645_s7] sm:$0xf] (%p53_p3), %v202_v0  ;;  %205 = vst [vmem:[%s8645_s7 + $0x4] sm:$0xf] (%p53_p3), %v204_v1  ;;  %v206_v2 = vld [vmem:[%s8641_s6 + $0x20] sm:$0xf] (%p53_p3) }
  0x13   : > { %v208_v3 = vld [vmem:[%s8641_s6 + $0x30] sm:$0xf] (%p53_p3)  ;;  %v210_v4 = vld [vmem:[%s8641_s6 + $0x40] sm:$0xf] (%p53_p3)  ;;  %207 = vst [vmem:[%s8645_s7 + $0x8] sm:$0xf] (%p53_p3), %v206_v2 }
  0x14   : > { %209 = vst [vmem:[%s8645_s7 + $0xc] sm:$0xf] (%p53_p3), %v208_v3  ;;  %211 = vst [vmem:[%s8645_s7 + $0x10] sm:$0xf] (%p53_p3), %v210_v4  ;;  %v212_v5 = vld [vmem:[%s8641_s6 + $0x50] sm:$0xf] (%p53_p3) }
  0x15   : > { %v214_v6 = vld [vmem:[%s8641_s6 + $0x60] sm:$0xf]  ;;  %v216_v7 = vld [vmem:[%s8641_s6 + $0x70] sm:$0xf]  ;;  %213 = vst [vmem:[%s8645_s7 + $0x14] sm:$0xf] %v212_v5 }
  0x16   : > { %215 = vst [vmem:[%s8645_s7 + $0x18] sm:$0xf] %v214_v6  ;;  %217 = vst [vmem:[%s8645_s7 + $0x1c] sm:$0xf] %v216_v7  ;;  %v218_v8 = vld [vmem:[%s8641_s6 + $0x80] sm:$0xf] }
  0x17   : > { %v220_v9 = vld [vmem:[%s8641_s6 + $0x90] sm:$0xf]  ;;  %v222_v10 = vld [vmem:[%s8641_s6 + $0xa0] sm:$0xf]  ;;  %219 = vst [vmem:[%s8645_s7 + $0x20] sm:$0xf] %v218_v8 }
  0x18   : > { %221 = vst [vmem:[%s8645_s7 + $0x24] sm:$0xf] %v220_v9  ;;  %223 = vst [vmem:[%s8645_s7 + $0x28] sm:$0xf] %v222_v10  ;;  %v224_v11 = vld [vmem:[%s8641_s6 + $0xb0] sm:$0xf] }
  0x19   : > { %v226_v12 = vld [vmem:[%s8641_s6 + $0xc0] sm:$0xf]  ;;  %v228_v13 = vld [vmem:[%s8641_s6 + $0xd0] sm:$0xf]  ;;  %225 = vst [vmem:[%s8645_s7 + $0x2c] sm:$0xf] %v224_v11 }
  0x1a   : > { %227 = vst [vmem:[%s8645_s7 + $0x30] sm:$0xf] %v226_v12  ;;  %229 = vst [vmem:[%s8645_s7 + $0x34] sm:$0xf] %v228_v13  ;;  %v230_v14 = vld [vmem:[%s8641_s6 + $0xe0] sm:$0xf] }
  0x1b   : > { %v232_v15 = vld [vmem:[%s8641_s6 + $0xf0] sm:$0xf]  ;;  %v234_v16 = vld [vmem:[%s8641_s6 + $0x100] sm:$0xf]  ;;  %231 = vst [vmem:[%s8645_s7 + $0x38] sm:$0xf] %v230_v14 }
  0x1c   : > { %233 = vst [vmem:[%s8645_s7 + $0x3c] sm:$0xf] %v232_v15  ;;  %235 = vst [vmem:[%s8645_s7 + $0x40] sm:$0xf] %v234_v16  ;;  %v236_v17 = vld [vmem:[%s8641_s6 + $0x110] sm:$0xf] }
  0x1d   : > { %v238_v18 = vld [vmem:[%s8641_s6 + $0x120] sm:$0xf]  ;;  %v240_v19 = vld [vmem:[%s8641_s6 + $0x130] sm:$0xf]  ;;  %237 = vst [vmem:[%s8645_s7 + $0x44] sm:$0xf] %v236_v17 }
  0x1e   : > { %239 = vst [vmem:[%s8645_s7 + $0x48] sm:$0xf] %v238_v18  ;;  %241 = vst [vmem:[%s8645_s7 + $0x4c] sm:$0xf] %v240_v19  ;;  %v242_v20 = vld [vmem:[%s8641_s6 + $0x140] sm:$0xf] }
  0x1f   : > { %v244_v21 = vld [vmem:[%s8641_s6 + $0x150] sm:$0xf]  ;;  %v246_v22 = vld [vmem:[%s8641_s6 + $0x160] sm:$0xf]  ;;  %243 = vst [vmem:[%s8645_s7 + $0x50] sm:$0xf] %v242_v20 }
  0x20   : > { %245 = vst [vmem:[%s8645_s7 + $0x54] sm:$0xf] %v244_v21  ;;  %247 = vst [vmem:[%s8645_s7 + $0x58] sm:$0xf] %v246_v22  ;;  %v248_v23 = vld [vmem:[%s8641_s6 + $0x170] sm:$0xf] }
  0x21   : > { %v250_v24 = vld [vmem:[%s8641_s6 + $0x180] sm:$0xf]  ;;  %v252_v25 = vld [vmem:[%s8641_s6 + $0x190] sm:$0xf]  ;;  %249 = vst [vmem:[%s8645_s7 + $0x5c] sm:$0xf] %v248_v23 }
  0x22   : > { %251 = vst [vmem:[%s8645_s7 + $0x60] sm:$0xf] %v250_v24  ;;  %253 = vst [vmem:[%s8645_s7 + $0x64] sm:$0xf] %v252_v25  ;;  %v254_v26 = vld [vmem:[%s8641_s6 + $0x1a0] sm:$0xf] }
  0x23   : > { %v256_v27 = vld [vmem:[%s8641_s6 + $0x1b0] sm:$0xf]  ;;  %v258_v28 = vld [vmem:[%s8641_s6 + $0x1c0] sm:$0xf]  ;;  %255 = vst [vmem:[%s8645_s7 + $0x68] sm:$0xf] %v254_v26 }
  0x24   : > { %257 = vst [vmem:[%s8645_s7 + $0x6c] sm:$0xf] %v256_v27  ;;  %259 = vst [vmem:[%s8645_s7 + $0x70] sm:$0xf] %v258_v28  ;;  %v260_v29 = vld [vmem:[%s8641_s6 + $0x1d0] sm:$0xf] }
  0x25   : > { %v262_v30 = vld [vmem:[%s8641_s6 + $0x1e0] sm:$0xf]  ;;  %v264_v31 = vld [vmem:[%s8641_s6 + $0x1f0] sm:$0xf]  ;;  %261 = vst [vmem:[%s8645_s7 + $0x74] sm:$0xf] %v260_v29 }
  0x26   : > { %263 = vst [vmem:[%s8645_s7 + $0x78] sm:$0xf] %v262_v30  ;;  %265 = vst [vmem:[%s8645_s7 + $0x7c] sm:$0xf] %v264_v31  ;;  %v266_v32 = vld [vmem:[%s8641_s6 + $0x200] sm:$0xf] }
  0x27   : > { %v268_v33 = vld [vmem:[%s8641_s6 + $0x210] sm:$0xf]  ;;  %v270_v34 = vld [vmem:[%s8641_s6 + $0x220] sm:$0xf]  ;;  %267 = vst [vmem:[%s8645_s7 + $0x80] sm:$0xf] %v266_v32 }
  0x28   : > { %269 = vst [vmem:[%s8645_s7 + $0x84] sm:$0xf] %v268_v33  ;;  %271 = vst [vmem:[%s8645_s7 + $0x88] sm:$0xf] %v270_v34  ;;  %v272_v35 = vld [vmem:[%s8641_s6 + $0x230] sm:$0xf] }
  0x29   : > { %v274_v36 = vld [vmem:[%s8641_s6 + $0x240] sm:$0xf]  ;;  %v276_v37 = vld [vmem:[%s8641_s6 + $0x250] sm:$0xf]  ;;  %273 = vst [vmem:[%s8645_s7 + $0x8c] sm:$0xf] %v272_v35 }
  0x2a   : > { %275 = vst [vmem:[%s8645_s7 + $0x90] sm:$0xf] %v274_v36  ;;  %277 = vst [vmem:[%s8645_s7 + $0x94] sm:$0xf] %v276_v37  ;;  %v278_v38 = vld [vmem:[%s8641_s6 + $0x260] sm:$0xf] }
  0x2b   : > { %v280_v39 = vld [vmem:[%s8641_s6 + $0x270] sm:$0xf]  ;;  %v282_v40 = vld [vmem:[%s8641_s6 + $0x280] sm:$0xf]  ;;  %279 = vst [vmem:[%s8645_s7 + $0x98] sm:$0xf] %v278_v38 }
  0x2c   : > { %281 = vst [vmem:[%s8645_s7 + $0x9c] sm:$0xf] %v280_v39  ;;  %283 = vst [vmem:[%s8645_s7 + $0xa0] sm:$0xf] %v282_v40  ;;  %v284_v41 = vld [vmem:[%s8641_s6 + $0x290] sm:$0xf] }
  0x2d   : > { %v286_v42 = vld [vmem:[%s8641_s6 + $0x2a0] sm:$0xf]  ;;  %v288_v43 = vld [vmem:[%s8641_s6 + $0x2b0] sm:$0xf]  ;;  %285 = vst [vmem:[%s8645_s7 + $0xa4] sm:$0xf] %v284_v41 }
  0x2e   : > { %287 = vst [vmem:[%s8645_s7 + $0xa8] sm:$0xf] %v286_v42  ;;  %289 = vst [vmem:[%s8645_s7 + $0xac] sm:$0xf] %v288_v43  ;;  %v290_v44 = vld [vmem:[%s8641_s6 + $0x2c0] sm:$0xf] }
  0x2f   : > { %v292_v45 = vld [vmem:[%s8641_s6 + $0x2d0] sm:$0xf]  ;;  %v294_v46 = vld [vmem:[%s8641_s6 + $0x2e0] sm:$0xf]  ;;  %291 = vst [vmem:[%s8645_s7 + $0xb0] sm:$0xf] %v290_v44 }
  0x30   : > { %293 = vst [vmem:[%s8645_s7 + $0xb4] sm:$0xf] %v292_v45  ;;  %295 = vst [vmem:[%s8645_s7 + $0xb8] sm:$0xf] %v294_v46  ;;  %v296_v47 = vld [vmem:[%s8641_s6 + $0x2f0] sm:$0xf] }
  0x31   : > { %v298_v48 = vld [vmem:[%s8641_s6 + $0x300] sm:$0xf]  ;;  %v300_v49 = vld [vmem:[%s8641_s6 + $0x310] sm:$0xf]  ;;  %297 = vst [vmem:[%s8645_s7 + $0xbc] sm:$0xf] %v296_v47 }
  0x32   : > { %299 = vst [vmem:[%s8645_s7 + $0xc0] sm:$0xf] %v298_v48  ;;  %301 = vst [vmem:[%s8645_s7 + $0xc4] sm:$0xf] %v300_v49  ;;  %v302_v50 = vld [vmem:[%s8641_s6 + $0x320] sm:$0xf] }
  0x33   : > { %v304_v51 = vld [vmem:[%s8641_s6 + $0x330] sm:$0xf]  ;;  %v306_v52 = vld [vmem:[%s8641_s6 + $0x340] sm:$0xf]  ;;  %303 = vst [vmem:[%s8645_s7 + $0xc8] sm:$0xf] %v302_v50 }
  0x34   : > { %305 = vst [vmem:[%s8645_s7 + $0xcc] sm:$0xf] %v304_v51  ;;  %307 = vst [vmem:[%s8645_s7 + $0xd0] sm:$0xf] %v306_v52  ;;  %v308_v53 = vld [vmem:[%s8641_s6 + $0x350] sm:$0xf] }
  0x35   : > { %v310_v54 = vld [vmem:[%s8641_s6 + $0x360] sm:$0xf]  ;;  %v312_v55 = vld [vmem:[%s8641_s6 + $0x370] sm:$0xf]  ;;  %309 = vst [vmem:[%s8645_s7 + $0xd4] sm:$0xf] %v308_v53 }
  0x36   : > { %311 = vst [vmem:[%s8645_s7 + $0xd8] sm:$0xf] %v310_v54  ;;  %313 = vst [vmem:[%s8645_s7 + $0xdc] sm:$0xf] %v312_v55  ;;  %v314_v56 = vld [vmem:[%s8641_s6 + $0x380] sm:$0xf] }
  0x37   : > { %v316_v57 = vld [vmem:[%s8641_s6 + $0x390] sm:$0xf]  ;;  %v318_v58 = vld [vmem:[%s8641_s6 + $0x3a0] sm:$0xf]  ;;  %315 = vst [vmem:[%s8645_s7 + $0xe0] sm:$0xf] %v314_v56 }
  0x38   : > { %317 = vst [vmem:[%s8645_s7 + $0xe4] sm:$0xf] %v316_v57  ;;  %319 = vst [vmem:[%s8645_s7 + $0xe8] sm:$0xf] %v318_v58  ;;  %v320_v59 = vld [vmem:[%s8641_s6 + $0x3b0] sm:$0xf] }
  0x39   : > { %v322_v60 = vld [vmem:[%s8641_s6 + $0x3c0] sm:$0xf]  ;;  %v324_v61 = vld [vmem:[%s8641_s6 + $0x3d0] sm:$0xf]  ;;  %321 = vst [vmem:[%s8645_s7 + $0xec] sm:$0xf] %v320_v59 }
  0x3a   : > { %323 = vst [vmem:[%s8645_s7 + $0xf0] sm:$0xf] %v322_v60  ;;  %325 = vst [vmem:[%s8645_s7 + $0xf4] sm:$0xf] %v324_v61  ;;  %v326_v62 = vld [vmem:[%s8641_s6 + $0x3e0] sm:$0xf] }
  0x3b   : > { %v328_v63 = vld [vmem:[%s8641_s6 + $0x3f0] sm:$0xf]  ;;  %v330_v0 = vld [vmem:[%s8641_s6 + $0x400] sm:$0xf]  ;;  %327 = vst [vmem:[%s8645_s7 + $0xf8] sm:$0xf] %v326_v62 }
  0x3c   : > { %329 = vst [vmem:[%s8645_s7 + $0xfc] sm:$0xf] %v328_v63  ;;  %331 = vst [vmem:[%s8645_s7 + $0x100] sm:$0xf] %v330_v0  ;;  %v332_v1 = vld [vmem:[%s8641_s6 + $0x410] sm:$0xf] }
  0x3d   : > { %v334_v2 = vld [vmem:[%s8641_s6 + $0x420] sm:$0xf]  ;;  %v336_v3 = vld [vmem:[%s8641_s6 + $0x430] sm:$0xf]  ;;  %333 = vst [vmem:[%s8645_s7 + $0x104] sm:$0xf] %v332_v1 }
  0x3e   : > { %335 = vst [vmem:[%s8645_s7 + $0x108] sm:$0xf] %v334_v2  ;;  %337 = vst [vmem:[%s8645_s7 + $0x10c] sm:$0xf] %v336_v3  ;;  %v338_v4 = vld [vmem:[%s8641_s6 + $0x440] sm:$0xf] }
  0x3f   : > { %v340_v5 = vld [vmem:[%s8641_s6 + $0x450] sm:$0xf]  ;;  %v342_v6 = vld [vmem:[%s8641_s6 + $0x460] sm:$0xf]  ;;  %339 = vst [vmem:[%s8645_s7 + $0x110] sm:$0xf] %v338_v4 }
  0x40   : > { %341 = vst [vmem:[%s8645_s7 + $0x114] sm:$0xf] %v340_v5  ;;  %343 = vst [vmem:[%s8645_s7 + $0x118] sm:$0xf] %v342_v6  ;;  %v344_v7 = vld [vmem:[%s8641_s6 + $0x470] sm:$0xf] }
  0x41   : > { %v346_v8 = vld [vmem:[%s8641_s6 + $0x480] sm:$0xf]  ;;  %v348_v9 = vld [vmem:[%s8641_s6 + $0x490] sm:$0xf]  ;;  %345 = vst [vmem:[%s8645_s7 + $0x11c] sm:$0xf] %v344_v7 }
  0x42   : > { %347 = vst [vmem:[%s8645_s7 + $0x120] sm:$0xf] %v346_v8  ;;  %349 = vst [vmem:[%s8645_s7 + $0x124] sm:$0xf] %v348_v9  ;;  %v350_v10 = vld [vmem:[%s8641_s6 + $0x4a0] sm:$0xf] }
  0x43   : > { %v352_v11 = vld [vmem:[%s8641_s6 + $0x4b0] sm:$0xf]  ;;  %v354_v12 = vld [vmem:[%s8641_s6 + $0x4c0] sm:$0xf]  ;;  %351 = vst [vmem:[%s8645_s7 + $0x128] sm:$0xf] %v350_v10 }
  0x44   : > { %353 = vst [vmem:[%s8645_s7 + $0x12c] sm:$0xf] %v352_v11  ;;  %355 = vst [vmem:[%s8645_s7 + $0x130] sm:$0xf] %v354_v12  ;;  %v356_v13 = vld [vmem:[%s8641_s6 + $0x4d0] sm:$0xf] }
  0x45   : > { %v358_v14 = vld [vmem:[%s8641_s6 + $0x4e0] sm:$0xf]  ;;  %v360_v15 = vld [vmem:[%s8641_s6 + $0x4f0] sm:$0xf]  ;;  %357 = vst [vmem:[%s8645_s7 + $0x134] sm:$0xf] %v356_v13 }
  0x46   : > { %359 = vst [vmem:[%s8645_s7 + $0x138] sm:$0xf] %v358_v14  ;;  %361 = vst [vmem:[%s8645_s7 + $0x13c] sm:$0xf] %v360_v15  ;;  %v362_v16 = vld [vmem:[%s8641_s6 + $0x500] sm:$0xf] }
  0x47   : > { %v364_v17 = vld [vmem:[%s8641_s6 + $0x510] sm:$0xf]  ;;  %v366_v18 = vld [vmem:[%s8641_s6 + $0x520] sm:$0xf]  ;;  %363 = vst [vmem:[%s8645_s7 + $0x140] sm:$0xf] %v362_v16 }
  0x48   : > { %365 = vst [vmem:[%s8645_s7 + $0x144] sm:$0xf] %v364_v17  ;;  %367 = vst [vmem:[%s8645_s7 + $0x148] sm:$0xf] %v366_v18  ;;  %v368_v19 = vld [vmem:[%s8641_s6 + $0x530] sm:$0xf] }
  0x49   : > { %v370_v20 = vld [vmem:[%s8641_s6 + $0x540] sm:$0xf]  ;;  %v372_v21 = vld [vmem:[%s8641_s6 + $0x550] sm:$0xf]  ;;  %369 = vst [vmem:[%s8645_s7 + $0x14c] sm:$0xf] %v368_v19 }
  0x4a   : > { %371 = vst [vmem:[%s8645_s7 + $0x150] sm:$0xf] %v370_v20  ;;  %373 = vst [vmem:[%s8645_s7 + $0x154] sm:$0xf] %v372_v21  ;;  %v374_v22 = vld [vmem:[%s8641_s6 + $0x560] sm:$0xf] }
  0x4b   : > { %v376_v23 = vld [vmem:[%s8641_s6 + $0x570] sm:$0xf]  ;;  %v378_v24 = vld [vmem:[%s8641_s6 + $0x580] sm:$0xf]  ;;  %375 = vst [vmem:[%s8645_s7 + $0x158] sm:$0xf] %v374_v22 }
  0x4c   : > { %377 = vst [vmem:[%s8645_s7 + $0x15c] sm:$0xf] %v376_v23  ;;  %379 = vst [vmem:[%s8645_s7 + $0x160] sm:$0xf] %v378_v24  ;;  %v380_v25 = vld [vmem:[%s8641_s6 + $0x590] sm:$0xf] }
  0x4d   : > { %v382_v26 = vld [vmem:[%s8641_s6 + $0x5a0] sm:$0xf]  ;;  %v384_v27 = vld [vmem:[%s8641_s6 + $0x5b0] sm:$0xf]  ;;  %381 = vst [vmem:[%s8645_s7 + $0x164] sm:$0xf] %v380_v25 }
  0x4e   : > { %383 = vst [vmem:[%s8645_s7 + $0x168] sm:$0xf] %v382_v26  ;;  %385 = vst [vmem:[%s8645_s7 + $0x16c] sm:$0xf] %v384_v27  ;;  %v386_v28 = vld [vmem:[%s8641_s6 + $0x5c0] sm:$0xf] }
  0x4f   : > { %v388_v29 = vld [vmem:[%s8641_s6 + $0x5d0] sm:$0xf]  ;;  %v390_v30 = vld [vmem:[%s8641_s6 + $0x5e0] sm:$0xf]  ;;  %387 = vst [vmem:[%s8645_s7 + $0x170] sm:$0xf] %v386_v28 }
  0x50   : > { %389 = vst [vmem:[%s8645_s7 + $0x174] sm:$0xf] %v388_v29  ;;  %391 = vst [vmem:[%s8645_s7 + $0x178] sm:$0xf] %v390_v30  ;;  %v392_v31 = vld [vmem:[%s8641_s6 + $0x5f0] sm:$0xf] }
  0x51   : > { %v394_v32 = vld [vmem:[%s8641_s6 + $0x600] sm:$0xf]  ;;  %v396_v33 = vld [vmem:[%s8641_s6 + $0x610] sm:$0xf]  ;;  %393 = vst [vmem:[%s8645_s7 + $0x17c] sm:$0xf] %v392_v31 }
  0x52   : > { %395 = vst [vmem:[%s8645_s7 + $0x180] sm:$0xf] %v394_v32  ;;  %397 = vst [vmem:[%s8645_s7 + $0x184] sm:$0xf] %v396_v33  ;;  %v398_v34 = vld [vmem:[%s8641_s6 + $0x620] sm:$0xf] }
  0x53   : > { %v400_v35 = vld [vmem:[%s8641_s6 + $0x630] sm:$0xf]  ;;  %v402_v36 = vld [vmem:[%s8641_s6 + $0x640] sm:$0xf]  ;;  %399 = vst [vmem:[%s8645_s7 + $0x188] sm:$0xf] %v398_v34 }
  0x54   : > { %401 = vst [vmem:[%s8645_s7 + $0x18c] sm:$0xf] %v400_v35  ;;  %403 = vst [vmem:[%s8645_s7 + $0x190] sm:$0xf] %v402_v36  ;;  %v404_v37 = vld [vmem:[%s8641_s6 + $0x650] sm:$0xf] }
  0x55   : > { %v406_v38 = vld [vmem:[%s8641_s6 + $0x660] sm:$0xf]  ;;  %v408_v39 = vld [vmem:[%s8641_s6 + $0x670] sm:$0xf]  ;;  %405 = vst [vmem:[%s8645_s7 + $0x194] sm:$0xf] %v404_v37 }
  0x56   : > { %407 = vst [vmem:[%s8645_s7 + $0x198] sm:$0xf] %v406_v38  ;;  %409 = vst [vmem:[%s8645_s7 + $0x19c] sm:$0xf] %v408_v39  ;;  %v410_v40 = vld [vmem:[%s8641_s6 + $0x680] sm:$0xf] }
  0x57   : > { %v412_v41 = vld [vmem:[%s8641_s6 + $0x690] sm:$0xf]  ;;  %v414_v42 = vld [vmem:[%s8641_s6 + $0x6a0] sm:$0xf]  ;;  %411 = vst [vmem:[%s8645_s7 + $0x1a0] sm:$0xf] %v410_v40 }
  0x58   : > { %413 = vst [vmem:[%s8645_s7 + $0x1a4] sm:$0xf] %v412_v41  ;;  %415 = vst [vmem:[%s8645_s7 + $0x1a8] sm:$0xf] %v414_v42  ;;  %v416_v43 = vld [vmem:[%s8641_s6 + $0x6b0] sm:$0xf] }
  0x59   : > { %v418_v44 = vld [vmem:[%s8641_s6 + $0x6c0] sm:$0xf]  ;;  %v420_v45 = vld [vmem:[%s8641_s6 + $0x6d0] sm:$0xf]  ;;  %417 = vst [vmem:[%s8645_s7 + $0x1ac] sm:$0xf] %v416_v43 }
  0x5a   : > { %419 = vst [vmem:[%s8645_s7 + $0x1b0] sm:$0xf] %v418_v44  ;;  %421 = vst [vmem:[%s8645_s7 + $0x1b4] sm:$0xf] %v420_v45  ;;  %v422_v46 = vld [vmem:[%s8641_s6 + $0x6e0] sm:$0xf] }
  0x5b   : > { %v424_v47 = vld [vmem:[%s8641_s6 + $0x6f0] sm:$0xf]  ;;  %v426_v48 = vld [vmem:[%s8641_s6 + $0x700] sm:$0xf]  ;;  %423 = vst [vmem:[%s8645_s7 + $0x1b8] sm:$0xf] %v422_v46 }
  0x5c   : > { %425 = vst [vmem:[%s8645_s7 + $0x1bc] sm:$0xf] %v424_v47  ;;  %427 = vst [vmem:[%s8645_s7 + $0x1c0] sm:$0xf] %v426_v48  ;;  %v428_v49 = vld [vmem:[%s8641_s6 + $0x710] sm:$0xf] }
  0x5d   : > { %v430_v50 = vld [vmem:[%s8641_s6 + $0x720] sm:$0xf]  ;;  %v432_v51 = vld [vmem:[%s8641_s6 + $0x730] sm:$0xf]  ;;  %429 = vst [vmem:[%s8645_s7 + $0x1c4] sm:$0xf] %v428_v49 }
  0x5e   : > { %431 = vst [vmem:[%s8645_s7 + $0x1c8] sm:$0xf] %v430_v50  ;;  %433 = vst [vmem:[%s8645_s7 + $0x1cc] sm:$0xf] %v432_v51  ;;  %v434_v52 = vld [vmem:[%s8641_s6 + $0x740] sm:$0xf] }
  0x5f   : > { %v436_v53 = vld [vmem:[%s8641_s6 + $0x750] sm:$0xf]  ;;  %v438_v54 = vld [vmem:[%s8641_s6 + $0x760] sm:$0xf]  ;;  %435 = vst [vmem:[%s8645_s7 + $0x1d0] sm:$0xf] %v434_v52 }
  0x60   : > { %437 = vst [vmem:[%s8645_s7 + $0x1d4] sm:$0xf] %v436_v53  ;;  %439 = vst [vmem:[%s8645_s7 + $0x1d8] sm:$0xf] %v438_v54  ;;  %v440_v55 = vld [vmem:[%s8641_s6 + $0x770] sm:$0xf] }
  0x61   : > { %v442_v56 = vld [vmem:[%s8641_s6 + $0x780] sm:$0xf]  ;;  %v444_v57 = vld [vmem:[%s8641_s6 + $0x790] sm:$0xf]  ;;  %441 = vst [vmem:[%s8645_s7 + $0x1dc] sm:$0xf] %v440_v55 }
  0x62   : > { %443 = vst [vmem:[%s8645_s7 + $0x1e0] sm:$0xf] %v442_v56  ;;  %445 = vst [vmem:[%s8645_s7 + $0x1e4] sm:$0xf] %v444_v57  ;;  %v446_v58 = vld [vmem:[%s8641_s6 + $0x7a0] sm:$0xf] }
  0x63   : > { %v448_v59 = vld [vmem:[%s8641_s6 + $0x7b0] sm:$0xf]  ;;  %v450_v60 = vld [vmem:[%s8641_s6 + $0x7c0] sm:$0xf]  ;;  %447 = vst [vmem:[%s8645_s7 + $0x1e8] sm:$0xf] %v446_v58 }
  0x64   : > { %449 = vst [vmem:[%s8645_s7 + $0x1ec] sm:$0xf] %v448_v59  ;;  %451 = vst [vmem:[%s8645_s7 + $0x1f0] sm:$0xf] %v450_v60  ;;  %v452_v61 = vld [vmem:[%s8641_s6 + $0x7d0] sm:$0xf] }
  0x65   : > { %v454_v62 = vld [vmem:[%s8641_s6 + $0x7e0] sm:$0xf]  ;;  %v456_v63 = vld [vmem:[%s8641_s6 + $0x7f0] sm:$0xf]  ;;  %453 = vst [vmem:[%s8645_s7 + $0x1f4] sm:$0xf] %v452_v61 }
  0x66   : > { %455 = vst [vmem:[%s8645_s7 + $0x1f8] sm:$0xf] %v454_v62  ;;  %457 = vst [vmem:[%s8645_s7 + $0x1fc] sm:$0xf] %v456_v63  ;;  %v458_v0 = vld [vmem:[%s8641_s6 + $0x800] sm:$0xf] }
  0x67   : > { %v460_v1 = vld [vmem:[%s8641_s6 + $0x810] sm:$0xf]  ;;  %v462_v2 = vld [vmem:[%s8641_s6 + $0x820] sm:$0xf]  ;;  %459 = vst [vmem:[%s8645_s7 + $0x200] sm:$0xf] %v458_v0 }
  0x68   : > { %461 = vst [vmem:[%s8645_s7 + $0x204] sm:$0xf] %v460_v1  ;;  %463 = vst [vmem:[%s8645_s7 + $0x208] sm:$0xf] %v462_v2  ;;  %v464_v3 = vld [vmem:[%s8641_s6 + $0x830] sm:$0xf] }
  0x69   : > { %v466_v4 = vld [vmem:[%s8641_s6 + $0x840] sm:$0xf]  ;;  %v468_v5 = vld [vmem:[%s8641_s6 + $0x850] sm:$0xf]  ;;  %465 = vst [vmem:[%s8645_s7 + $0x20c] sm:$0xf] %v464_v3 }
  0x6a   : > { %467 = vst [vmem:[%s8645_s7 + $0x210] sm:$0xf] %v466_v4  ;;  %469 = vst [vmem:[%s8645_s7 + $0x214] sm:$0xf] %v468_v5  ;;  %v470_v6 = vld [vmem:[%s8641_s6 + $0x860] sm:$0xf] }
  0x6b   : > { %v472_v7 = vld [vmem:[%s8641_s6 + $0x870] sm:$0xf]  ;;  %v474_v8 = vld [vmem:[%s8641_s6 + $0x880] sm:$0xf]  ;;  %471 = vst [vmem:[%s8645_s7 + $0x218] sm:$0xf] %v470_v6 }
  0x6c   : > { %473 = vst [vmem:[%s8645_s7 + $0x21c] sm:$0xf] %v472_v7  ;;  %475 = vst [vmem:[%s8645_s7 + $0x220] sm:$0xf] %v474_v8  ;;  %v476_v9 = vld [vmem:[%s8641_s6 + $0x890] sm:$0xf] }
  0x6d   : > { %v478_v10 = vld [vmem:[%s8641_s6 + $0x8a0] sm:$0xf]  ;;  %v480_v11 = vld [vmem:[%s8641_s6 + $0x8b0] sm:$0xf]  ;;  %477 = vst [vmem:[%s8645_s7 + $0x224] sm:$0xf] %v476_v9 }
  0x6e   : > { %479 = vst [vmem:[%s8645_s7 + $0x228] sm:$0xf] %v478_v10  ;;  %481 = vst [vmem:[%s8645_s7 + $0x22c] sm:$0xf] %v480_v11  ;;  %v482_v12 = vld [vmem:[%s8641_s6 + $0x8c0] sm:$0xf] }
  0x6f   : > { %v484_v13 = vld [vmem:[%s8641_s6 + $0x8d0] sm:$0xf]  ;;  %v486_v14 = vld [vmem:[%s8641_s6 + $0x8e0] sm:$0xf]  ;;  %483 = vst [vmem:[%s8645_s7 + $0x230] sm:$0xf] %v482_v12 }
  0x70   : > { %485 = vst [vmem:[%s8645_s7 + $0x234] sm:$0xf] %v484_v13  ;;  %487 = vst [vmem:[%s8645_s7 + $0x238] sm:$0xf] %v486_v14  ;;  %v488_v15 = vld [vmem:[%s8641_s6 + $0x8f0] sm:$0xf] }
  0x71   : > { %v490_v16 = vld [vmem:[%s8641_s6 + $0x900] sm:$0xf]  ;;  %v492_v17 = vld [vmem:[%s8641_s6 + $0x910] sm:$0xf]  ;;  %489 = vst [vmem:[%s8645_s7 + $0x23c] sm:$0xf] %v488_v15 }
  0x72   : > { %491 = vst [vmem:[%s8645_s7 + $0x240] sm:$0xf] %v490_v16  ;;  %493 = vst [vmem:[%s8645_s7 + $0x244] sm:$0xf] %v492_v17  ;;  %v494_v18 = vld [vmem:[%s8641_s6 + $0x920] sm:$0xf] }
  0x73   : > { %v496_v19 = vld [vmem:[%s8641_s6 + $0x930] sm:$0xf]  ;;  %v498_v20 = vld [vmem:[%s8641_s6 + $0x940] sm:$0xf]  ;;  %495 = vst [vmem:[%s8645_s7 + $0x248] sm:$0xf] %v494_v18 }
  0x74   : > { %497 = vst [vmem:[%s8645_s7 + $0x24c] sm:$0xf] %v496_v19  ;;  %499 = vst [vmem:[%s8645_s7 + $0x250] sm:$0xf] %v498_v20  ;;  %v500_v21 = vld [vmem:[%s8641_s6 + $0x950] sm:$0xf] }
  0x75   : > { %v502_v22 = vld [vmem:[%s8641_s6 + $0x960] sm:$0xf]  ;;  %v504_v23 = vld [vmem:[%s8641_s6 + $0x970] sm:$0xf]  ;;  %501 = vst [vmem:[%s8645_s7 + $0x254] sm:$0xf] %v500_v21 }
  0x76   : > { %503 = vst [vmem:[%s8645_s7 + $0x258] sm:$0xf] %v502_v22  ;;  %505 = vst [vmem:[%s8645_s7 + $0x25c] sm:$0xf] %v504_v23  ;;  %v506_v24 = vld [vmem:[%s8641_s6 + $0x980] sm:$0xf] }
  0x77   : > { %v508_v25 = vld [vmem:[%s8641_s6 + $0x990] sm:$0xf]  ;;  %v510_v26 = vld [vmem:[%s8641_s6 + $0x9a0] sm:$0xf]  ;;  %507 = vst [vmem:[%s8645_s7 + $0x260] sm:$0xf] %v506_v24 }
  0x78   : > { %509 = vst [vmem:[%s8645_s7 + $0x264] sm:$0xf] %v508_v25  ;;  %511 = vst [vmem:[%s8645_s7 + $0x268] sm:$0xf] %v510_v26  ;;  %v512_v27 = vld [vmem:[%s8641_s6 + $0x9b0] sm:$0xf] }
  0x79   : > { %v514_v28 = vld [vmem:[%s8641_s6 + $0x9c0] sm:$0xf]  ;;  %v516_v29 = vld [vmem:[%s8641_s6 + $0x9d0] sm:$0xf]  ;;  %513 = vst [vmem:[%s8645_s7 + $0x26c] sm:$0xf] %v512_v27 }
  0x7a   : > { %515 = vst [vmem:[%s8645_s7 + $0x270] sm:$0xf] %v514_v28  ;;  %517 = vst [vmem:[%s8645_s7 + $0x274] sm:$0xf] %v516_v29  ;;  %v518_v30 = vld [vmem:[%s8641_s6 + $0x9e0] sm:$0xf] }
  0x7b   : > { %v520_v31 = vld [vmem:[%s8641_s6 + $0x9f0] sm:$0xf]  ;;  %v522_v32 = vld [vmem:[%s8641_s6 + $0xa00] sm:$0xf]  ;;  %519 = vst [vmem:[%s8645_s7 + $0x278] sm:$0xf] %v518_v30 }
  0x7c   : > { %521 = vst [vmem:[%s8645_s7 + $0x27c] sm:$0xf] %v520_v31  ;;  %523 = vst [vmem:[%s8645_s7 + $0x280] sm:$0xf] %v522_v32  ;;  %v524_v33 = vld [vmem:[%s8641_s6 + $0xa10] sm:$0xf] }
  0x7d   : > { %v526_v34 = vld [vmem:[%s8641_s6 + $0xa20] sm:$0xf]  ;;  %v528_v35 = vld [vmem:[%s8641_s6 + $0xa30] sm:$0xf]  ;;  %525 = vst [vmem:[%s8645_s7 + $0x284] sm:$0xf] %v524_v33 }
  0x7e   : > { %527 = vst [vmem:[%s8645_s7 + $0x288] sm:$0xf] %v526_v34  ;;  %529 = vst [vmem:[%s8645_s7 + $0x28c] sm:$0xf] %v528_v35  ;;  %v530_v36 = vld [vmem:[%s8641_s6 + $0xa40] sm:$0xf] }
  0x7f   : > { %v532_v37 = vld [vmem:[%s8641_s6 + $0xa50] sm:$0xf]  ;;  %v534_v38 = vld [vmem:[%s8641_s6 + $0xa60] sm:$0xf]  ;;  %531 = vst [vmem:[%s8645_s7 + $0x290] sm:$0xf] %v530_v36 }
  0x80   : > { %533 = vst [vmem:[%s8645_s7 + $0x294] sm:$0xf] %v532_v37  ;;  %535 = vst [vmem:[%s8645_s7 + $0x298] sm:$0xf] %v534_v38  ;;  %v536_v39 = vld [vmem:[%s8641_s6 + $0xa70] sm:$0xf] }
  0x81   : > { %v538_v40 = vld [vmem:[%s8641_s6 + $0xa80] sm:$0xf]  ;;  %v540_v41 = vld [vmem:[%s8641_s6 + $0xa90] sm:$0xf]  ;;  %537 = vst [vmem:[%s8645_s7 + $0x29c] sm:$0xf] %v536_v39 }
  0x82   : > { %539 = vst [vmem:[%s8645_s7 + $0x2a0] sm:$0xf] %v538_v40  ;;  %541 = vst [vmem:[%s8645_s7 + $0x2a4] sm:$0xf] %v540_v41  ;;  %v542_v42 = vld [vmem:[%s8641_s6 + $0xaa0] sm:$0xf] }
  0x83   : > { %v544_v43 = vld [vmem:[%s8641_s6 + $0xab0] sm:$0xf]  ;;  %v546_v44 = vld [vmem:[%s8641_s6 + $0xac0] sm:$0xf]  ;;  %543 = vst [vmem:[%s8645_s7 + $0x2a8] sm:$0xf] %v542_v42 }
  0x84   : > { %545 = vst [vmem:[%s8645_s7 + $0x2ac] sm:$0xf] %v544_v43  ;;  %547 = vst [vmem:[%s8645_s7 + $0x2b0] sm:$0xf] %v546_v44  ;;  %v548_v45 = vld [vmem:[%s8641_s6 + $0xad0] sm:$0xf] }
  0x85   : > { %v550_v46 = vld [vmem:[%s8641_s6 + $0xae0] sm:$0xf]  ;;  %v552_v47 = vld [vmem:[%s8641_s6 + $0xaf0] sm:$0xf]  ;;  %549 = vst [vmem:[%s8645_s7 + $0x2b4] sm:$0xf] %v548_v45 }
  0x86   : > { %551 = vst [vmem:[%s8645_s7 + $0x2b8] sm:$0xf] %v550_v46  ;;  %553 = vst [vmem:[%s8645_s7 + $0x2bc] sm:$0xf] %v552_v47  ;;  %v554_v48 = vld [vmem:[%s8641_s6 + $0xb00] sm:$0xf] }
  0x87   : > { %v556_v49 = vld [vmem:[%s8641_s6 + $0xb10] sm:$0xf]  ;;  %v558_v50 = vld [vmem:[%s8641_s6 + $0xb20] sm:$0xf]  ;;  %555 = vst [vmem:[%s8645_s7 + $0x2c0] sm:$0xf] %v554_v48 }
  0x88   : > { %557 = vst [vmem:[%s8645_s7 + $0x2c4] sm:$0xf] %v556_v49  ;;  %559 = vst [vmem:[%s8645_s7 + $0x2c8] sm:$0xf] %v558_v50  ;;  %v560_v51 = vld [vmem:[%s8641_s6 + $0xb30] sm:$0xf] }
  0x89   : > { %v562_v52 = vld [vmem:[%s8641_s6 + $0xb40] sm:$0xf]  ;;  %v564_v53 = vld [vmem:[%s8641_s6 + $0xb50] sm:$0xf]  ;;  %561 = vst [vmem:[%s8645_s7 + $0x2cc] sm:$0xf] %v560_v51 }
  0x8a   : > { %563 = vst [vmem:[%s8645_s7 + $0x2d0] sm:$0xf] %v562_v52  ;;  %565 = vst [vmem:[%s8645_s7 + $0x2d4] sm:$0xf] %v564_v53  ;;  %v566_v54 = vld [vmem:[%s8641_s6 + $0xb60] sm:$0xf] }
  0x8b   : > { %v568_v55 = vld [vmem:[%s8641_s6 + $0xb70] sm:$0xf]  ;;  %v570_v56 = vld [vmem:[%s8641_s6 + $0xb80] sm:$0xf]  ;;  %567 = vst [vmem:[%s8645_s7 + $0x2d8] sm:$0xf] %v566_v54 }
  0x8c   : > { %569 = vst [vmem:[%s8645_s7 + $0x2dc] sm:$0xf] %v568_v55  ;;  %571 = vst [vmem:[%s8645_s7 + $0x2e0] sm:$0xf] %v570_v56  ;;  %v572_v57 = vld [vmem:[%s8641_s6 + $0xb90] sm:$0xf] }
  0x8d   : > { %v574_v58 = vld [vmem:[%s8641_s6 + $0xba0] sm:$0xf]  ;;  %v576_v59 = vld [vmem:[%s8641_s6 + $0xbb0] sm:$0xf]  ;;  %573 = vst [vmem:[%s8645_s7 + $0x2e4] sm:$0xf] %v572_v57 }
  0x8e   : > { %575 = vst [vmem:[%s8645_s7 + $0x2e8] sm:$0xf] %v574_v58  ;;  %577 = vst [vmem:[%s8645_s7 + $0x2ec] sm:$0xf] %v576_v59  ;;  %v578_v60 = vld [vmem:[%s8641_s6 + $0xbc0] sm:$0xf] }
  0x8f   : > { %v580_v61 = vld [vmem:[%s8641_s6 + $0xbd0] sm:$0xf]  ;;  %v582_v62 = vld [vmem:[%s8641_s6 + $0xbe0] sm:$0xf]  ;;  %579 = vst [vmem:[%s8645_s7 + $0x2f0] sm:$0xf] %v578_v60 }
  0x90   : > { %581 = vst [vmem:[%s8645_s7 + $0x2f4] sm:$0xf] %v580_v61  ;;  %583 = vst [vmem:[%s8645_s7 + $0x2f8] sm:$0xf] %v582_v62  ;;  %v584_v63 = vld [vmem:[%s8641_s6 + $0xbf0] sm:$0xf] }
  0x91   : > { %v586_v0 = vld [vmem:[%s8641_s6 + $0xc00] sm:$0xf]  ;;  %v588_v1 = vld [vmem:[%s8641_s6 + $0xc10] sm:$0xf]  ;;  %585 = vst [vmem:[%s8645_s7 + $0x2fc] sm:$0xf] %v584_v63 }
  0x92   : > { %587 = vst [vmem:[%s8645_s7 + $0x300] sm:$0xf] %v586_v0  ;;  %589 = vst [vmem:[%s8645_s7 + $0x304] sm:$0xf] %v588_v1  ;;  %v590_v2 = vld [vmem:[%s8641_s6 + $0xc20] sm:$0xf] }
  0x93   : > { %v592_v3 = vld [vmem:[%s8641_s6 + $0xc30] sm:$0xf]  ;;  %v594_v4 = vld [vmem:[%s8641_s6 + $0xc40] sm:$0xf]  ;;  %591 = vst [vmem:[%s8645_s7 + $0x308] sm:$0xf] %v590_v2 }
  0x94   : > { %593 = vst [vmem:[%s8645_s7 + $0x30c] sm:$0xf] %v592_v3  ;;  %595 = vst [vmem:[%s8645_s7 + $0x310] sm:$0xf] %v594_v4  ;;  %v596_v5 = vld [vmem:[%s8641_s6 + $0xc50] sm:$0xf] }
  0x95   : > { %v598_v6 = vld [vmem:[%s8641_s6 + $0xc60] sm:$0xf]  ;;  %v600_v7 = vld [vmem:[%s8641_s6 + $0xc70] sm:$0xf]  ;;  %597 = vst [vmem:[%s8645_s7 + $0x314] sm:$0xf] %v596_v5 }
  0x96   : > { %599 = vst [vmem:[%s8645_s7 + $0x318] sm:$0xf] %v598_v6  ;;  %601 = vst [vmem:[%s8645_s7 + $0x31c] sm:$0xf] %v600_v7  ;;  %v602_v8 = vld [vmem:[%s8641_s6 + $0xc80] sm:$0xf] }
  0x97   : > { %v604_v9 = vld [vmem:[%s8641_s6 + $0xc90] sm:$0xf]  ;;  %v606_v10 = vld [vmem:[%s8641_s6 + $0xca0] sm:$0xf]  ;;  %603 = vst [vmem:[%s8645_s7 + $0x320] sm:$0xf] %v602_v8 }
  0x98   : > { %605 = vst [vmem:[%s8645_s7 + $0x324] sm:$0xf] %v604_v9  ;;  %607 = vst [vmem:[%s8645_s7 + $0x328] sm:$0xf] %v606_v10  ;;  %v608_v11 = vld [vmem:[%s8641_s6 + $0xcb0] sm:$0xf] }
  0x99   : > { %v610_v12 = vld [vmem:[%s8641_s6 + $0xcc0] sm:$0xf]  ;;  %v612_v13 = vld [vmem:[%s8641_s6 + $0xcd0] sm:$0xf]  ;;  %609 = vst [vmem:[%s8645_s7 + $0x32c] sm:$0xf] %v608_v11 }
  0x9a   : > { %611 = vst [vmem:[%s8645_s7 + $0x330] sm:$0xf] %v610_v12  ;;  %613 = vst [vmem:[%s8645_s7 + $0x334] sm:$0xf] %v612_v13  ;;  %v614_v14 = vld [vmem:[%s8641_s6 + $0xce0] sm:$0xf] }
  0x9b   : > { %v616_v15 = vld [vmem:[%s8641_s6 + $0xcf0] sm:$0xf]  ;;  %v618_v16 = vld [vmem:[%s8641_s6 + $0xd00] sm:$0xf]  ;;  %615 = vst [vmem:[%s8645_s7 + $0x338] sm:$0xf] %v614_v14 }
  0x9c   : > { %617 = vst [vmem:[%s8645_s7 + $0x33c] sm:$0xf] %v616_v15  ;;  %619 = vst [vmem:[%s8645_s7 + $0x340] sm:$0xf] %v618_v16  ;;  %v620_v17 = vld [vmem:[%s8641_s6 + $0xd10] sm:$0xf] }
  0x9d   : > { %v622_v18 = vld [vmem:[%s8641_s6 + $0xd20] sm:$0xf]  ;;  %v624_v19 = vld [vmem:[%s8641_s6 + $0xd30] sm:$0xf]  ;;  %621 = vst [vmem:[%s8645_s7 + $0x344] sm:$0xf] %v620_v17 }
  0x9e   : > { %623 = vst [vmem:[%s8645_s7 + $0x348] sm:$0xf] %v622_v18  ;;  %625 = vst [vmem:[%s8645_s7 + $0x34c] sm:$0xf] %v624_v19  ;;  %v626_v20 = vld [vmem:[%s8641_s6 + $0xd40] sm:$0xf] }
  0x9f   : > { %v628_v21 = vld [vmem:[%s8641_s6 + $0xd50] sm:$0xf]  ;;  %v630_v22 = vld [vmem:[%s8641_s6 + $0xd60] sm:$0xf]  ;;  %627 = vst [vmem:[%s8645_s7 + $0x350] sm:$0xf] %v626_v20 }
  0xa0   : > { %629 = vst [vmem:[%s8645_s7 + $0x354] sm:$0xf] %v628_v21  ;;  %631 = vst [vmem:[%s8645_s7 + $0x358] sm:$0xf] %v630_v22  ;;  %v632_v23 = vld [vmem:[%s8641_s6 + $0xd70] sm:$0xf] }
  0xa1   : > { %v634_v24 = vld [vmem:[%s8641_s6 + $0xd80] sm:$0xf]  ;;  %v636_v25 = vld [vmem:[%s8641_s6 + $0xd90] sm:$0xf]  ;;  %633 = vst [vmem:[%s8645_s7 + $0x35c] sm:$0xf] %v632_v23 }
  0xa2   : > { %635 = vst [vmem:[%s8645_s7 + $0x360] sm:$0xf] %v634_v24  ;;  %637 = vst [vmem:[%s8645_s7 + $0x364] sm:$0xf] %v636_v25  ;;  %v638_v26 = vld [vmem:[%s8641_s6 + $0xda0] sm:$0xf] }
  0xa3   : > { %v640_v27 = vld [vmem:[%s8641_s6 + $0xdb0] sm:$0xf]  ;;  %v642_v28 = vld [vmem:[%s8641_s6 + $0xdc0] sm:$0xf]  ;;  %639 = vst [vmem:[%s8645_s7 + $0x368] sm:$0xf] %v638_v26 }
  0xa4   : > { %641 = vst [vmem:[%s8645_s7 + $0x36c] sm:$0xf] %v640_v27  ;;  %643 = vst [vmem:[%s8645_s7 + $0x370] sm:$0xf] %v642_v28  ;;  %v644_v29 = vld [vmem:[%s8641_s6 + $0xdd0] sm:$0xf] }
  0xa5   : > { %v646_v30 = vld [vmem:[%s8641_s6 + $0xde0] sm:$0xf]  ;;  %v648_v31 = vld [vmem:[%s8641_s6 + $0xdf0] sm:$0xf]  ;;  %645 = vst [vmem:[%s8645_s7 + $0x374] sm:$0xf] %v644_v29 }
  0xa6   : > { %647 = vst [vmem:[%s8645_s7 + $0x378] sm:$0xf] %v646_v30  ;;  %649 = vst [vmem:[%s8645_s7 + $0x37c] sm:$0xf] %v648_v31  ;;  %v650_v32 = vld [vmem:[%s8641_s6 + $0xe00] sm:$0xf] }
  0xa7   : > { %v652_v33 = vld [vmem:[%s8641_s6 + $0xe10] sm:$0xf]  ;;  %v654_v34 = vld [vmem:[%s8641_s6 + $0xe20] sm:$0xf]  ;;  %651 = vst [vmem:[%s8645_s7 + $0x380] sm:$0xf] %v650_v32 }
  0xa8   : > { %653 = vst [vmem:[%s8645_s7 + $0x384] sm:$0xf] %v652_v33  ;;  %655 = vst [vmem:[%s8645_s7 + $0x388] sm:$0xf] %v654_v34  ;;  %v656_v35 = vld [vmem:[%s8641_s6 + $0xe30] sm:$0xf] }
  0xa9   : > { %v658_v36 = vld [vmem:[%s8641_s6 + $0xe40] sm:$0xf]  ;;  %v660_v37 = vld [vmem:[%s8641_s6 + $0xe50] sm:$0xf]  ;;  %657 = vst [vmem:[%s8645_s7 + $0x38c] sm:$0xf] %v656_v35 }
  0xaa   : > { %659 = vst [vmem:[%s8645_s7 + $0x390] sm:$0xf] %v658_v36  ;;  %661 = vst [vmem:[%s8645_s7 + $0x394] sm:$0xf] %v660_v37  ;;  %v662_v38 = vld [vmem:[%s8641_s6 + $0xe60] sm:$0xf] }
  0xab   : > { %v664_v39 = vld [vmem:[%s8641_s6 + $0xe70] sm:$0xf]  ;;  %v666_v40 = vld [vmem:[%s8641_s6 + $0xe80] sm:$0xf]  ;;  %663 = vst [vmem:[%s8645_s7 + $0x398] sm:$0xf] %v662_v38 }
  0xac   : > { %665 = vst [vmem:[%s8645_s7 + $0x39c] sm:$0xf] %v664_v39  ;;  %667 = vst [vmem:[%s8645_s7 + $0x3a0] sm:$0xf] %v666_v40  ;;  %v668_v41 = vld [vmem:[%s8641_s6 + $0xe90] sm:$0xf] }
  0xad   : > { %v670_v42 = vld [vmem:[%s8641_s6 + $0xea0] sm:$0xf]  ;;  %v672_v43 = vld [vmem:[%s8641_s6 + $0xeb0] sm:$0xf]  ;;  %669 = vst [vmem:[%s8645_s7 + $0x3a4] sm:$0xf] %v668_v41 }
  0xae   : > { %671 = vst [vmem:[%s8645_s7 + $0x3a8] sm:$0xf] %v670_v42  ;;  %673 = vst [vmem:[%s8645_s7 + $0x3ac] sm:$0xf] %v672_v43  ;;  %v674_v44 = vld [vmem:[%s8641_s6 + $0xec0] sm:$0xf] }
  0xaf   : > { %v676_v45 = vld [vmem:[%s8641_s6 + $0xed0] sm:$0xf]  ;;  %v678_v46 = vld [vmem:[%s8641_s6 + $0xee0] sm:$0xf]  ;;  %675 = vst [vmem:[%s8645_s7 + $0x3b0] sm:$0xf] %v674_v44 }
  0xb0   : > { %677 = vst [vmem:[%s8645_s7 + $0x3b4] sm:$0xf] %v676_v45  ;;  %679 = vst [vmem:[%s8645_s7 + $0x3b8] sm:$0xf] %v678_v46  ;;  %v680_v47 = vld [vmem:[%s8641_s6 + $0xef0] sm:$0xf] }
  0xb1   : > { %v682_v48 = vld [vmem:[%s8641_s6 + $0xf00] sm:$0xf]  ;;  %v684_v49 = vld [vmem:[%s8641_s6 + $0xf10] sm:$0xf]  ;;  %681 = vst [vmem:[%s8645_s7 + $0x3bc] sm:$0xf] %v680_v47 }
  0xb2   : > { %683 = vst [vmem:[%s8645_s7 + $0x3c0] sm:$0xf] %v682_v48  ;;  %685 = vst [vmem:[%s8645_s7 + $0x3c4] sm:$0xf] %v684_v49  ;;  %v686_v50 = vld [vmem:[%s8641_s6 + $0xf20] sm:$0xf] }
  0xb3   : > { %v688_v51 = vld [vmem:[%s8641_s6 + $0xf30] sm:$0xf]  ;;  %v690_v52 = vld [vmem:[%s8641_s6 + $0xf40] sm:$0xf]  ;;  %687 = vst [vmem:[%s8645_s7 + $0x3c8] sm:$0xf] %v686_v50 }
  0xb4   : > { %689 = vst [vmem:[%s8645_s7 + $0x3cc] sm:$0xf] %v688_v51  ;;  %691 = vst [vmem:[%s8645_s7 + $0x3d0] sm:$0xf] %v690_v52  ;;  %v692_v53 = vld [vmem:[%s8641_s6 + $0xf50] sm:$0xf] }
  0xb5   : > { %v694_v54 = vld [vmem:[%s8641_s6 + $0xf60] sm:$0xf]  ;;  %v696_v55 = vld [vmem:[%s8641_s6 + $0xf70] sm:$0xf]  ;;  %693 = vst [vmem:[%s8645_s7 + $0x3d4] sm:$0xf] %v692_v53 }
  0xb6   : > { %695 = vst [vmem:[%s8645_s7 + $0x3d8] sm:$0xf] %v694_v54  ;;  %697 = vst [vmem:[%s8645_s7 + $0x3dc] sm:$0xf] %v696_v55  ;;  %v698_v56 = vld [vmem:[%s8641_s6 + $0xf80] sm:$0xf] }
  0xb7   : > { %v700_v57 = vld [vmem:[%s8641_s6 + $0xf90] sm:$0xf]  ;;  %v702_v58 = vld [vmem:[%s8641_s6 + $0xfa0] sm:$0xf]  ;;  %699 = vst [vmem:[%s8645_s7 + $0x3e0] sm:$0xf] %v698_v56 }
  0xb8   : > { %701 = vst [vmem:[%s8645_s7 + $0x3e4] sm:$0xf] %v700_v57  ;;  %703 = vst [vmem:[%s8645_s7 + $0x3e8] sm:$0xf] %v702_v58  ;;  %v704_v59 = vld [vmem:[%s8641_s6 + $0xfb0] sm:$0xf] }
  0xb9   : > { %v706_v60 = vld [vmem:[%s8641_s6 + $0xfc0] sm:$0xf]  ;;  %v708_v61 = vld [vmem:[%s8641_s6 + $0xfd0] sm:$0xf]  ;;  %705 = vst [vmem:[%s8645_s7 + $0x3ec] sm:$0xf] %v704_v59 }
  0xba   : > { %707 = vst [vmem:[%s8645_s7 + $0x3f0] sm:$0xf] %v706_v60  ;;  %709 = vst [vmem:[%s8645_s7 + $0x3f4] sm:$0xf] %v708_v61  ;;  %v710_v62 = vld [vmem:[%s8641_s6 + $0xfe0] sm:$0xf] }
  0xbb   : > { %v712_v63 = vld [vmem:[%s8641_s6 + $0xff0] sm:$0xf]  ;;  %v714_v0 = vld [vmem:[%s8641_s6 + $0x1000] sm:$0xf]  ;;  %711 = vst [vmem:[%s8645_s7 + $0x3f8] sm:$0xf] %v710_v62 }
  0xbc   : > { %713 = vst [vmem:[%s8645_s7 + $0x3fc] sm:$0xf] %v712_v63  ;;  %715 = vst [vmem:[%s8645_s7 + $0x400] sm:$0xf] %v714_v0  ;;  %v716_v1 = vld [vmem:[%s8641_s6 + $0x1010] sm:$0xf] }
  0xbd   : > { %v718_v2 = vld [vmem:[%s8641_s6 + $0x1020] sm:$0xf]  ;;  %v720_v3 = vld [vmem:[%s8641_s6 + $0x1030] sm:$0xf]  ;;  %717 = vst [vmem:[%s8645_s7 + $0x404] sm:$0xf] %v716_v1 }
  0xbe   : > { %719 = vst [vmem:[%s8645_s7 + $0x408] sm:$0xf] %v718_v2  ;;  %721 = vst [vmem:[%s8645_s7 + $0x40c] sm:$0xf] %v720_v3  ;;  %v722_v4 = vld [vmem:[%s8641_s6 + $0x1040] sm:$0xf] }
  0xbf   : > { %v724_v5 = vld [vmem:[%s8641_s6 + $0x1050] sm:$0xf]  ;;  %v726_v6 = vld [vmem:[%s8641_s6 + $0x1060] sm:$0xf]  ;;  %723 = vst [vmem:[%s8645_s7 + $0x410] sm:$0xf] %v722_v4 }
  0xc0   : > { %725 = vst [vmem:[%s8645_s7 + $0x414] sm:$0xf] %v724_v5  ;;  %727 = vst [vmem:[%s8645_s7 + $0x418] sm:$0xf] %v726_v6  ;;  %v728_v7 = vld [vmem:[%s8641_s6 + $0x1070] sm:$0xf] }
  0xc1   : > { %v730_v8 = vld [vmem:[%s8641_s6 + $0x1080] sm:$0xf]  ;;  %v732_v9 = vld [vmem:[%s8641_s6 + $0x1090] sm:$0xf]  ;;  %729 = vst [vmem:[%s8645_s7 + $0x41c] sm:$0xf] %v728_v7 }
  0xc2   : > { %731 = vst [vmem:[%s8645_s7 + $0x420] sm:$0xf] %v730_v8  ;;  %733 = vst [vmem:[%s8645_s7 + $0x424] sm:$0xf] %v732_v9  ;;  %v734_v10 = vld [vmem:[%s8641_s6 + $0x10a0] sm:$0xf] }
  0xc3   : > { %v736_v11 = vld [vmem:[%s8641_s6 + $0x10b0] sm:$0xf]  ;;  %v738_v12 = vld [vmem:[%s8641_s6 + $0x10c0] sm:$0xf]  ;;  %735 = vst [vmem:[%s8645_s7 + $0x428] sm:$0xf] %v734_v10 }
  0xc4   : > { %737 = vst [vmem:[%s8645_s7 + $0x42c] sm:$0xf] %v736_v11  ;;  %739 = vst [vmem:[%s8645_s7 + $0x430] sm:$0xf] %v738_v12  ;;  %v740_v13 = vld [vmem:[%s8641_s6 + $0x10d0] sm:$0xf] }
  0xc5   : > { %v742_v14 = vld [vmem:[%s8641_s6 + $0x10e0] sm:$0xf]  ;;  %v744_v15 = vld [vmem:[%s8641_s6 + $0x10f0] sm:$0xf]  ;;  %741 = vst [vmem:[%s8645_s7 + $0x434] sm:$0xf] %v740_v13 }
  0xc6   : > { %743 = vst [vmem:[%s8645_s7 + $0x438] sm:$0xf] %v742_v14  ;;  %745 = vst [vmem:[%s8645_s7 + $0x43c] sm:$0xf] %v744_v15  ;;  %v746_v16 = vld [vmem:[%s8641_s6 + $0x1100] sm:$0xf] }
  0xc7   : > { %v748_v17 = vld [vmem:[%s8641_s6 + $0x1110] sm:$0xf]  ;;  %v750_v18 = vld [vmem:[%s8641_s6 + $0x1120] sm:$0xf]  ;;  %747 = vst [vmem:[%s8645_s7 + $0x440] sm:$0xf] %v746_v16 }
  0xc8   : > { %749 = vst [vmem:[%s8645_s7 + $0x444] sm:$0xf] %v748_v17  ;;  %751 = vst [vmem:[%s8645_s7 + $0x448] sm:$0xf] %v750_v18  ;;  %v752_v19 = vld [vmem:[%s8641_s6 + $0x1130] sm:$0xf] }
  0xc9   : > { %v754_v20 = vld [vmem:[%s8641_s6 + $0x1140] sm:$0xf]  ;;  %v756_v21 = vld [vmem:[%s8641_s6 + $0x1150] sm:$0xf]  ;;  %753 = vst [vmem:[%s8645_s7 + $0x44c] sm:$0xf] %v752_v19 }
  0xca   : > { %755 = vst [vmem:[%s8645_s7 + $0x450] sm:$0xf] %v754_v20  ;;  %757 = vst [vmem:[%s8645_s7 + $0x454] sm:$0xf] %v756_v21  ;;  %v758_v22 = vld [vmem:[%s8641_s6 + $0x1160] sm:$0xf] }
  0xcb   : > { %v760_v23 = vld [vmem:[%s8641_s6 + $0x1170] sm:$0xf]  ;;  %v762_v24 = vld [vmem:[%s8641_s6 + $0x1180] sm:$0xf]  ;;  %759 = vst [vmem:[%s8645_s7 + $0x458] sm:$0xf] %v758_v22 }
  0xcc   : > { %761 = vst [vmem:[%s8645_s7 + $0x45c] sm:$0xf] %v760_v23  ;;  %763 = vst [vmem:[%s8645_s7 + $0x460] sm:$0xf] %v762_v24  ;;  %v764_v25 = vld [vmem:[%s8641_s6 + $0x1190] sm:$0xf] }
  0xcd   : > { %v766_v26 = vld [vmem:[%s8641_s6 + $0x11a0] sm:$0xf]  ;;  %v768_v27 = vld [vmem:[%s8641_s6 + $0x11b0] sm:$0xf]  ;;  %765 = vst [vmem:[%s8645_s7 + $0x464] sm:$0xf] %v764_v25 }
  0xce   : > { %767 = vst [vmem:[%s8645_s7 + $0x468] sm:$0xf] %v766_v26  ;;  %769 = vst [vmem:[%s8645_s7 + $0x46c] sm:$0xf] %v768_v27  ;;  %v770_v28 = vld [vmem:[%s8641_s6 + $0x11c0] sm:$0xf] }
  0xcf   : > { %v772_v29 = vld [vmem:[%s8641_s6 + $0x11d0] sm:$0xf]  ;;  %v774_v30 = vld [vmem:[%s8641_s6 + $0x11e0] sm:$0xf]  ;;  %771 = vst [vmem:[%s8645_s7 + $0x470] sm:$0xf] %v770_v28 }
  0xd0   : > { %773 = vst [vmem:[%s8645_s7 + $0x474] sm:$0xf] %v772_v29  ;;  %775 = vst [vmem:[%s8645_s7 + $0x478] sm:$0xf] %v774_v30  ;;  %v776_v31 = vld [vmem:[%s8641_s6 + $0x11f0] sm:$0xf] }
  0xd1   : > { %v778_v32 = vld [vmem:[%s8641_s6 + $0x1200] sm:$0xf]  ;;  %v780_v33 = vld [vmem:[%s8641_s6 + $0x1210] sm:$0xf]  ;;  %777 = vst [vmem:[%s8645_s7 + $0x47c] sm:$0xf] %v776_v31 }
  0xd2   : > { %779 = vst [vmem:[%s8645_s7 + $0x480] sm:$0xf] %v778_v32  ;;  %781 = vst [vmem:[%s8645_s7 + $0x484] sm:$0xf] %v780_v33  ;;  %v782_v34 = vld [vmem:[%s8641_s6 + $0x1220] sm:$0xf] }
  0xd3   : > { %v784_v35 = vld [vmem:[%s8641_s6 + $0x1230] sm:$0xf]  ;;  %v786_v36 = vld [vmem:[%s8641_s6 + $0x1240] sm:$0xf]  ;;  %783 = vst [vmem:[%s8645_s7 + $0x488] sm:$0xf] %v782_v34 }
  0xd4   : > { %785 = vst [vmem:[%s8645_s7 + $0x48c] sm:$0xf] %v784_v35  ;;  %787 = vst [vmem:[%s8645_s7 + $0x490] sm:$0xf] %v786_v36  ;;  %v788_v37 = vld [vmem:[%s8641_s6 + $0x1250] sm:$0xf] }
  0xd5   : > { %v790_v38 = vld [vmem:[%s8641_s6 + $0x1260] sm:$0xf]  ;;  %v792_v39 = vld [vmem:[%s8641_s6 + $0x1270] sm:$0xf]  ;;  %789 = vst [vmem:[%s8645_s7 + $0x494] sm:$0xf] %v788_v37 }
  0xd6   : > { %791 = vst [vmem:[%s8645_s7 + $0x498] sm:$0xf] %v790_v38  ;;  %793 = vst [vmem:[%s8645_s7 + $0x49c] sm:$0xf] %v792_v39  ;;  %v794_v40 = vld [vmem:[%s8641_s6 + $0x1280] sm:$0xf] }
  0xd7   : > { %v796_v41 = vld [vmem:[%s8641_s6 + $0x1290] sm:$0xf]  ;;  %v798_v42 = vld [vmem:[%s8641_s6 + $0x12a0] sm:$0xf]  ;;  %795 = vst [vmem:[%s8645_s7 + $0x4a0] sm:$0xf] %v794_v40 }
  0xd8   : > { %797 = vst [vmem:[%s8645_s7 + $0x4a4] sm:$0xf] %v796_v41  ;;  %799 = vst [vmem:[%s8645_s7 + $0x4a8] sm:$0xf] %v798_v42  ;;  %v800_v43 = vld [vmem:[%s8641_s6 + $0x12b0] sm:$0xf] }
  0xd9   : > { %v802_v44 = vld [vmem:[%s8641_s6 + $0x12c0] sm:$0xf]  ;;  %v804_v45 = vld [vmem:[%s8641_s6 + $0x12d0] sm:$0xf]  ;;  %801 = vst [vmem:[%s8645_s7 + $0x4ac] sm:$0xf] %v800_v43 }
  0xda   : > { %803 = vst [vmem:[%s8645_s7 + $0x4b0] sm:$0xf] %v802_v44  ;;  %805 = vst [vmem:[%s8645_s7 + $0x4b4] sm:$0xf] %v804_v45  ;;  %v806_v46 = vld [vmem:[%s8641_s6 + $0x12e0] sm:$0xf] }
  0xdb   : > { %v808_v47 = vld [vmem:[%s8641_s6 + $0x12f0] sm:$0xf]  ;;  %v810_v48 = vld [vmem:[%s8641_s6 + $0x1300] sm:$0xf]  ;;  %807 = vst [vmem:[%s8645_s7 + $0x4b8] sm:$0xf] %v806_v46 }
  0xdc   : > { %809 = vst [vmem:[%s8645_s7 + $0x4bc] sm:$0xf] %v808_v47  ;;  %811 = vst [vmem:[%s8645_s7 + $0x4c0] sm:$0xf] %v810_v48  ;;  %v812_v49 = vld [vmem:[%s8641_s6 + $0x1310] sm:$0xf] }
  0xdd   : > { %v814_v50 = vld [vmem:[%s8641_s6 + $0x1320] sm:$0xf]  ;;  %v816_v51 = vld [vmem:[%s8641_s6 + $0x1330] sm:$0xf]  ;;  %813 = vst [vmem:[%s8645_s7 + $0x4c4] sm:$0xf] %v812_v49 }
  0xde   : > { %815 = vst [vmem:[%s8645_s7 + $0x4c8] sm:$0xf] %v814_v50  ;;  %817 = vst [vmem:[%s8645_s7 + $0x4cc] sm:$0xf] %v816_v51  ;;  %v818_v52 = vld [vmem:[%s8641_s6 + $0x1340] sm:$0xf] }
  0xdf   : > { %v820_v53 = vld [vmem:[%s8641_s6 + $0x1350] sm:$0xf]  ;;  %v822_v54 = vld [vmem:[%s8641_s6 + $0x1360] sm:$0xf]  ;;  %819 = vst [vmem:[%s8645_s7 + $0x4d0] sm:$0xf] %v818_v52 }
  0xe0   : > { %821 = vst [vmem:[%s8645_s7 + $0x4d4] sm:$0xf] %v820_v53  ;;  %823 = vst [vmem:[%s8645_s7 + $0x4d8] sm:$0xf] %v822_v54  ;;  %v824_v55 = vld [vmem:[%s8641_s6 + $0x1370] sm:$0xf] }
  0xe1   : > { %v826_v56 = vld [vmem:[%s8641_s6 + $0x1380] sm:$0xf]  ;;  %v828_v57 = vld [vmem:[%s8641_s6 + $0x1390] sm:$0xf]  ;;  %825 = vst [vmem:[%s8645_s7 + $0x4dc] sm:$0xf] %v824_v55 }
  0xe2   : > { %827 = vst [vmem:[%s8645_s7 + $0x4e0] sm:$0xf] %v826_v56  ;;  %829 = vst [vmem:[%s8645_s7 + $0x4e4] sm:$0xf] %v828_v57  ;;  %v830_v58 = vld [vmem:[%s8641_s6 + $0x13a0] sm:$0xf] }
  0xe3   : > { %v832_v59 = vld [vmem:[%s8641_s6 + $0x13b0] sm:$0xf]  ;;  %v834_v60 = vld [vmem:[%s8641_s6 + $0x13c0] sm:$0xf]  ;;  %831 = vst [vmem:[%s8645_s7 + $0x4e8] sm:$0xf] %v830_v58 }
  0xe4   : > { %833 = vst [vmem:[%s8645_s7 + $0x4ec] sm:$0xf] %v832_v59  ;;  %835 = vst [vmem:[%s8645_s7 + $0x4f0] sm:$0xf] %v834_v60  ;;  %v836_v61 = vld [vmem:[%s8641_s6 + $0x13d0] sm:$0xf] }
  0xe5   : > { %v838_v62 = vld [vmem:[%s8641_s6 + $0x13e0] sm:$0xf]  ;;  %v840_v63 = vld [vmem:[%s8641_s6 + $0x13f0] sm:$0xf]  ;;  %837 = vst [vmem:[%s8645_s7 + $0x4f4] sm:$0xf] %v836_v61 }
  0xe6   : > { %839 = vst [vmem:[%s8645_s7 + $0x4f8] sm:$0xf] %v838_v62  ;;  %841 = vst [vmem:[%s8645_s7 + $0x4fc] sm:$0xf] %v840_v63  ;;  %v842_v0 = vld [vmem:[%s8641_s6 + $0x1400] sm:$0xf] }
  0xe7   : > { %v844_v1 = vld [vmem:[%s8641_s6 + $0x1410] sm:$0xf]  ;;  %v846_v2 = vld [vmem:[%s8641_s6 + $0x1420] sm:$0xf]  ;;  %843 = vst [vmem:[%s8645_s7 + $0x500] sm:$0xf] %v842_v0 }
  0xe8   : > { %845 = vst [vmem:[%s8645_s7 + $0x504] sm:$0xf] %v844_v1  ;;  %847 = vst [vmem:[%s8645_s7 + $0x508] sm:$0xf] %v846_v2  ;;  %v848_v3 = vld [vmem:[%s8641_s6 + $0x1430] sm:$0xf] }
  0xe9   : > { %v850_v4 = vld [vmem:[%s8641_s6 + $0x1440] sm:$0xf]  ;;  %v852_v5 = vld [vmem:[%s8641_s6 + $0x1450] sm:$0xf]  ;;  %849 = vst [vmem:[%s8645_s7 + $0x50c] sm:$0xf] %v848_v3 }
  0xea   : > { %851 = vst [vmem:[%s8645_s7 + $0x510] sm:$0xf] %v850_v4  ;;  %853 = vst [vmem:[%s8645_s7 + $0x514] sm:$0xf] %v852_v5  ;;  %v854_v6 = vld [vmem:[%s8641_s6 + $0x1460] sm:$0xf] }
  0xeb   : > { %v856_v7 = vld [vmem:[%s8641_s6 + $0x1470] sm:$0xf]  ;;  %v858_v8 = vld [vmem:[%s8641_s6 + $0x1480] sm:$0xf]  ;;  %855 = vst [vmem:[%s8645_s7 + $0x518] sm:$0xf] %v854_v6 }
  0xec   : > { %857 = vst [vmem:[%s8645_s7 + $0x51c] sm:$0xf] %v856_v7  ;;  %859 = vst [vmem:[%s8645_s7 + $0x520] sm:$0xf] %v858_v8  ;;  %v860_v9 = vld [vmem:[%s8641_s6 + $0x1490] sm:$0xf] }
  0xed   : > { %v862_v10 = vld [vmem:[%s8641_s6 + $0x14a0] sm:$0xf]  ;;  %v864_v11 = vld [vmem:[%s8641_s6 + $0x14b0] sm:$0xf]  ;;  %861 = vst [vmem:[%s8645_s7 + $0x524] sm:$0xf] %v860_v9 }
  0xee   : > { %863 = vst [vmem:[%s8645_s7 + $0x528] sm:$0xf] %v862_v10  ;;  %865 = vst [vmem:[%s8645_s7 + $0x52c] sm:$0xf] %v864_v11  ;;  %v866_v12 = vld [vmem:[%s8641_s6 + $0x14c0] sm:$0xf] }
  0xef   : > { %v868_v13 = vld [vmem:[%s8641_s6 + $0x14d0] sm:$0xf]  ;;  %v870_v14 = vld [vmem:[%s8641_s6 + $0x14e0] sm:$0xf]  ;;  %867 = vst [vmem:[%s8645_s7 + $0x530] sm:$0xf] %v866_v12 }
  0xf0   : > { %869 = vst [vmem:[%s8645_s7 + $0x534] sm:$0xf] %v868_v13  ;;  %871 = vst [vmem:[%s8645_s7 + $0x538] sm:$0xf] %v870_v14  ;;  %v872_v15 = vld [vmem:[%s8641_s6 + $0x14f0] sm:$0xf] }
  0xf1   : > { %v874_v16 = vld [vmem:[%s8641_s6 + $0x1500] sm:$0xf]  ;;  %v876_v17 = vld [vmem:[%s8641_s6 + $0x1510] sm:$0xf]  ;;  %873 = vst [vmem:[%s8645_s7 + $0x53c] sm:$0xf] %v872_v15 }
  0xf2   : > { %875 = vst [vmem:[%s8645_s7 + $0x540] sm:$0xf] %v874_v16  ;;  %877 = vst [vmem:[%s8645_s7 + $0x544] sm:$0xf] %v876_v17  ;;  %v878_v18 = vld [vmem:[%s8641_s6 + $0x1520] sm:$0xf] }
  0xf3   : > { %v880_v19 = vld [vmem:[%s8641_s6 + $0x1530] sm:$0xf]  ;;  %v882_v20 = vld [vmem:[%s8641_s6 + $0x1540] sm:$0xf]  ;;  %879 = vst [vmem:[%s8645_s7 + $0x548] sm:$0xf] %v878_v18 }
  0xf4   : > { %881 = vst [vmem:[%s8645_s7 + $0x54c] sm:$0xf] %v880_v19  ;;  %883 = vst [vmem:[%s8645_s7 + $0x550] sm:$0xf] %v882_v20  ;;  %v884_v21 = vld [vmem:[%s8641_s6 + $0x1550] sm:$0xf] }
  0xf5   : > { %v886_v22 = vld [vmem:[%s8641_s6 + $0x1560] sm:$0xf]  ;;  %v888_v23 = vld [vmem:[%s8641_s6 + $0x1570] sm:$0xf]  ;;  %885 = vst [vmem:[%s8645_s7 + $0x554] sm:$0xf] %v884_v21 }
  0xf6   : > { %887 = vst [vmem:[%s8645_s7 + $0x558] sm:$0xf] %v886_v22  ;;  %889 = vst [vmem:[%s8645_s7 + $0x55c] sm:$0xf] %v888_v23  ;;  %v890_v24 = vld [vmem:[%s8641_s6 + $0x1580] sm:$0xf] }
  0xf7   : > { %v892_v25 = vld [vmem:[%s8641_s6 + $0x1590] sm:$0xf]  ;;  %v894_v26 = vld [vmem:[%s8641_s6 + $0x15a0] sm:$0xf]  ;;  %891 = vst [vmem:[%s8645_s7 + $0x560] sm:$0xf] %v890_v24 }
  0xf8   : > { %893 = vst [vmem:[%s8645_s7 + $0x564] sm:$0xf] %v892_v25  ;;  %895 = vst [vmem:[%s8645_s7 + $0x568] sm:$0xf] %v894_v26  ;;  %v896_v27 = vld [vmem:[%s8641_s6 + $0x15b0] sm:$0xf] }
  0xf9   : > { %v898_v28 = vld [vmem:[%s8641_s6 + $0x15c0] sm:$0xf]  ;;  %v900_v29 = vld [vmem:[%s8641_s6 + $0x15d0] sm:$0xf]  ;;  %897 = vst [vmem:[%s8645_s7 + $0x56c] sm:$0xf] %v896_v27 }
  0xfa   : > { %899 = vst [vmem:[%s8645_s7 + $0x570] sm:$0xf] %v898_v28  ;;  %901 = vst [vmem:[%s8645_s7 + $0x574] sm:$0xf] %v900_v29  ;;  %v902_v30 = vld [vmem:[%s8641_s6 + $0x15e0] sm:$0xf] }
  0xfb   : > { %v904_v31 = vld [vmem:[%s8641_s6 + $0x15f0] sm:$0xf]  ;;  %v906_v32 = vld [vmem:[%s8641_s6 + $0x1600] sm:$0xf]  ;;  %903 = vst [vmem:[%s8645_s7 + $0x578] sm:$0xf] %v902_v30 }
  0xfc   : > { %905 = vst [vmem:[%s8645_s7 + $0x57c] sm:$0xf] %v904_v31  ;;  %907 = vst [vmem:[%s8645_s7 + $0x580] sm:$0xf] %v906_v32  ;;  %v908_v33 = vld [vmem:[%s8641_s6 + $0x1610] sm:$0xf] }
  0xfd   : > { %v910_v34 = vld [vmem:[%s8641_s6 + $0x1620] sm:$0xf]  ;;  %v912_v35 = vld [vmem:[%s8641_s6 + $0x1630] sm:$0xf]  ;;  %909 = vst [vmem:[%s8645_s7 + $0x584] sm:$0xf] %v908_v33 }
  0xfe   : > { %911 = vst [vmem:[%s8645_s7 + $0x588] sm:$0xf] %v910_v34  ;;  %913 = vst [vmem:[%s8645_s7 + $0x58c] sm:$0xf] %v912_v35  ;;  %v914_v36 = vld [vmem:[%s8641_s6 + $0x1640] sm:$0xf] }
  0xff   : > { %v916_v37 = vld [vmem:[%s8641_s6 + $0x1650] sm:$0xf]  ;;  %v918_v38 = vld [vmem:[%s8641_s6 + $0x1660] sm:$0xf]  ;;  %915 = vst [vmem:[%s8645_s7 + $0x590] sm:$0xf] %v914_v36 }
 0x100   : > { %917 = vst [vmem:[%s8645_s7 + $0x594] sm:$0xf] %v916_v37  ;;  %919 = vst [vmem:[%s8645_s7 + $0x598] sm:$0xf] %v918_v38  ;;  %v920_v39 = vld [vmem:[%s8641_s6 + $0x1670] sm:$0xf] }
 0x101   : > { %v922_v40 = vld [vmem:[%s8641_s6 + $0x1680] sm:$0xf]  ;;  %v924_v41 = vld [vmem:[%s8641_s6 + $0x1690] sm:$0xf]  ;;  %921 = vst [vmem:[%s8645_s7 + $0x59c] sm:$0xf] %v920_v39 }
 0x102   : > { %923 = vst [vmem:[%s8645_s7 + $0x5a0] sm:$0xf] %v922_v40  ;;  %925 = vst [vmem:[%s8645_s7 + $0x5a4] sm:$0xf] %v924_v41  ;;  %v926_v42 = vld [vmem:[%s8641_s6 + $0x16a0] sm:$0xf] }
 0x103   : > { %v928_v43 = vld [vmem:[%s8641_s6 + $0x16b0] sm:$0xf]  ;;  %v930_v44 = vld [vmem:[%s8641_s6 + $0x16c0] sm:$0xf]  ;;  %927 = vst [vmem:[%s8645_s7 + $0x5a8] sm:$0xf] %v926_v42 }
 0x104   : > { %929 = vst [vmem:[%s8645_s7 + $0x5ac] sm:$0xf] %v928_v43  ;;  %931 = vst [vmem:[%s8645_s7 + $0x5b0] sm:$0xf] %v930_v44  ;;  %v932_v45 = vld [vmem:[%s8641_s6 + $0x16d0] sm:$0xf] }
 0x105   : > { %v934_v46 = vld [vmem:[%s8641_s6 + $0x16e0] sm:$0xf]  ;;  %v936_v47 = vld [vmem:[%s8641_s6 + $0x16f0] sm:$0xf]  ;;  %933 = vst [vmem:[%s8645_s7 + $0x5b4] sm:$0xf] %v932_v45 }
 0x106   : > { %935 = vst [vmem:[%s8645_s7 + $0x5b8] sm:$0xf] %v934_v46  ;;  %937 = vst [vmem:[%s8645_s7 + $0x5bc] sm:$0xf] %v936_v47  ;;  %v938_v48 = vld [vmem:[%s8641_s6 + $0x1700] sm:$0xf] }
 0x107   : > { %v940_v49 = vld [vmem:[%s8641_s6 + $0x1710] sm:$0xf]  ;;  %v942_v50 = vld [vmem:[%s8641_s6 + $0x1720] sm:$0xf]  ;;  %939 = vst [vmem:[%s8645_s7 + $0x5c0] sm:$0xf] %v938_v48 }
 0x108   : > { %941 = vst [vmem:[%s8645_s7 + $0x5c4] sm:$0xf] %v940_v49  ;;  %943 = vst [vmem:[%s8645_s7 + $0x5c8] sm:$0xf] %v942_v50  ;;  %v944_v51 = vld [vmem:[%s8641_s6 + $0x1730] sm:$0xf] }
 0x109   : > { %v946_v52 = vld [vmem:[%s8641_s6 + $0x1740] sm:$0xf]  ;;  %v948_v53 = vld [vmem:[%s8641_s6 + $0x1750] sm:$0xf]  ;;  %945 = vst [vmem:[%s8645_s7 + $0x5cc] sm:$0xf] %v944_v51 }
 0x10a   : > { %947 = vst [vmem:[%s8645_s7 + $0x5d0] sm:$0xf] %v946_v52  ;;  %949 = vst [vmem:[%s8645_s7 + $0x5d4] sm:$0xf] %v948_v53  ;;  %v950_v54 = vld [vmem:[%s8641_s6 + $0x1760] sm:$0xf] }
 0x10b   : > { %v952_v55 = vld [vmem:[%s8641_s6 + $0x1770] sm:$0xf]  ;;  %v954_v56 = vld [vmem:[%s8641_s6 + $0x1780] sm:$0xf]  ;;  %951 = vst [vmem:[%s8645_s7 + $0x5d8] sm:$0xf] %v950_v54 }
 0x10c   : > { %953 = vst [vmem:[%s8645_s7 + $0x5dc] sm:$0xf] %v952_v55  ;;  %955 = vst [vmem:[%s8645_s7 + $0x5e0] sm:$0xf] %v954_v56  ;;  %v956_v57 = vld [vmem:[%s8641_s6 + $0x1790] sm:$0xf] }
 0x10d   : > { %v958_v58 = vld [vmem:[%s8641_s6 + $0x17a0] sm:$0xf]  ;;  %v960_v59 = vld [vmem:[%s8641_s6 + $0x17b0] sm:$0xf]  ;;  %957 = vst [vmem:[%s8645_s7 + $0x5e4] sm:$0xf] %v956_v57 }
 0x10e   : > { %959 = vst [vmem:[%s8645_s7 + $0x5e8] sm:$0xf] %v958_v58  ;;  %961 = vst [vmem:[%s8645_s7 + $0x5ec] sm:$0xf] %v960_v59  ;;  %v962_v60 = vld [vmem:[%s8641_s6 + $0x17c0] sm:$0xf] }
 0x10f   : > { %v964_v61 = vld [vmem:[%s8641_s6 + $0x17d0] sm:$0xf]  ;;  %v966_v62 = vld [vmem:[%s8641_s6 + $0x17e0] sm:$0xf]  ;;  %963 = vst [vmem:[%s8645_s7 + $0x5f0] sm:$0xf] %v962_v60 }
 0x110   : > { %965 = vst [vmem:[%s8645_s7 + $0x5f4] sm:$0xf] %v964_v61  ;;  %967 = vst [vmem:[%s8645_s7 + $0x5f8] sm:$0xf] %v966_v62  ;;  %v968_v63 = vld [vmem:[%s8641_s6 + $0x17f0] sm:$0xf] }
 0x111   : > { %v970_v0 = vld [vmem:[%s8641_s6 + $0x1800] sm:$0xf]  ;;  %v972_v1 = vld [vmem:[%s8641_s6 + $0x1810] sm:$0xf]  ;;  %969 = vst [vmem:[%s8645_s7 + $0x5fc] sm:$0xf] %v968_v63 }
 0x112   : > { %971 = vst [vmem:[%s8645_s7 + $0x600] sm:$0xf] %v970_v0  ;;  %973 = vst [vmem:[%s8645_s7 + $0x604] sm:$0xf] %v972_v1  ;;  %v974_v2 = vld [vmem:[%s8641_s6 + $0x1820] sm:$0xf] }
 0x113   : > { %v976_v3 = vld [vmem:[%s8641_s6 + $0x1830] sm:$0xf]  ;;  %v978_v4 = vld [vmem:[%s8641_s6 + $0x1840] sm:$0xf]  ;;  %975 = vst [vmem:[%s8645_s7 + $0x608] sm:$0xf] %v974_v2 }
 0x114   : > { %977 = vst [vmem:[%s8645_s7 + $0x60c] sm:$0xf] %v976_v3  ;;  %979 = vst [vmem:[%s8645_s7 + $0x610] sm:$0xf] %v978_v4  ;;  %v980_v5 = vld [vmem:[%s8641_s6 + $0x1850] sm:$0xf] }
 0x115   : > { %v982_v6 = vld [vmem:[%s8641_s6 + $0x1860] sm:$0xf]  ;;  %v984_v7 = vld [vmem:[%s8641_s6 + $0x1870] sm:$0xf]  ;;  %981 = vst [vmem:[%s8645_s7 + $0x614] sm:$0xf] %v980_v5 }
 0x116   : > { %983 = vst [vmem:[%s8645_s7 + $0x618] sm:$0xf] %v982_v6  ;;  %985 = vst [vmem:[%s8645_s7 + $0x61c] sm:$0xf] %v984_v7  ;;  %v986_v8 = vld [vmem:[%s8641_s6 + $0x1880] sm:$0xf] }
 0x117   : > { %v988_v9 = vld [vmem:[%s8641_s6 + $0x1890] sm:$0xf]  ;;  %v990_v10 = vld [vmem:[%s8641_s6 + $0x18a0] sm:$0xf]  ;;  %987 = vst [vmem:[%s8645_s7 + $0x620] sm:$0xf] %v986_v8 }
 0x118   : > { %989 = vst [vmem:[%s8645_s7 + $0x624] sm:$0xf] %v988_v9  ;;  %991 = vst [vmem:[%s8645_s7 + $0x628] sm:$0xf] %v990_v10  ;;  %v992_v11 = vld [vmem:[%s8641_s6 + $0x18b0] sm:$0xf] }
 0x119   : > { %v994_v12 = vld [vmem:[%s8641_s6 + $0x18c0] sm:$0xf]  ;;  %v996_v13 = vld [vmem:[%s8641_s6 + $0x18d0] sm:$0xf]  ;;  %993 = vst [vmem:[%s8645_s7 + $0x62c] sm:$0xf] %v992_v11 }
 0x11a   : > { %995 = vst [vmem:[%s8645_s7 + $0x630] sm:$0xf] %v994_v12  ;;  %997 = vst [vmem:[%s8645_s7 + $0x634] sm:$0xf] %v996_v13  ;;  %v998_v14 = vld [vmem:[%s8641_s6 + $0x18e0] sm:$0xf] }
 0x11b   : > { %v1000_v15 = vld [vmem:[%s8641_s6 + $0x18f0] sm:$0xf]  ;;  %v1002_v16 = vld [vmem:[%s8641_s6 + $0x1900] sm:$0xf]  ;;  %999 = vst [vmem:[%s8645_s7 + $0x638] sm:$0xf] %v998_v14 }
 0x11c   : > { %1001 = vst [vmem:[%s8645_s7 + $0x63c] sm:$0xf] %v1000_v15  ;;  %1003 = vst [vmem:[%s8645_s7 + $0x640] sm:$0xf] %v1002_v16  ;;  %v1004_v17 = vld [vmem:[%s8641_s6 + $0x1910] sm:$0xf] }
 0x11d   : > { %v1006_v18 = vld [vmem:[%s8641_s6 + $0x1920] sm:$0xf]  ;;  %v1008_v19 = vld [vmem:[%s8641_s6 + $0x1930] sm:$0xf]  ;;  %1005 = vst [vmem:[%s8645_s7 + $0x644] sm:$0xf] %v1004_v17 }
 0x11e   : > { %1007 = vst [vmem:[%s8645_s7 + $0x648] sm:$0xf] %v1006_v18  ;;  %1009 = vst [vmem:[%s8645_s7 + $0x64c] sm:$0xf] %v1008_v19  ;;  %v1010_v20 = vld [vmem:[%s8641_s6 + $0x1940] sm:$0xf] }
 0x11f   : > { %v1012_v21 = vld [vmem:[%s8641_s6 + $0x1950] sm:$0xf]  ;;  %v1014_v22 = vld [vmem:[%s8641_s6 + $0x1960] sm:$0xf]  ;;  %1011 = vst [vmem:[%s8645_s7 + $0x650] sm:$0xf] %v1010_v20 }
 0x120   : > { %1013 = vst [vmem:[%s8645_s7 + $0x654] sm:$0xf] %v1012_v21  ;;  %1015 = vst [vmem:[%s8645_s7 + $0x658] sm:$0xf] %v1014_v22  ;;  %v1016_v23 = vld [vmem:[%s8641_s6 + $0x1970] sm:$0xf] }
 0x121   : > { %v1018_v24 = vld [vmem:[%s8641_s6 + $0x1980] sm:$0xf]  ;;  %v1020_v25 = vld [vmem:[%s8641_s6 + $0x1990] sm:$0xf]  ;;  %1017 = vst [vmem:[%s8645_s7 + $0x65c] sm:$0xf] %v1016_v23 }
 0x122   : > { %1019 = vst [vmem:[%s8645_s7 + $0x660] sm:$0xf] %v1018_v24  ;;  %1021 = vst [vmem:[%s8645_s7 + $0x664] sm:$0xf] %v1020_v25  ;;  %v1022_v26 = vld [vmem:[%s8641_s6 + $0x19a0] sm:$0xf] }
 0x123   : > { %v1024_v27 = vld [vmem:[%s8641_s6 + $0x19b0] sm:$0xf]  ;;  %v1026_v28 = vld [vmem:[%s8641_s6 + $0x19c0] sm:$0xf]  ;;  %1023 = vst [vmem:[%s8645_s7 + $0x668] sm:$0xf] %v1022_v26 }
 0x124   : > { %1025 = vst [vmem:[%s8645_s7 + $0x66c] sm:$0xf] %v1024_v27  ;;  %1027 = vst [vmem:[%s8645_s7 + $0x670] sm:$0xf] %v1026_v28  ;;  %v1028_v29 = vld [vmem:[%s8641_s6 + $0x19d0] sm:$0xf] }
 0x125   : > { %v1030_v30 = vld [vmem:[%s8641_s6 + $0x19e0] sm:$0xf]  ;;  %v1032_v31 = vld [vmem:[%s8641_s6 + $0x19f0] sm:$0xf]  ;;  %1029 = vst [vmem:[%s8645_s7 + $0x674] sm:$0xf] %v1028_v29 }
 0x126   : > { %1031 = vst [vmem:[%s8645_s7 + $0x678] sm:$0xf] %v1030_v30  ;;  %1033 = vst [vmem:[%s8645_s7 + $0x67c] sm:$0xf] %v1032_v31  ;;  %v1034_v32 = vld [vmem:[%s8641_s6 + $0x1a00] sm:$0xf] }
 0x127   : > { %v1036_v33 = vld [vmem:[%s8641_s6 + $0x1a10] sm:$0xf]  ;;  %v1038_v34 = vld [vmem:[%s8641_s6 + $0x1a20] sm:$0xf]  ;;  %1035 = vst [vmem:[%s8645_s7 + $0x680] sm:$0xf] %v1034_v32 }
 0x128   : > { %1037 = vst [vmem:[%s8645_s7 + $0x684] sm:$0xf] %v1036_v33  ;;  %1039 = vst [vmem:[%s8645_s7 + $0x688] sm:$0xf] %v1038_v34  ;;  %v1040_v35 = vld [vmem:[%s8641_s6 + $0x1a30] sm:$0xf] }
 0x129   : > { %v1042_v36 = vld [vmem:[%s8641_s6 + $0x1a40] sm:$0xf]  ;;  %v1044_v37 = vld [vmem:[%s8641_s6 + $0x1a50] sm:$0xf]  ;;  %1041 = vst [vmem:[%s8645_s7 + $0x68c] sm:$0xf] %v1040_v35 }
 0x12a   : > { %1043 = vst [vmem:[%s8645_s7 + $0x690] sm:$0xf] %v1042_v36  ;;  %1045 = vst [vmem:[%s8645_s7 + $0x694] sm:$0xf] %v1044_v37  ;;  %v1046_v38 = vld [vmem:[%s8641_s6 + $0x1a60] sm:$0xf] }
 0x12b   : > { %v1048_v39 = vld [vmem:[%s8641_s6 + $0x1a70] sm:$0xf]  ;;  %v1050_v40 = vld [vmem:[%s8641_s6 + $0x1a80] sm:$0xf]  ;;  %1047 = vst [vmem:[%s8645_s7 + $0x698] sm:$0xf] %v1046_v38 }
 0x12c   : > { %1049 = vst [vmem:[%s8645_s7 + $0x69c] sm:$0xf] %v1048_v39  ;;  %1051 = vst [vmem:[%s8645_s7 + $0x6a0] sm:$0xf] %v1050_v40  ;;  %v1052_v41 = vld [vmem:[%s8641_s6 + $0x1a90] sm:$0xf] }
 0x12d   : > { %v1054_v42 = vld [vmem:[%s8641_s6 + $0x1aa0] sm:$0xf]  ;;  %v1056_v43 = vld [vmem:[%s8641_s6 + $0x1ab0] sm:$0xf]  ;;  %1053 = vst [vmem:[%s8645_s7 + $0x6a4] sm:$0xf] %v1052_v41 }
 0x12e   : > { %1055 = vst [vmem:[%s8645_s7 + $0x6a8] sm:$0xf] %v1054_v42  ;;  %1057 = vst [vmem:[%s8645_s7 + $0x6ac] sm:$0xf] %v1056_v43  ;;  %v1058_v44 = vld [vmem:[%s8641_s6 + $0x1ac0] sm:$0xf] }
 0x12f   : > { %v1060_v45 = vld [vmem:[%s8641_s6 + $0x1ad0] sm:$0xf]  ;;  %v1062_v46 = vld [vmem:[%s8641_s6 + $0x1ae0] sm:$0xf]  ;;  %1059 = vst [vmem:[%s8645_s7 + $0x6b0] sm:$0xf] %v1058_v44 }
 0x130   : > { %1061 = vst [vmem:[%s8645_s7 + $0x6b4] sm:$0xf] %v1060_v45  ;;  %1063 = vst [vmem:[%s8645_s7 + $0x6b8] sm:$0xf] %v1062_v46  ;;  %v1064_v47 = vld [vmem:[%s8641_s6 + $0x1af0] sm:$0xf] }
 0x131   : > { %v1066_v48 = vld [vmem:[%s8641_s6 + $0x1b00] sm:$0xf]  ;;  %v1068_v49 = vld [vmem:[%s8641_s6 + $0x1b10] sm:$0xf]  ;;  %1065 = vst [vmem:[%s8645_s7 + $0x6bc] sm:$0xf] %v1064_v47 }
 0x132   : > { %1067 = vst [vmem:[%s8645_s7 + $0x6c0] sm:$0xf] %v1066_v48  ;;  %1069 = vst [vmem:[%s8645_s7 + $0x6c4] sm:$0xf] %v1068_v49  ;;  %v1070_v50 = vld [vmem:[%s8641_s6 + $0x1b20] sm:$0xf] }
 0x133   : > { %v1072_v51 = vld [vmem:[%s8641_s6 + $0x1b30] sm:$0xf]  ;;  %v1074_v52 = vld [vmem:[%s8641_s6 + $0x1b40] sm:$0xf]  ;;  %1071 = vst [vmem:[%s8645_s7 + $0x6c8] sm:$0xf] %v1070_v50 }
 0x134   : > { %1073 = vst [vmem:[%s8645_s7 + $0x6cc] sm:$0xf] %v1072_v51  ;;  %1075 = vst [vmem:[%s8645_s7 + $0x6d0] sm:$0xf] %v1074_v52  ;;  %v1076_v53 = vld [vmem:[%s8641_s6 + $0x1b50] sm:$0xf] }
 0x135   : > { %v1078_v54 = vld [vmem:[%s8641_s6 + $0x1b60] sm:$0xf]  ;;  %v1080_v55 = vld [vmem:[%s8641_s6 + $0x1b70] sm:$0xf]  ;;  %1077 = vst [vmem:[%s8645_s7 + $0x6d4] sm:$0xf] %v1076_v53 }
 0x136   : > { %1079 = vst [vmem:[%s8645_s7 + $0x6d8] sm:$0xf] %v1078_v54  ;;  %1081 = vst [vmem:[%s8645_s7 + $0x6dc] sm:$0xf] %v1080_v55  ;;  %v1082_v56 = vld [vmem:[%s8641_s6 + $0x1b80] sm:$0xf] }
 0x137   : > { %v1084_v57 = vld [vmem:[%s8641_s6 + $0x1b90] sm:$0xf]  ;;  %v1086_v58 = vld [vmem:[%s8641_s6 + $0x1ba0] sm:$0xf]  ;;  %1083 = vst [vmem:[%s8645_s7 + $0x6e0] sm:$0xf] %v1082_v56 }
 0x138   : > { %1085 = vst [vmem:[%s8645_s7 + $0x6e4] sm:$0xf] %v1084_v57  ;;  %1087 = vst [vmem:[%s8645_s7 + $0x6e8] sm:$0xf] %v1086_v58  ;;  %v1088_v59 = vld [vmem:[%s8641_s6 + $0x1bb0] sm:$0xf] }
 0x139   : > { %v1090_v60 = vld [vmem:[%s8641_s6 + $0x1bc0] sm:$0xf]  ;;  %v1092_v61 = vld [vmem:[%s8641_s6 + $0x1bd0] sm:$0xf]  ;;  %1089 = vst [vmem:[%s8645_s7 + $0x6ec] sm:$0xf] %v1088_v59 }
 0x13a   : > { %1091 = vst [vmem:[%s8645_s7 + $0x6f0] sm:$0xf] %v1090_v60  ;;  %1093 = vst [vmem:[%s8645_s7 + $0x6f4] sm:$0xf] %v1092_v61  ;;  %v1094_v62 = vld [vmem:[%s8641_s6 + $0x1be0] sm:$0xf] }
 0x13b   : > { %v1096_v63 = vld [vmem:[%s8641_s6 + $0x1bf0] sm:$0xf]  ;;  %v1098_v0 = vld [vmem:[%s8641_s6 + $0x1c00] sm:$0xf]  ;;  %1095 = vst [vmem:[%s8645_s7 + $0x6f8] sm:$0xf] %v1094_v62 }
 0x13c   : > { %1097 = vst [vmem:[%s8645_s7 + $0x6fc] sm:$0xf] %v1096_v63  ;;  %1099 = vst [vmem:[%s8645_s7 + $0x700] sm:$0xf] %v1098_v0  ;;  %v1100_v1 = vld [vmem:[%s8641_s6 + $0x1c10] sm:$0xf] }
 0x13d   : > { %v1102_v2 = vld [vmem:[%s8641_s6 + $0x1c20] sm:$0xf]  ;;  %v1104_v3 = vld [vmem:[%s8641_s6 + $0x1c30] sm:$0xf]  ;;  %1101 = vst [vmem:[%s8645_s7 + $0x704] sm:$0xf] %v1100_v1 }
 0x13e   : > { %1103 = vst [vmem:[%s8645_s7 + $0x708] sm:$0xf] %v1102_v2  ;;  %1105 = vst [vmem:[%s8645_s7 + $0x70c] sm:$0xf] %v1104_v3  ;;  %v1106_v4 = vld [vmem:[%s8641_s6 + $0x1c40] sm:$0xf] }
 0x13f   : > { %v1108_v5 = vld [vmem:[%s8641_s6 + $0x1c50] sm:$0xf]  ;;  %v1110_v6 = vld [vmem:[%s8641_s6 + $0x1c60] sm:$0xf]  ;;  %1107 = vst [vmem:[%s8645_s7 + $0x710] sm:$0xf] %v1106_v4 }
 0x140   : > { %1109 = vst [vmem:[%s8645_s7 + $0x714] sm:$0xf] %v1108_v5  ;;  %1111 = vst [vmem:[%s8645_s7 + $0x718] sm:$0xf] %v1110_v6  ;;  %v1112_v7 = vld [vmem:[%s8641_s6 + $0x1c70] sm:$0xf] }
 0x141   : > { %v1114_v8 = vld [vmem:[%s8641_s6 + $0x1c80] sm:$0xf]  ;;  %v1116_v9 = vld [vmem:[%s8641_s6 + $0x1c90] sm:$0xf]  ;;  %1113 = vst [vmem:[%s8645_s7 + $0x71c] sm:$0xf] %v1112_v7 }
 0x142   : > { %1115 = vst [vmem:[%s8645_s7 + $0x720] sm:$0xf] %v1114_v8  ;;  %1117 = vst [vmem:[%s8645_s7 + $0x724] sm:$0xf] %v1116_v9  ;;  %v1118_v10 = vld [vmem:[%s8641_s6 + $0x1ca0] sm:$0xf] }
 0x143   : > { %v1120_v11 = vld [vmem:[%s8641_s6 + $0x1cb0] sm:$0xf]  ;;  %v1122_v12 = vld [vmem:[%s8641_s6 + $0x1cc0] sm:$0xf]  ;;  %1119 = vst [vmem:[%s8645_s7 + $0x728] sm:$0xf] %v1118_v10 }
 0x144   : > { %1121 = vst [vmem:[%s8645_s7 + $0x72c] sm:$0xf] %v1120_v11  ;;  %1123 = vst [vmem:[%s8645_s7 + $0x730] sm:$0xf] %v1122_v12  ;;  %v1124_v13 = vld [vmem:[%s8641_s6 + $0x1cd0] sm:$0xf] }
 0x145   : > { %v1126_v14 = vld [vmem:[%s8641_s6 + $0x1ce0] sm:$0xf]  ;;  %v1128_v15 = vld [vmem:[%s8641_s6 + $0x1cf0] sm:$0xf]  ;;  %1125 = vst [vmem:[%s8645_s7 + $0x734] sm:$0xf] %v1124_v13 }
 0x146   : > { %1127 = vst [vmem:[%s8645_s7 + $0x738] sm:$0xf] %v1126_v14  ;;  %1129 = vst [vmem:[%s8645_s7 + $0x73c] sm:$0xf] %v1128_v15  ;;  %v1130_v16 = vld [vmem:[%s8641_s6 + $0x1d00] sm:$0xf] }
 0x147   : > { %v1132_v17 = vld [vmem:[%s8641_s6 + $0x1d10] sm:$0xf]  ;;  %v1134_v18 = vld [vmem:[%s8641_s6 + $0x1d20] sm:$0xf]  ;;  %1131 = vst [vmem:[%s8645_s7 + $0x740] sm:$0xf] %v1130_v16 }
 0x148   : > { %1133 = vst [vmem:[%s8645_s7 + $0x744] sm:$0xf] %v1132_v17  ;;  %1135 = vst [vmem:[%s8645_s7 + $0x748] sm:$0xf] %v1134_v18  ;;  %v1136_v19 = vld [vmem:[%s8641_s6 + $0x1d30] sm:$0xf] }
 0x149   : > { %v1138_v20 = vld [vmem:[%s8641_s6 + $0x1d40] sm:$0xf]  ;;  %v1140_v21 = vld [vmem:[%s8641_s6 + $0x1d50] sm:$0xf]  ;;  %1137 = vst [vmem:[%s8645_s7 + $0x74c] sm:$0xf] %v1136_v19 }
 0x14a   : > { %1139 = vst [vmem:[%s8645_s7 + $0x750] sm:$0xf] %v1138_v20  ;;  %1141 = vst [vmem:[%s8645_s7 + $0x754] sm:$0xf] %v1140_v21  ;;  %v1142_v22 = vld [vmem:[%s8641_s6 + $0x1d60] sm:$0xf] }
 0x14b   : > { %v1144_v23 = vld [vmem:[%s8641_s6 + $0x1d70] sm:$0xf]  ;;  %v1146_v24 = vld [vmem:[%s8641_s6 + $0x1d80] sm:$0xf]  ;;  %1143 = vst [vmem:[%s8645_s7 + $0x758] sm:$0xf] %v1142_v22 }
 0x14c   : > { %1145 = vst [vmem:[%s8645_s7 + $0x75c] sm:$0xf] %v1144_v23  ;;  %1147 = vst [vmem:[%s8645_s7 + $0x760] sm:$0xf] %v1146_v24  ;;  %v1148_v25 = vld [vmem:[%s8641_s6 + $0x1d90] sm:$0xf] }
 0x14d   : > { %v1150_v26 = vld [vmem:[%s8641_s6 + $0x1da0] sm:$0xf]  ;;  %v1152_v27 = vld [vmem:[%s8641_s6 + $0x1db0] sm:$0xf]  ;;  %1149 = vst [vmem:[%s8645_s7 + $0x764] sm:$0xf] %v1148_v25 }
 0x14e   : > { %1151 = vst [vmem:[%s8645_s7 + $0x768] sm:$0xf] %v1150_v26  ;;  %1153 = vst [vmem:[%s8645_s7 + $0x76c] sm:$0xf] %v1152_v27  ;;  %v1154_v28 = vld [vmem:[%s8641_s6 + $0x1dc0] sm:$0xf] }
 0x14f   : > { %v1156_v29 = vld [vmem:[%s8641_s6 + $0x1dd0] sm:$0xf]  ;;  %v1158_v30 = vld [vmem:[%s8641_s6 + $0x1de0] sm:$0xf]  ;;  %1155 = vst [vmem:[%s8645_s7 + $0x770] sm:$0xf] %v1154_v28 }
 0x150   : > { %1157 = vst [vmem:[%s8645_s7 + $0x774] sm:$0xf] %v1156_v29  ;;  %1159 = vst [vmem:[%s8645_s7 + $0x778] sm:$0xf] %v1158_v30  ;;  %v1160_v31 = vld [vmem:[%s8641_s6 + $0x1df0] sm:$0xf] }
 0x151   : > { %v1162_v32 = vld [vmem:[%s8641_s6 + $0x1e00] sm:$0xf]  ;;  %v1164_v33 = vld [vmem:[%s8641_s6 + $0x1e10] sm:$0xf]  ;;  %1161 = vst [vmem:[%s8645_s7 + $0x77c] sm:$0xf] %v1160_v31 }
 0x152   : > { %1163 = vst [vmem:[%s8645_s7 + $0x780] sm:$0xf] %v1162_v32  ;;  %1165 = vst [vmem:[%s8645_s7 + $0x784] sm:$0xf] %v1164_v33  ;;  %v1166_v34 = vld [vmem:[%s8641_s6 + $0x1e20] sm:$0xf] }
 0x153   : > { %v1168_v35 = vld [vmem:[%s8641_s6 + $0x1e30] sm:$0xf]  ;;  %v1170_v36 = vld [vmem:[%s8641_s6 + $0x1e40] sm:$0xf]  ;;  %1167 = vst [vmem:[%s8645_s7 + $0x788] sm:$0xf] %v1166_v34 }
 0x154   : > { %1169 = vst [vmem:[%s8645_s7 + $0x78c] sm:$0xf] %v1168_v35  ;;  %1171 = vst [vmem:[%s8645_s7 + $0x790] sm:$0xf] %v1170_v36  ;;  %v1172_v37 = vld [vmem:[%s8641_s6 + $0x1e50] sm:$0xf] }
 0x155   : > { %v1174_v38 = vld [vmem:[%s8641_s6 + $0x1e60] sm:$0xf]  ;;  %v1176_v39 = vld [vmem:[%s8641_s6 + $0x1e70] sm:$0xf]  ;;  %1173 = vst [vmem:[%s8645_s7 + $0x794] sm:$0xf] %v1172_v37 }
 0x156   : > { %1175 = vst [vmem:[%s8645_s7 + $0x798] sm:$0xf] %v1174_v38  ;;  %1177 = vst [vmem:[%s8645_s7 + $0x79c] sm:$0xf] %v1176_v39  ;;  %v1178_v40 = vld [vmem:[%s8641_s6 + $0x1e80] sm:$0xf] }
 0x157   : > { %v1180_v41 = vld [vmem:[%s8641_s6 + $0x1e90] sm:$0xf]  ;;  %v1182_v42 = vld [vmem:[%s8641_s6 + $0x1ea0] sm:$0xf]  ;;  %1179 = vst [vmem:[%s8645_s7 + $0x7a0] sm:$0xf] %v1178_v40 }
 0x158   : > { %1181 = vst [vmem:[%s8645_s7 + $0x7a4] sm:$0xf] %v1180_v41  ;;  %1183 = vst [vmem:[%s8645_s7 + $0x7a8] sm:$0xf] %v1182_v42  ;;  %v1184_v43 = vld [vmem:[%s8641_s6 + $0x1eb0] sm:$0xf] }
 0x159   : > { %v1186_v44 = vld [vmem:[%s8641_s6 + $0x1ec0] sm:$0xf]  ;;  %v1188_v45 = vld [vmem:[%s8641_s6 + $0x1ed0] sm:$0xf]  ;;  %1185 = vst [vmem:[%s8645_s7 + $0x7ac] sm:$0xf] %v1184_v43 }
 0x15a   : > { %1187 = vst [vmem:[%s8645_s7 + $0x7b0] sm:$0xf] %v1186_v44  ;;  %1189 = vst [vmem:[%s8645_s7 + $0x7b4] sm:$0xf] %v1188_v45  ;;  %v1190_v46 = vld [vmem:[%s8641_s6 + $0x1ee0] sm:$0xf] }
 0x15b   : > { %v1192_v47 = vld [vmem:[%s8641_s6 + $0x1ef0] sm:$0xf]  ;;  %v1194_v48 = vld [vmem:[%s8641_s6 + $0x1f00] sm:$0xf]  ;;  %1191 = vst [vmem:[%s8645_s7 + $0x7b8] sm:$0xf] %v1190_v46 }
 0x15c   : > { %1193 = vst [vmem:[%s8645_s7 + $0x7bc] sm:$0xf] %v1192_v47  ;;  %1195 = vst [vmem:[%s8645_s7 + $0x7c0] sm:$0xf] %v1194_v48  ;;  %v1196_v49 = vld [vmem:[%s8641_s6 + $0x1f10] sm:$0xf] }
 0x15d   : > { %v1198_v50 = vld [vmem:[%s8641_s6 + $0x1f20] sm:$0xf]  ;;  %v1200_v51 = vld [vmem:[%s8641_s6 + $0x1f30] sm:$0xf]  ;;  %1197 = vst [vmem:[%s8645_s7 + $0x7c4] sm:$0xf] %v1196_v49 }
 0x15e   : > { %1199 = vst [vmem:[%s8645_s7 + $0x7c8] sm:$0xf] %v1198_v50  ;;  %1201 = vst [vmem:[%s8645_s7 + $0x7cc] sm:$0xf] %v1200_v51  ;;  %v1202_v52 = vld [vmem:[%s8641_s6 + $0x1f40] sm:$0xf] }
 0x15f   : > { %v1204_v53 = vld [vmem:[%s8641_s6 + $0x1f50] sm:$0xf]  ;;  %v1206_v54 = vld [vmem:[%s8641_s6 + $0x1f60] sm:$0xf]  ;;  %1203 = vst [vmem:[%s8645_s7 + $0x7d0] sm:$0xf] %v1202_v52 }
 0x160   : > { %1205 = vst [vmem:[%s8645_s7 + $0x7d4] sm:$0xf] %v1204_v53  ;;  %1207 = vst [vmem:[%s8645_s7 + $0x7d8] sm:$0xf] %v1206_v54  ;;  %v1208_v55 = vld [vmem:[%s8641_s6 + $0x1f70] sm:$0xf] }
 0x161   : > { %v1210_v56 = vld [vmem:[%s8641_s6 + $0x1f80] sm:$0xf]  ;;  %v1212_v57 = vld [vmem:[%s8641_s6 + $0x1f90] sm:$0xf]  ;;  %1209 = vst [vmem:[%s8645_s7 + $0x7dc] sm:$0xf] %v1208_v55 }
 0x162   : > { %1211 = vst [vmem:[%s8645_s7 + $0x7e0] sm:$0xf] %v1210_v56  ;;  %1213 = vst [vmem:[%s8645_s7 + $0x7e4] sm:$0xf] %v1212_v57  ;;  %v1214_v58 = vld [vmem:[%s8641_s6 + $0x1fa0] sm:$0xf] }
 0x163   : > { %v1216_v59 = vld [vmem:[%s8641_s6 + $0x1fb0] sm:$0xf]  ;;  %v1218_v60 = vld [vmem:[%s8641_s6 + $0x1fc0] sm:$0xf]  ;;  %1215 = vst [vmem:[%s8645_s7 + $0x7e8] sm:$0xf] %v1214_v58 }
 0x164   : > { %1217 = vst [vmem:[%s8645_s7 + $0x7ec] sm:$0xf] %v1216_v59  ;;  %1219 = vst [vmem:[%s8645_s7 + $0x7f0] sm:$0xf] %v1218_v60  ;;  %v1220_v61 = vld [vmem:[%s8641_s6 + $0x1fd0] sm:$0xf] }
 0x165   : > { %v1222_v62 = vld [vmem:[%s8641_s6 + $0x1fe0] sm:$0xf]  ;;  %v1224_v63 = vld [vmem:[%s8641_s6 + $0x1ff0] sm:$0xf]  ;;  %1221 = vst [vmem:[%s8645_s7 + $0x7f4] sm:$0xf] %v1220_v61 }
 0x166   : > { %1223 = vst [vmem:[%s8645_s7 + $0x7f8] sm:$0xf] %v1222_v62  ;;  %1225 = vst [vmem:[%s8645_s7 + $0x7fc] sm:$0xf] %v1224_v63 }
 0x167 PF: > { %p7556_p5 = scmp.ge.s32.totalorder %s8568_s20, 1  ;;  %p4364_p6 = scmp.lt.s32.totalorder %s8568_s20, 5 }
 0x169   : > { %p4365_p7 = pnand %p7556_p5, %p4364_p6 }
 0x16a   : > { %s4371_s8 = sand.u32 (!%p4365_p7), 1, %s8560_s18   ;;  %p4401_p8 = scmp.lt.s32.totalorder (!%p4365_p7), %s8621_s21, 3 }
 0x16b   : > { %4368 = sbr.rel (%p4365_p7) target bundleno = 1109 (0x455), region = 88  ;;  %s7557_s9 = sshll.u32 (!%p4365_p7), %s4371_s8, 11 }
 0x16c   : > { %s7558_s10 = sshll.u32 (!%p4365_p7), %s8621_s21, 4  ;;  %s9686_s23 = scalar_lea.vmem (!%p4365_p7), [#allocation3], %s7557_s9 }
 0x16d   : > { %p4405_p9 = scmp.lt.s32.totalorder (!%p4365_p7), %s7558_s10, 63  ;;  %p7560_p10 = scmp.ne.s32.totalorder (!%p4365_p7), %s8621_s21, 0 }
 0x172   : > { %s9675_s11 = scalar_select %p4401_p8, %s8621_s21, 3 }
 0x173   : > { %s10063_s10 = smov (!%p4405_p9, %s7558_s10), 63  ;;  %4414 = sbr.rel (%p7560_p10) target bundleno = 378 (0x17a), region = 96 }
 0x174   : > { %s4403_s14 = scalar_lea.vmem %s10055_s2, %s9675_s11  ;;  %s7559_s15 = sshll.u32 %s10063_s10, 2  ;;  %v8570_v0 = vmov (!%p7560_p10), 0.0  }
 0x175   : > { %s9684_s20 = scalar_lea.vmem %s10056_s3, %s7559_s15  ;;  %4415 = vst [vmem:[#allocation2] sm:$0x3] (!%p7560_p10), %v8570_v0 }
 0x17a PF: > { %v8248_v1 = vld [vmem:[%s9686_s23 + $0x40] sm:$0xff]   ;;  %v8252_v5 = vld [vmem:[%s9686_s23 + $0x48] sm:$0xff]   ;;  %v8256_v9 = vld [vmem:[%s9686_s23 + $0x50] sm:$0xff]   ;;  %v4947_v29 = vlaneseq  ;;  %v8571_v37 = vmov 1966171168   ;;  %vm8573_vm0 = vmmov 0  }
 0x17b   : > { %v8249_v2 = vld [vmem:[%s9686_s23 + $0xc0] sm:$0xff]   ;;  %7832 = vmatprep.subr.bf16.mxu0 %v8248_v1  ;;  %v8253_v6 = vld [vmem:[%s9686_s23 + $0xc8] sm:$0xff]   ;;  %v8257_v10 = vld [vmem:[%s9686_s23 + $0xd0] sm:$0xff]   ;;  %v4945_v38 = vunpack.c.l.s4 %v8571_v37  ;;  %p7826_p11 = scmp.ne.s32.totalorder %s8621_s21, 3 }
 0x17c   : > { %v8250_v3 = vld [vmem:[%s9686_s23] sm:$0xff]   ;;  %7854 = vmatprep.subr.bf16.mxu1 %v8249_v2  ;;  %v8254_v7 = vld [vmem:[%s9686_s23 + $0x8] sm:$0xff]   ;;  %v8258_v11 = vld [vmem:[%s9686_s23 + $0x10] sm:$0xff]   ;;  %v4948_v34 = vshrl.u32 %v4947_v29, 7 }
 0x17d   : > { %v8251_v4 = vld [vmem:[%s9686_s23 + $0x80] sm:$0xff]   ;;  %7833 = vmatpush3.bf16.msra.mxu0 %v8250_v3  ;;  %v8255_v8 = vld [vmem:[%s9686_s23 + $0x88] sm:$0xff]   ;;  %v8259_v12 = vld [vmem:[%s9686_s23 + $0x90] sm:$0xff]   ;;  %v4946_v41 = vunpack.c.0.s8 %v4945_v38 }
 0x17e   : > { %7855 = vmatpush3.bf16.msra.mxu1 %v8251_v4  ;;  %7834 = vmatprep.subr.bf16.mxu0 %v8252_v5  ;;  %v8260_v13 = vld [vmem:[%s9686_s23 + $0x58] sm:$0xff]   ;;  %v8264_v17 = vld [vmem:[%s9686_s23 + $0x60] sm:$0xff]   ;;  %v8268_v21 = vld [vmem:[%s9686_s23 + $0x68] sm:$0xff]  }
 0x17f   : > { %7856 = vmatprep.subr.bf16.mxu1 %v8253_v6  ;;  %v8261_v14 = vld [vmem:[%s9686_s23 + $0xd8] sm:$0xff]   ;;  %v8265_v18 = vld [vmem:[%s9686_s23 + $0xe0] sm:$0xff]   ;;  %v8269_v22 = vld [vmem:[%s9686_s23 + $0xe8] sm:$0xff]   ;;  %v9726_v42 = vsub.s32 %v4946_v41, %v4948_v34 }
 0x180   : > { %v8262_v15 = vld [vmem:[%s9686_s23 + $0x18] sm:$0xff]   ;;  %v8266_v19 = vld [vmem:[%s9686_s23 + $0x20] sm:$0xff]   ;;  %v8270_v23 = vld [vmem:[%s9686_s23 + $0x28] sm:$0xff]  }
 0x181   : > { %7835 = vmatpush3.bf16.msra.mxu0 %v8254_v7  ;;  %v8263_v16 = vld [vmem:[%s9686_s23 + $0x98] sm:$0xff]   ;;  %v8267_v20 = vld [vmem:[%s9686_s23 + $0xa0] sm:$0xff]   ;;  %v8271_v24 = vld [vmem:[%s9686_s23 + $0xa8] sm:$0xff]  }
 0x182   : > { %7857 = vmatpush3.bf16.msra.mxu1 %v8255_v8  ;;  %7836 = vmatprep.subr.bf16.mxu0 %v8256_v9  ;;  %v8272_v25 = vld [vmem:[%s9686_s23 + $0x70] sm:$0xff]   ;;  %v8276_v30 = vld [vmem:[%s9686_s23 + $0x78] sm:$0xff]   ;;  %v8281_v36 = vld [vmem:[%s9686_s23 + $0x140] sm:$0xff]  }
 0x183   : > { %7858 = vmatprep.subr.bf16.mxu1 %v8257_v10  ;;  %v8273_v26 = vld [vmem:[%s9686_s23 + $0xf0] sm:$0xff]   ;;  %v8277_v31 = vld [vmem:[%s9686_s23 + $0xf8] sm:$0xff]   ;;  %v8282_v39 = vld [vmem:[%s9686_s23 + $0x1c0] sm:$0xff]  }
 0x184   : > { %v8274_v27 = vld [vmem:[%s9686_s23 + $0x30] sm:$0xff]   ;;  %v8278_v32 = vld [vmem:[%s9686_s23 + $0x38] sm:$0xff]   ;;  %v8283_v48 = vld [vmem:[%s9686_s23 + $0x100] sm:$0xff]  }
 0x185   : > { %7837 = vmatpush3.bf16.msra.mxu0 %v8258_v11  ;;  %v8275_v28 = vld [vmem:[%s9686_s23 + $0xb0] sm:$0xff]   ;;  %v8279_v33 = vld [vmem:[%s9686_s23 + $0xb8] sm:$0xff]   ;;  %v8284_v50 = vld [vmem:[%s9686_s23 + $0x180] sm:$0xff]  }
 0x186   : > { %7859 = vmatpush3.bf16.msra.mxu1 %v8259_v12  ;;  %7838 = vmatprep.subr.bf16.mxu0 %v8260_v13  ;;  %v4416_v35 = vld [vmem:[%s10053_s0] sm:$0xff]  ;;  %v8285_v53 = vld [vmem:[%s9686_s23 + $0x148] sm:$0xff]   ;;  %v8289_v59 = vld [vmem:[%s9686_s23 + $0x150] sm:$0xff]  }
 0x187   : > { %7860 = vmatprep.subr.bf16.mxu1 %v8261_v14  ;;  %v4943_v40 = vcombine.high %v4416_v35, %v4416_v35  ;;  %v4950_v43 = vrot.slane %v4416_v35, %v9726_v42  ;;  %v8286_v55 = vld [vmem:[%s9686_s23 + $0x1c8] sm:$0xff]   ;;  %v8290_v60 = vld [vmem:[%s9686_s23 + $0x1d0] sm:$0xff]   ;;  %v8293_v63 = vld [vmem:[%s9686_s23 + $0x158] sm:$0xff]  }
 0x188   : > { %v8287_v56 = vld [vmem:[%s9686_s23 + $0x108] sm:$0xff]   ;;  %v8291_v61 = vld [vmem:[%s9686_s23 + $0x110] sm:$0xff]   ;;  %v8294_v0 = vld [vmem:[%s9686_s23 + $0x1d8] sm:$0xff]  }
 0x189   : > { %7839 = vmatpush3.bf16.msra.mxu0 %v8262_v15  ;;  %v9730_v44 = vrot.slane %v4943_v40, %v9726_v42  ;;  %v4958_v45 = vcombine.high %v4950_v43, %v4950_v43  ;;  %v4966_v46 = vrot.slane %v4950_v43, %v9726_v42  ;;  %v8288_v58 = vld [vmem:[%s9686_s23 + $0x188] sm:$0xff]   ;;  %v8292_v62 = vld [vmem:[%s9686_s23 + $0x190] sm:$0xff]   ;;  %v8295_v1 = vld [vmem:[%s9686_s23 + $0x118] sm:$0xff]  }
 0x18a   : > { %7861 = vmatpush3.bf16.msra.mxu1 %v8263_v16  ;;  %7840 = vmatprep.subr.bf16.mxu0 %v8264_v17  ;;  %v8296_v2 = vld [vmem:[%s9686_s23 + $0x198] sm:$0xff]   ;;  %v8297_v3 = vld [vmem:[%s9686_s23 + $0x160] sm:$0xff]   ;;  %v8301_v7 = vld [vmem:[%s9686_s23 + $0x168] sm:$0xff]  }
 0x18b   : > { %7862 = vmatprep.subr.bf16.mxu1 %v8265_v18  ;;  %v4959_v47 = vcombine.high %v9730_v44, %v9730_v44  ;;  %v4980_v49 = vrot.slane %v4958_v45, %v9726_v42  ;;  %v4988_v52 = vcombine.high %v4966_v46, %v4966_v46  ;;  %v8298_v4 = vld [vmem:[%s9686_s23 + $0x1e0] sm:$0xff]   ;;  %v8302_v8 = vld [vmem:[%s9686_s23 + $0x1e8] sm:$0xff]   ;;  %v8305_v11 = vld [vmem:[%s9686_s23 + $0x170] sm:$0xff]  }
 0x18c   : > { %v8299_v5 = vld [vmem:[%s9686_s23 + $0x120] sm:$0xff]   ;;  %v8303_v9 = vld [vmem:[%s9686_s23 + $0x128] sm:$0xff]   ;;  %v8306_v12 = vld [vmem:[%s9686_s23 + $0x1f0] sm:$0xff]  }
 0x18d   : > { %7841 = vmatpush3.bf16.msra.mxu0 %v8266_v19  ;;  %v4987_v51 = vrot.slane %v4959_v47, %v9726_v42  ;;  %6739 = vmatprep.mubr.bf16.mxu0 %v4980_v49  ;;  %v4990_v54 = vcombine.high %v4980_v49, %v4980_v49  ;;  %v8300_v6 = vld [vmem:[%s9686_s23 + $0x1a0] sm:$0xff]   ;;  %v8304_v10 = vld [vmem:[%s9686_s23 + $0x1a8] sm:$0xff]   ;;  %v8307_v13 = vld [vmem:[%s9686_s23 + $0x130] sm:$0xff]   ;;  %v4973_v19 = vrot.slane %v9730_v44, %v9726_v42 }
 0x18e   : > { %7863 = vmatpush3.bf16.msra.mxu1 %v8267_v20  ;;  %7842 = vmatprep.subr.bf16.mxu0 %v8268_v21  ;;  %v8308_v14 = vld [vmem:[%s9686_s23 + $0x1b0] sm:$0xff]   ;;  %v8309_v15 = vld [vmem:[%s9686_s23 + $0x178] sm:$0xff]   ;;  %v8313_v20 = vld [vmem:[%s9686_s23 + $0x240] sm:$0xff]  }
 0x18f   : > { %7864 = vmatprep.subr.bf16.mxu1 %v8269_v22  ;;  %v4991_v57 = vcombine.high %v4987_v51, %v4987_v51  ;;  %6779 = vmatprep.mubr.bf16.mxu1 %v4990_v54  ;;  %v8310_v16 = vld [vmem:[%s9686_s23 + $0x1f8] sm:$0xff]   ;;  %v8314_v21 = vld [vmem:[%s9686_s23 + $0x2c0] sm:$0xff]   ;;  %v8321_v29 = vld [vmem:[%s9686_s23 + $0x250] sm:$0xff]  }
 0x190   : > { %v8311_v17 = vld [vmem:[%s9686_s23 + $0x138] sm:$0xff]   ;;  %v8315_v22 = vld [vmem:[%s9686_s23 + $0x200] sm:$0xff]   ;;  %v8333_v41 = vld [vmem:[%s9686_s23 + $0x268] sm:$0xff]  }
 0x191   : > { %7843 = vmatpush3.bf16.msra.mxu0 %v8270_v23  ;;  %v8312_v18 = vld [vmem:[%s9686_s23 + $0x1b8] sm:$0xff]   ;;  %v8316_v23 = vld [vmem:[%s9686_s23 + $0x280] sm:$0xff]   ;;  %v8334_v43 = vld [vmem:[%s9686_s23 + $0x2e8] sm:$0xff]  }
 0x192   : > { %7865 = vmatpush3.bf16.msra.mxu1 %v8271_v24  ;;  %7844 = vmatprep.subr.bf16.mxu0 %v8272_v25  ;;  %v4989_v24 = vcombine.high %v4973_v19, %v4973_v19  ;;  %v8317_v25 = vld [vmem:[%s9686_s23 + $0x248] sm:$0xff]   ;;  %v8326_v34 = vld [vmem:[%s9686_s23 + $0x2d8] sm:$0xff]   ;;  %v8329_v37 = vld [vmem:[%s9686_s23 + $0x260] sm:$0xff]  }
 0x193   : > { %7866 = vmatprep.subr.bf16.mxu1 %v8273_v26  ;;  %v8318_v26 = vld [vmem:[%s9686_s23 + $0x2c8] sm:$0xff]   ;;  %v8327_v35 = vld [vmem:[%s9686_s23 + $0x218] sm:$0xff]   ;;  %v8330_v38 = vld [vmem:[%s9686_s23 + $0x2e0] sm:$0xff]  }
 0x194   : > { %v8332_v40 = vld [vmem:[%s9686_s23 + $0x2a0] sm:$0xff]   ;;  %v8335_v44 = vld [vmem:[%s9686_s23 + $0x228] sm:$0xff]  }
 0x195   : > { %7845 = vmatpush3.bf16.msra.mxu0 %v8274_v27  ;;  %v8319_v27 = vld [vmem:[%s9686_s23 + $0x208] sm:$0xff]  }
 0x196   : > { %7867 = vmatpush3.bf16.msra.mxu1 %v8275_v28  ;;  %7846 = vmatprep.subr.bf16.mxu0 %v8276_v30  ;;  %v8320_v28 = vld [vmem:[%s9686_s23 + $0x288] sm:$0xff]   ;;  %v8322_v30 = vld [vmem:[%s9686_s23 + $0x2d0] sm:$0xff]  }
 0x197   : > { %7868 = vmatprep.subr.bf16.mxu1 %v8277_v31  ;;  %v8323_v31 = vld [vmem:[%s9686_s23 + $0x210] sm:$0xff]   ;;  %v8336_v45 = vld [vmem:[%s9686_s23 + $0x2a8] sm:$0xff]  }
 0x198   : > { %v4417_v47 = vld [vmem:[%s10053_s0 + $0x8] sm:$0xff] }
 0x199   : > { %7847 = vmatpush3.bf16.msra.mxu0 %v8278_v32  ;;  %v8324_v32 = vld [vmem:[%s9686_s23 + $0x290] sm:$0xff]   ;;  %v4999_v49 = vrot.slane %v4417_v47, %v9726_v42 }
 0x19a   : > { %7869 = vmatpush3.bf16.msra.mxu1 %v8279_v33  ;;  %7876 = vmatprep.subr.bf16.mxu0 %v8281_v36  ;;  %v8325_v33 = vld [vmem:[%s9686_s23 + $0x258] sm:$0xff]  }
 0x19b   : > { %7898 = vmatprep.subr.bf16.mxu1 %v8282_v39  ;;  %v8328_v36 = vld [vmem:[%s9686_s23 + $0x298] sm:$0xff]   ;;  %v8331_v39 = vld [vmem:[%s9686_s23 + $0x220] sm:$0xff]  }
 0x19c   : > { %6740 = vmatmul.mubr.bf16.vlgmr.msra.gmra.mrb[0].mxu0 %v4966_v46  ;;  %v8337_v46 = vld [vmem:[%s9686_s23 + $0x270] sm:$0xff]  }
 0x19d   : > { %7877 = vmatpush3.bf16.msra.mxu0 %v8283_v48  ;;  %6780 = vmatmul.mubr.bf16.vlgmr.msra.gmra.mrb[0].mxu1 %v4988_v52  ;;  %v8338_v48 = vld [vmem:[%s9686_s23 + $0x2f0] sm:$0xff]  }
 0x19e   : > { %7878 = vmatprep.subr.bf16.mxu0 %v8285_v53  ;;  %7899 = vmatpush3.bf16.msra.mxu1 %v8284_v50  ;;  %v4992_v50 = vcombine.high %v4417_v47, %v4417_v47  ;;  %v8340_v52 = vld [vmem:[%s9686_s23 + $0x2b0] sm:$0xff]   ;;  %v5007_v53 = vcombine.high %v4999_v49, %v4999_v49 }
 0x19f   : > { %6819 = vmatprep.mubr.bf16.mxu0 %v4987_v51  ;;  %7900 = vmatprep.subr.bf16.mxu1 %v8286_v55  ;;  %v8339_v51 = vld [vmem:[%s9686_s23 + $0x230] sm:$0xff]   ;;  %v8341_v55 = vld [vmem:[%s9686_s23 + $0x278] sm:$0xff]  }
 0x1a0   : > { %6859 = vmatprep.mubr.bf16.mxu1 %v4991_v57  ;;  %v9802_v54 = vrot.slane %v4992_v50, %v9726_v42  ;;  %v5029_v57 = vrot.slane %v5007_v53, %v9726_v42  ;;  %v8388_v47 = vld [vmem:[%s9686_s23 + $0x410] sm:$0xff]   ;;  %v8391_v50 = vld [vmem:[%s9686_s23 + $0x4d8] sm:$0xff]   ;;  %v8394_v53 = vld [vmem:[%s9686_s23 + $0x460] sm:$0xff]  }
 0x1a1   : > { %7879 = vmatpush3.bf16.msra.mxu0 %v8287_v56  ;;  %v8342_v56 = vld [vmem:[%s9686_s23 + $0x2f8] sm:$0xff]  }
 0x1a2   : > { %7880 = vmatprep.subr.bf16.mxu0 %v8289_v59  ;;  %7901 = vmatpush3.bf16.msra.mxu1 %v8288_v58  ;;  %v5008_v58 = vcombine.high %v9802_v54, %v9802_v54  ;;  %v8343_v59 = vld [vmem:[%s9686_s23 + $0x238] sm:$0xff]  }
 0x1a3   : > { %7902 = vmatprep.subr.bf16.mxu1 %v8290_v60  ;;  %v8344_v60 = vld [vmem:[%s9686_s23 + $0x2b8] sm:$0xff]  }
 0x1a5   : > { %7881 = vmatpush3.bf16.msra.mxu0 %v8291_v61  ;;  %v5039_v61 = vcombine.high %v5029_v57, %v5029_v57 }
 0x1a6   : > { %7882 = vmatprep.subr.bf16.mxu0 %v8293_v63  ;;  %7903 = vmatpush3.bf16.msra.mxu1 %v8292_v62  ;;  %v5015_v62 = vrot.slane %v4999_v49, %v9726_v42  ;;  %v8345_v63 = vld [vmem:[%s9686_s23 + $0x340] sm:$0xff]   ;;  %v8390_v49 = vld [vmem:[%s9686_s23 + $0x458] sm:$0xff]  }
 0x1a7   : > { %7904 = vmatprep.subr.bf16.mxu1 %v8294_v0  ;;  %v8346_v0 = vld [vmem:[%s9686_s23 + $0x3c0] sm:$0xff]  }
 0x1a9   : > { %7883 = vmatpush3.bf16.msra.mxu0 %v8295_v1  ;;  %v5036_v1 = vrot.slane %v5008_v58, %v9726_v42  ;;  %v8399_v58 = vld [vmem:[%s9686_s23 + $0x4e8] sm:$0xff]  }
 0x1aa   : > { %7884 = vmatprep.subr.bf16.mxu0 %v8297_v3  ;;  %7905 = vmatpush3.bf16.msra.mxu1 %v8296_v2  ;;  %v8347_v2 = vld [vmem:[%s9686_s23 + $0x300] sm:$0xff]  }
 0x1ab   : > { %7906 = vmatprep.subr.bf16.mxu1 %v8298_v4  ;;  %v8348_v3 = vld [vmem:[%s9686_s23 + $0x380] sm:$0xff]   ;;  %v5037_v4 = vcombine.high %v5015_v62, %v5015_v62 }
 0x1ad   : > { %7885 = vmatpush3.bf16.msra.mxu0 %v8299_v5  ;;  %v8349_v5 = vld [vmem:[%s9686_s23 + $0x348] sm:$0xff]  }
 0x1ae   : > { %7886 = vmatprep.subr.bf16.mxu0 %v8301_v7  ;;  %7907 = vmatpush3.bf16.msra.mxu1 %v8300_v6  ;;  %v8350_v6 = vld [vmem:[%s9686_s23 + $0x3c8] sm:$0xff]   ;;  %v5040_v7 = vcombine.high %v5036_v1, %v5036_v1 }
 0x1af   : > { %7908 = vmatprep.subr.bf16.mxu1 %v8302_v8  ;;  %v8351_v8 = vld [vmem:[%s9686_s23 + $0x308] sm:$0xff]  }
 0x1b1   : > { %7887 = vmatpush3.bf16.msra.mxu0 %v8303_v9  ;;  %v8352_v9 = vld [vmem:[%s9686_s23 + $0x388] sm:$0xff]  }
 0x1b2   : > { %7888 = vmatprep.subr.bf16.mxu0 %v8305_v11  ;;  %7909 = vmatpush3.bf16.msra.mxu1 %v8304_v10  ;;  %v8353_v10 = vld [vmem:[%s9686_s23 + $0x350] sm:$0xff]  }
 0x1b3   : > { %7910 = vmatprep.subr.bf16.mxu1 %v8306_v12  ;;  %v8354_v11 = vld [vmem:[%s9686_s23 + $0x3d0] sm:$0xff]  }
 0x1b4   : > { %v8355_v12 = vld [vmem:[%s9686_s23 + $0x310] sm:$0xff]  }
 0x1b5   : > { %7889 = vmatpush3.bf16.msra.mxu0 %v8307_v13  ;;  %v8356_v13 = vld [vmem:[%s9686_s23 + $0x390] sm:$0xff]  }
 0x1b6   : > { %7890 = vmatprep.subr.bf16.mxu0 %v8309_v15  ;;  %7911 = vmatpush3.bf16.msra.mxu1 %v8308_v14  ;;  %v8357_v14 = vld [vmem:[%s9686_s23 + $0x358] sm:$0xff]  }
 0x1b7   : > { %7912 = vmatprep.subr.bf16.mxu1 %v8310_v16  ;;  %v8358_v15 = vld [vmem:[%s9686_s23 + $0x3d8] sm:$0xff]  }
 0x1b8   : > { %v8359_v16 = vld [vmem:[%s9686_s23 + $0x318] sm:$0xff]  }
 0x1b9   : > { %7891 = vmatpush3.bf16.msra.mxu0 %v8311_v17  ;;  %v8360_v17 = vld [vmem:[%s9686_s23 + $0x398] sm:$0xff]  }
 0x1ba   : > { %7920 = vmatprep.subr.bf16.mxu0 %v8313_v20  ;;  %7913 = vmatpush3.bf16.msra.mxu1 %v8312_v18  ;;  %v8361_v18 = vld [vmem:[%s9686_s23 + $0x360] sm:$0xff]  }
 0x1bb   : > { %7942 = vmatprep.subr.bf16.mxu1 %v8314_v21  ;;  %v8363_v20 = vld [vmem:[%s9686_s23 + $0x320] sm:$0xff]  }
 0x1bc   : > { %6820 = vmatmul.mubr.bf16.vlgmr.msra.gmra.mrb[4].mxu0 %v4973_v19  ;;  %v8362_v19 = vld [vmem:[%s9686_s23 + $0x3e0] sm:$0xff]  }
 0x1bd   : > { %7921 = vmatpush3.bf16.msra.mxu0 %v8315_v22  ;;  %6860 = vmatmul.mubr.bf16.vlgmr.msra.gmra.mrb[4].mxu1 %v4989_v24  ;;  %v8364_v21 = vld [vmem:[%s9686_s23 + $0x3a0] sm:$0xff]   ;;  %v8365_v22 = vld [vmem:[%s9686_s23 + $0x368] sm:$0xff]  }
 0x1be   : > { %7922 = vmatprep.subr.bf16.mxu0 %v8317_v25  ;;  %7943 = vmatpush3.bf16.msra.mxu1 %v8316_v23  ;;  %v8366_v23 = vld [vmem:[%s9686_s23 + $0x3e8] sm:$0xff]  }
 0x1bf   : > { %7944 = vmatprep.subr.bf16.mxu1 %v8318_v26  ;;  %6899 = vmatprep.mubr.bf16.mxu0 %v5029_v57  ;;  %v8367_v24 = vld [vmem:[%s9686_s23 + $0x328] sm:$0xff]   ;;  %v8369_v26 = vld [vmem:[%s9686_s23 + $0x370] sm:$0xff]  }
 0x1c0   : > { %6939 = vmatprep.mubr.bf16.mxu1 %v5039_v61  ;;  %v8368_v25 = vld [vmem:[%s9686_s23 + $0x3a8] sm:$0xff]   ;;  %v8402_v61 = vld [vmem:[%s9686_s23 + $0x470] sm:$0xff]  }
 0x1c1   : > { %7923 = vmatpush3.bf16.msra.mxu0 %v8319_v27  ;;  %v8370_v27 = vld [vmem:[%s9686_s23 + $0x3f0] sm:$0xff]   ;;  %v8398_v57 = vld [vmem:[%s9686_s23 + $0x468] sm:$0xff]  }
 0x1c2   : > { %7924 = vmatprep.subr.bf16.mxu0 %v8321_v29  ;;  %7945 = vmatpush3.bf16.msra.mxu1 %v8320_v28  ;;  %v8371_v28 = vld [vmem:[%s9686_s23 + $0x330] sm:$0xff]  }
 0x1c3   : > { %7946 = vmatprep.subr.bf16.mxu1 %v8322_v30  ;;  %v8372_v29 = vld [vmem:[%s9686_s23 + $0x3b0] sm:$0xff]   ;;  %v8373_v30 = vld [vmem:[%s9686_s23 + $0x378] sm:$0xff]  }
 0x1c5   : > { %7925 = vmatpush3.bf16.msra.mxu0 %v8323_v31  ;;  %v8374_v31 = vld [vmem:[%s9686_s23 + $0x3f8] sm:$0xff]  }
 0x1c6   : > { %7926 = vmatprep.subr.bf16.mxu0 %v8325_v33  ;;  %7947 = vmatpush3.bf16.msra.mxu1 %v8324_v32  ;;  %v8375_v32 = vld [vmem:[%s9686_s23 + $0x338] sm:$0xff]  }
 0x1c7   : > { %7948 = vmatprep.subr.bf16.mxu1 %v8326_v34  ;;  %v8376_v33 = vld [vmem:[%s9686_s23 + $0x3b8] sm:$0xff]   ;;  %v5022_v34 = vrot.slane %v9802_v54, %v9726_v42  ;;  %v8395_v54 = vld [vmem:[%s9686_s23 + $0x4e0] sm:$0xff]  }
 0x1c9   : > { %7927 = vmatpush3.bf16.msra.mxu0 %v8327_v35  ;;  %v8378_v35 = vld [vmem:[%s9686_s23 + $0x440] sm:$0xff]  }
 0x1ca   : > { %7928 = vmatprep.subr.bf16.mxu0 %v8329_v37  ;;  %7949 = vmatpush3.bf16.msra.mxu1 %v8328_v36  ;;  %v8379_v36 = vld [vmem:[%s9686_s23 + $0x4c0] sm:$0xff]  }
 0x1cb   : > { %7950 = vmatprep.subr.bf16.mxu1 %v8330_v38  ;;  %v8380_v37 = vld [vmem:[%s9686_s23 + $0x400] sm:$0xff]  }
 0x1cc   : > { %v8381_v38 = vld [vmem:[%s9686_s23 + $0x480] sm:$0xff]  }
 0x1cd   : > { %7929 = vmatpush3.bf16.msra.mxu0 %v8331_v39  ;;  %v5038_v39 = vcombine.high %v5022_v34, %v5022_v34 }
 0x1ce   : > { %7930 = vmatprep.subr.bf16.mxu0 %v8333_v41  ;;  %7951 = vmatpush3.bf16.msra.mxu1 %v8332_v40  ;;  %v8382_v40 = vld [vmem:[%s9686_s23 + $0x448] sm:$0xff]  }
 0x1cf   : > { %7952 = vmatprep.subr.bf16.mxu1 %v8334_v43  ;;  %v8383_v41 = vld [vmem:[%s9686_s23 + $0x4c8] sm:$0xff]  }
 0x1d0   : > { %v8384_v43 = vld [vmem:[%s9686_s23 + $0x408] sm:$0xff]  }
 0x1d1   : > { %7931 = vmatpush3.bf16.msra.mxu0 %v8335_v44  ;;  %v8385_v44 = vld [vmem:[%s9686_s23 + $0x488] sm:$0xff]  }
 0x1d2   : > { %7932 = vmatprep.subr.bf16.mxu0 %v8337_v46  ;;  %7953 = vmatpush3.bf16.msra.mxu1 %v8336_v45  ;;  %v8386_v45 = vld [vmem:[%s9686_s23 + $0x450] sm:$0xff]  }
 0x1d3   : > { %7954 = vmatprep.subr.bf16.mxu1 %v8338_v48  ;;  %v8387_v46 = vld [vmem:[%s9686_s23 + $0x4d0] sm:$0xff]  }
 0x1d4   : > { %v8389_v48 = vld [vmem:[%s9686_s23 + $0x490] sm:$0xff]  }
 0x1d5   : > { %7933 = vmatpush3.bf16.msra.mxu0 %v8339_v51  ;;  %v8392_v51 = vld [vmem:[%s9686_s23 + $0x418] sm:$0xff]  }
 0x1d6   : > { %7934 = vmatprep.subr.bf16.mxu0 %v8341_v55  ;;  %7955 = vmatpush3.bf16.msra.mxu1 %v8340_v52  ;;  %v8393_v52 = vld [vmem:[%s9686_s23 + $0x498] sm:$0xff]   ;;  %v8396_v55 = vld [vmem:[%s9686_s23 + $0x420] sm:$0xff]  }
 0x1d7   : > { %7956 = vmatprep.subr.bf16.mxu1 %v8342_v56  ;;  %v8397_v56 = vld [vmem:[%s9686_s23 + $0x4a0] sm:$0xff]  }
 0x1d9   : > { %7935 = vmatpush3.bf16.msra.mxu0 %v8343_v59  ;;  %v8400_v59 = vld [vmem:[%s9686_s23 + $0x428] sm:$0xff]  }
 0x1da   : > { %7964 = vmatprep.subr.bf16.mxu0 %v8345_v63  ;;  %7957 = vmatpush3.bf16.msra.mxu1 %v8344_v60  ;;  %v8401_v60 = vld [vmem:[%s9686_s23 + $0x4a8] sm:$0xff]   ;;  %v8403_v63 = vld [vmem:[%s9686_s23 + $0x4f0] sm:$0xff]  }
 0x1db   : > { %7986 = vmatprep.subr.bf16.mxu1 %v8346_v0 }
 0x1dc   : > { %6900 = vmatmul.mubr.bf16.vlgmr.msra.gmra.mrb[8].mxu0 %v5015_v62  ;;  %v4418_v62 = vld [vmem:[%s10053_s0 + $0x10] sm:$0xff] }
 0x1dd   : > { %7965 = vmatpush3.bf16.msra.mxu0 %v8347_v2  ;;  %6979 = vmatprep.mubr.bf16.mxu0 %v5036_v1  ;;  %v5048_v0 = vrot.slane %v4418_v62, %v9726_v42  ;;  %v5041_v1 = vcombine.high %v4418_v62, %v4418_v62  ;;  %v8404_v2 = vld [vmem:[%s9686_s23 + $0x430] sm:$0xff]  }
 0x1de   : > { %6940 = vmatmul.mubr.bf16.vlgmr.msra.gmra.mrb[8].mxu1 %v5037_v4  ;;  %7966 = vmatprep.subr.bf16.mxu0 %v8349_v5  ;;  %v8453_v62 = vld [vmem:[%s9686_s23 + $0x610] sm:$0xff]  }
 0x1df   : > { %7987 = vmatpush3.bf16.msra.mxu1 %v8348_v3  ;;  %7019 = vmatprep.mubr.bf16.mxu1 %v5040_v7  ;;  %v8405_v3 = vld [vmem:[%s9686_s23 + $0x4b0] sm:$0xff]   ;;  %v5056_v4 = vcombine.high %v5048_v0, %v5048_v0  ;;  %v9880_v5 = vrot.slane %v5041_v1, %v9726_v42  ;;  %v8407_v7 = vld [vmem:[%s9686_s23 + $0x4f8] sm:$0xff]  }
 0x1e0   : > { %7988 = vmatprep.subr.bf16.mxu1 %v8350_v6  ;;  %v8406_v6 = vld [vmem:[%s9686_s23 + $0x478] sm:$0xff]  }
 0x1e1   : > { %7967 = vmatpush3.bf16.msra.mxu0 %v8351_v8  ;;  %v5078_v8 = vrot.slane %v5056_v4, %v9726_v42  ;;  %v8456_v1 = vld [vmem:[%s9686_s23 + $0x6d8] sm:$0xff]   ;;  %v8459_v4 = vld [vmem:[%s9686_s23 + $0x660] sm:$0xff]  }
 0x1e2   : > { %7968 = vmatprep.subr.bf16.mxu0 %v8353_v10  ;;  %v8408_v10 = vld [vmem:[%s9686_s23 + $0x438] sm:$0xff]  }
 0x1e3   : > { %7989 = vmatpush3.bf16.msra.mxu1 %v8352_v9  ;;  %v5057_v9 = vcombine.high %v9880_v5, %v9880_v5 }
 0x1e4   : > { %7990 = vmatprep.subr.bf16.mxu1 %v8354_v11  ;;  %v8409_v11 = vld [vmem:[%s9686_s23 + $0x4b8] sm:$0xff]  }
 0x1e5   : > { %7969 = vmatpush3.bf16.msra.mxu0 %v8355_v12  ;;  %v5088_v12 = vcombine.high %v5078_v8, %v5078_v8 }
 0x1e6   : > { %7970 = vmatprep.subr.bf16.mxu0 %v8357_v14  ;;  %v8410_v14 = vld [vmem:[%s9686_s23 + $0x540] sm:$0xff]  }
 0x1e7   : > { %7991 = vmatpush3.bf16.msra.mxu1 %v8356_v13  ;;  %v5064_v13 = vrot.slane %v5048_v0, %v9726_v42  ;;  %v8455_v0 = vld [vmem:[%s9686_s23 + $0x658] sm:$0xff]  }
 0x1e8   : > { %7992 = vmatprep.subr.bf16.mxu1 %v8358_v15  ;;  %v8411_v15 = vld [vmem:[%s9686_s23 + $0x5c0] sm:$0xff]  }
 0x1e9   : > { %7971 = vmatpush3.bf16.msra.mxu0 %v8359_v16  ;;  %v5085_v16 = vrot.slane %v5057_v9, %v9726_v42  ;;  %v8464_v9 = vld [vmem:[%s9686_s23 + $0x6e8] sm:$0xff]  }
 0x1ea   : > { %7972 = vmatprep.subr.bf16.mxu0 %v8361_v18  ;;  %v8413_v18 = vld [vmem:[%s9686_s23 + $0x580] sm:$0xff]  }
 0x1eb   : > { %7993 = vmatpush3.bf16.msra.mxu1 %v8360_v17  ;;  %v8412_v17 = vld [vmem:[%s9686_s23 + $0x500] sm:$0xff]  }
 0x1ec   : > { %7994 = vmatprep.subr.bf16.mxu1 %v8362_v19  ;;  %v5086_v19 = vcombine.high %v5064_v13, %v5064_v13 }
 0x1ed   : > { %7973 = vmatpush3.bf16.msra.mxu0 %v8363_v20  ;;  %v8414_v20 = vld [vmem:[%s9686_s23 + $0x548] sm:$0xff]  }
 0x1ee   : > { %7974 = vmatprep.subr.bf16.mxu0 %v8365_v22  ;;  %v5089_v22 = vcombine.high %v5085_v16, %v5085_v16 }
 0x1ef   : > { %7995 = vmatpush3.bf16.msra.mxu1 %v8364_v21  ;;  %v8415_v21 = vld [vmem:[%s9686_s23 + $0x5c8] sm:$0xff]  }
 0x1f0   : > { %7996 = vmatprep.subr.bf16.mxu1 %v8366_v23  ;;  %v8416_v23 = vld [vmem:[%s9686_s23 + $0x508] sm:$0xff]  }
 0x1f1   : > { %7975 = vmatpush3.bf16.msra.mxu0 %v8367_v24  ;;  %v8417_v24 = vld [vmem:[%s9686_s23 + $0x588] sm:$0xff]  }
 0x1f2   : > { %7976 = vmatprep.subr.bf16.mxu0 %v8369_v26  ;;  %v8419_v26 = vld [vmem:[%s9686_s23 + $0x5d0] sm:$0xff]  }
 0x1f3   : > { %7997 = vmatpush3.bf16.msra.mxu1 %v8368_v25  ;;  %v8418_v25 = vld [vmem:[%s9686_s23 + $0x550] sm:$0xff]  }
 0x1f4   : > { %7998 = vmatprep.subr.bf16.mxu1 %v8370_v27  ;;  %v8420_v27 = vld [vmem:[%s9686_s23 + $0x510] sm:$0xff]  }
 0x1f5   : > { %7977 = vmatpush3.bf16.msra.mxu0 %v8371_v28  ;;  %v8421_v28 = vld [vmem:[%s9686_s23 + $0x590] sm:$0xff]  }
 0x1f6   : > { %7978 = vmatprep.subr.bf16.mxu0 %v8373_v30  ;;  %v8423_v30 = vld [vmem:[%s9686_s23 + $0x5d8] sm:$0xff]  }
 0x1f7   : > { %7999 = vmatpush3.bf16.msra.mxu1 %v8372_v29  ;;  %v8422_v29 = vld [vmem:[%s9686_s23 + $0x558] sm:$0xff]  }
 0x1f8   : > { %8000 = vmatprep.subr.bf16.mxu1 %v8374_v31  ;;  %v8424_v31 = vld [vmem:[%s9686_s23 + $0x518] sm:$0xff]  }
 0x1f9   : > { %7979 = vmatpush3.bf16.msra.mxu0 %v8375_v32  ;;  %v8425_v32 = vld [vmem:[%s9686_s23 + $0x598] sm:$0xff]  }
 0x1fa   : > { %8008 = vmatprep.subr.bf16.mxu0 %v8378_v35  ;;  %v8428_v35 = vld [vmem:[%s9686_s23 + $0x520] sm:$0xff]  }
 0x1fb   : > { %8001 = vmatpush3.bf16.msra.mxu1 %v8376_v33  ;;  %v8426_v33 = vld [vmem:[%s9686_s23 + $0x560] sm:$0xff]  }
 0x1fc   : > { %6980 = vmatmul.mubr.bf16.vlgmr.msra.gmra.mrb[12].mxu0 %v5022_v34  ;;  %8030 = vmatprep.subr.bf16.mxu1 %v8379_v36  ;;  %v8427_v34 = vld [vmem:[%s9686_s23 + $0x5e0] sm:$0xff]  }
 0x1fd   : > { %8009 = vmatpush3.bf16.msra.mxu0 %v8380_v37  ;;  %7059 = vmatprep.mubr.bf16.mxu0 %v5078_v8  ;;  %v8429_v36 = vld [vmem:[%s9686_s23 + $0x5a0] sm:$0xff]   ;;  %v8430_v37 = vld [vmem:[%s9686_s23 + $0x568] sm:$0xff]  }
 0x1fe   : > { %7020 = vmatmul.mubr.bf16.vlgmr.msra.gmra.mrb[12].mxu1 %v5038_v39  ;;  %8010 = vmatprep.subr.bf16.mxu0 %v8382_v40  ;;  %v8432_v39 = vld [vmem:[%s9686_s23 + $0x528] sm:$0xff]  }
 0x1ff   : > { %8031 = vmatpush3.bf16.msra.mxu1 %v8381_v38  ;;  %7099 = vmatprep.mubr.bf16.mxu1 %v5088_v12  ;;  %v8431_v38 = vld [vmem:[%s9686_s23 + $0x5e8] sm:$0xff]   ;;  %v8467_v12 = vld [vmem:[%s9686_s23 + $0x670] sm:$0xff]  }
 0x200   : > { %8032 = vmatprep.subr.bf16.mxu1 %v8383_v41  ;;  %v8433_v40 = vld [vmem:[%s9686_s23 + $0x5a8] sm:$0xff]   ;;  %v8434_v41 = vld [vmem:[%s9686_s23 + $0x570] sm:$0xff]  }
 0x201   : > { %8011 = vmatpush3.bf16.msra.mxu0 %v8384_v43  ;;  %v8435_v43 = vld [vmem:[%s9686_s23 + $0x5f0] sm:$0xff]   ;;  %v8463_v8 = vld [vmem:[%s9686_s23 + $0x668] sm:$0xff]  }
 0x202   : > { %8012 = vmatprep.subr.bf16.mxu0 %v8386_v45  ;;  %v8437_v45 = vld [vmem:[%s9686_s23 + $0x5b0] sm:$0xff]  }
 0x203   : > { %8033 = vmatpush3.bf16.msra.mxu1 %v8385_v44  ;;  %v8436_v44 = vld [vmem:[%s9686_s23 + $0x530] sm:$0xff]  }
 0x204   : > { %8034 = vmatprep.subr.bf16.mxu1 %v8387_v46  ;;  %v8438_v46 = vld [vmem:[%s9686_s23 + $0x578] sm:$0xff]  }
 0x205   : > { %8013 = vmatpush3.bf16.msra.mxu0 %v8388_v47  ;;  %v8439_v47 = vld [vmem:[%s9686_s23 + $0x5f8] sm:$0xff]  }
 0x206   : > { %8014 = vmatprep.subr.bf16.mxu0 %v8390_v49  ;;  %v8441_v49 = vld [vmem:[%s9686_s23 + $0x5b8] sm:$0xff]  }
 0x207   : > { %8035 = vmatpush3.bf16.msra.mxu1 %v8389_v48  ;;  %v8440_v48 = vld [vmem:[%s9686_s23 + $0x538] sm:$0xff]  }
 0x208   : > { %8036 = vmatprep.subr.bf16.mxu1 %v8391_v50  ;;  %v5071_v50 = vrot.slane %v9880_v5, %v9726_v42  ;;  %v8460_v5 = vld [vmem:[%s9686_s23 + $0x6e0] sm:$0xff]  }
 0x209   : > { %8015 = vmatpush3.bf16.msra.mxu0 %v8392_v51  ;;  %v8443_v51 = vld [vmem:[%s9686_s23 + $0x640] sm:$0xff]  }
 0x20a   : > { %8016 = vmatprep.subr.bf16.mxu0 %v8394_v53  ;;  %v8445_v53 = vld [vmem:[%s9686_s23 + $0x600] sm:$0xff]  }
 0x20b   : > { %8037 = vmatpush3.bf16.msra.mxu1 %v8393_v52  ;;  %v8444_v52 = vld [vmem:[%s9686_s23 + $0x6c0] sm:$0xff]  }
 0x20c   : > { %8038 = vmatprep.subr.bf16.mxu1 %v8395_v54  ;;  %v8446_v54 = vld [vmem:[%s9686_s23 + $0x680] sm:$0xff]  }
 0x20d   : > { %8017 = vmatpush3.bf16.msra.mxu0 %v8396_v55  ;;  %v5087_v55 = vcombine.high %v5071_v50, %v5071_v50 }
 0x20e   : > { %8018 = vmatprep.subr.bf16.mxu0 %v8398_v57  ;;  %v8448_v57 = vld [vmem:[%s9686_s23 + $0x6c8] sm:$0xff]  }
 0x20f   : > { %8039 = vmatpush3.bf16.msra.mxu1 %v8397_v56  ;;  %v8447_v56 = vld [vmem:[%s9686_s23 + $0x648] sm:$0xff]  }
 0x210   : > { %8040 = vmatprep.subr.bf16.mxu1 %v8399_v58  ;;  %v8449_v58 = vld [vmem:[%s9686_s23 + $0x608] sm:$0xff]  }
 0x211   : > { %8019 = vmatpush3.bf16.msra.mxu0 %v8400_v59  ;;  %v8450_v59 = vld [vmem:[%s9686_s23 + $0x688] sm:$0xff]  }
 0x212   : > { %8020 = vmatprep.subr.bf16.mxu0 %v8402_v61  ;;  %v8452_v61 = vld [vmem:[%s9686_s23 + $0x6d0] sm:$0xff]  }
 0x213   : > { %8041 = vmatpush3.bf16.msra.mxu1 %v8401_v60  ;;  %v8451_v60 = vld [vmem:[%s9686_s23 + $0x650] sm:$0xff]  }
 0x214   : > { %8042 = vmatprep.subr.bf16.mxu1 %v8403_v63  ;;  %v8454_v63 = vld [vmem:[%s9686_s23 + $0x690] sm:$0xff]  }
 0x215   : > { %8021 = vmatpush3.bf16.msra.mxu0 %v8404_v2  ;;  %v8457_v2 = vld [vmem:[%s9686_s23 + $0x618] sm:$0xff]  }
 0x216   : > { %8022 = vmatprep.subr.bf16.mxu0 %v8406_v6  ;;  %v8461_v6 = vld [vmem:[%s9686_s23 + $0x620] sm:$0xff]  }
 0x217   : > { %8043 = vmatpush3.bf16.msra.mxu1 %v8405_v3  ;;  %v8458_v3 = vld [vmem:[%s9686_s23 + $0x698] sm:$0xff]  }
 0x218   : > { %8044 = vmatprep.subr.bf16.mxu1 %v8407_v7  ;;  %v8462_v7 = vld [vmem:[%s9686_s23 + $0x6a0] sm:$0xff]  }
 0x219   : > { %8023 = vmatpush3.bf16.msra.mxu0 %v8408_v10  ;;  %v8465_v10 = vld [vmem:[%s9686_s23 + $0x628] sm:$0xff]  }
 0x21a   : > { %8052 = vmatprep.subr.bf16.mxu0 %v8410_v14  ;;  %v8468_v14 = vld [vmem:[%s9686_s23 + $0x6f0] sm:$0xff]  }
 0x21b   : > { %8045 = vmatpush3.bf16.msra.mxu1 %v8409_v11  ;;  %v8466_v11 = vld [vmem:[%s9686_s23 + $0x6a8] sm:$0xff]  }
 0x21c   : > { %7060 = vmatmul.mubr.bf16.vlgmr.msra.gmra.mrb[16].mxu0 %v5064_v13  ;;  %8074 = vmatprep.subr.bf16.mxu1 %v8411_v15  ;;  %v4419_v13 = vld [vmem:[%s10053_s0 + $0x18] sm:$0xff] }
 0x21d   : > { %8053 = vmatpush3.bf16.msra.mxu0 %v8412_v17  ;;  %7139 = vmatprep.mubr.bf16.mxu0 %v5085_v16  ;;  %v5097_v15 = vrot.slane %v4419_v13, %v9726_v42  ;;  %v5090_v16 = vcombine.high %v4419_v13, %v4419_v13  ;;  %v8469_v17 = vld [vmem:[%s9686_s23 + $0x630] sm:$0xff]  }
 0x21e   : > { %7100 = vmatmul.mubr.bf16.vlgmr.msra.gmra.mrb[16].mxu1 %v5086_v19  ;;  %8054 = vmatprep.subr.bf16.mxu0 %v8414_v20 }
 0x21f   : > { %8075 = vmatpush3.bf16.msra.mxu1 %v8413_v18  ;;  %7179 = vmatprep.mubr.bf16.mxu1 %v5089_v22  ;;  %v8471_v18 = vld [vmem:[%s9686_s23 + $0x678] sm:$0xff]   ;;  %v5105_v19 = vcombine.high %v5097_v15, %v5097_v15  ;;  %v9958_v20 = vrot.slane %v5090_v16, %v9726_v42 }
 0x220   : > { %8076 = vmatprep.subr.bf16.mxu1 %v8415_v21  ;;  %v8470_v21 = vld [vmem:[%s9686_s23 + $0x6b0] sm:$0xff]   ;;  %v8472_v22 = vld [vmem:[%s9686_s23 + $0x6f8] sm:$0xff]  }
 0x221   : > { %8055 = vmatpush3.bf16.msra.mxu0 %v8416_v23  ;;  %v5127_v23 = vrot.slane %v5105_v19, %v9726_v42  ;;  %v5120_v13 = vrot.slane %v9958_v20, %v9726_v42 }
 0x222   : > { %8056 = vmatprep.subr.bf16.mxu0 %v8418_v25  ;;  %v8473_v25 = vld [vmem:[%s9686_s23 + $0x638] sm:$0xff]  }
 0x223   : > { %8077 = vmatpush3.bf16.msra.mxu1 %v8417_v24  ;;  %v5106_v24 = vcombine.high %v9958_v20, %v9958_v20 }
 0x224   : > { %8078 = vmatprep.subr.bf16.mxu1 %v8419_v26  ;;  %v5137_v26 = vcombine.high %v5127_v23, %v5127_v23 }
 0x225   : > { %8057 = vmatpush3.bf16.msra.mxu0 %v8420_v27  ;;  %v5113_v27 = vrot.slane %v5097_v15, %v9726_v42  ;;  %v5136_v15 = vcombine.high %v5120_v13, %v5120_v13 }
 0x226   : > { %8058 = vmatprep.subr.bf16.mxu0 %v8422_v29  ;;  %v8474_v29 = vld [vmem:[%s9686_s23 + $0x6b8] sm:$0xff]  }
 0x227   : > { %8079 = vmatpush3.bf16.msra.mxu1 %v8421_v28  ;;  %v8475_v28 = vld [vmem:[%s9686_s23 + $0x740] sm:$0xff]  }
 0x228   : > { %8080 = vmatprep.subr.bf16.mxu1 %v8423_v30  ;;  %v5134_v30 = vrot.slane %v5106_v24, %v9726_v42 }
 0x229   : > { %8059 = vmatpush3.bf16.msra.mxu0 %v8424_v31  ;;  %v8476_v31 = vld [vmem:[%s9686_s23 + $0x7c0] sm:$0xff]  }
 0x22a   : > { %8060 = vmatprep.subr.bf16.mxu0 %v8426_v33  ;;  %v5135_v33 = vcombine.high %v5113_v27, %v5113_v27 }
 0x22b   : > { %8081 = vmatpush3.bf16.msra.mxu1 %v8425_v32  ;;  %v8477_v32 = vld [vmem:[%s9686_s23 + $0x700] sm:$0xff]  }
 0x22c   : > { %8082 = vmatprep.subr.bf16.mxu1 %v8427_v34  ;;  %v8479_v34 = vld [vmem:[%s9686_s23 + $0x748] sm:$0xff]  }
 0x22d   : > { %8061 = vmatpush3.bf16.msra.mxu0 %v8428_v35  ;;  %v8478_v35 = vld [vmem:[%s9686_s23 + $0x780] sm:$0xff]  }
 0x22e   : > { %8062 = vmatprep.subr.bf16.mxu0 %v8430_v37  ;;  %v8480_v37 = vld [vmem:[%s9686_s23 + $0x7c8] sm:$0xff]  }
 0x22f   : > { %8083 = vmatpush3.bf16.msra.mxu1 %v8429_v36  ;;  %v5138_v36 = vcombine.high %v5134_v30, %v5134_v30 }
 0x230   : > { %8084 = vmatprep.subr.bf16.mxu1 %v8431_v38  ;;  %v8481_v38 = vld [vmem:[%s9686_s23 + $0x708] sm:$0xff]  }
 0x231   : > { %8063 = vmatpush3.bf16.msra.mxu0 %v8432_v39  ;;  %v8483_v39 = vld [vmem:[%s9686_s23 + $0x750] sm:$0xff]  }
 0x232   : > { %8064 = vmatprep.subr.bf16.mxu0 %v8434_v41  ;;  %v8484_v41 = vld [vmem:[%s9686_s23 + $0x7d0] sm:$0xff]  }
 0x233   : > { %8085 = vmatpush3.bf16.msra.mxu1 %v8433_v40  ;;  %v8482_v40 = vld [vmem:[%s9686_s23 + $0x788] sm:$0xff]  }
 0x234   : > { %8086 = vmatprep.subr.bf16.mxu1 %v8435_v43  ;;  %v8485_v43 = vld [vmem:[%s9686_s23 + $0x710] sm:$0xff]  }
 0x235   : > { %8065 = vmatpush3.bf16.msra.mxu0 %v8436_v44  ;;  %v8487_v44 = vld [vmem:[%s9686_s23 + $0x758] sm:$0xff]  }
 0x236   : > { %8066 = vmatprep.subr.bf16.mxu0 %v8438_v46  ;;  %v8488_v46 = vld [vmem:[%s9686_s23 + $0x7d8] sm:$0xff]  }
 0x237   : > { %8087 = vmatpush3.bf16.msra.mxu1 %v8437_v45  ;;  %v8486_v45 = vld [vmem:[%s9686_s23 + $0x790] sm:$0xff]  }
 0x238   : > { %8088 = vmatprep.subr.bf16.mxu1 %v8439_v47  ;;  %v8489_v47 = vld [vmem:[%s9686_s23 + $0x718] sm:$0xff]  }
 0x239   : > { %8067 = vmatpush3.bf16.msra.mxu0 %v8440_v48  ;;  %v8490_v48 = vld [vmem:[%s9686_s23 + $0x798] sm:$0xff]  }
 0x23a   : > { %8096 = vmatprep.subr.bf16.mxu0 %v8443_v51  ;;  %v8493_v51 = vld [vmem:[%s9686_s23 + $0x720] sm:$0xff]  }
 0x23b   : > { %8089 = vmatpush3.bf16.msra.mxu1 %v8441_v49  ;;  %v8491_v49 = vld [vmem:[%s9686_s23 + $0x760] sm:$0xff]  }
 0x23c   : > { %7140 = vmatmul.mubr.bf16.vlgmr.msra.gmra.mrb[20].mxu0 %v5071_v50  ;;  %8118 = vmatprep.subr.bf16.mxu1 %v8444_v52  ;;  %v8492_v50 = vld [vmem:[%s9686_s23 + $0x7e0] sm:$0xff]  }
 0x23d   : > { %8097 = vmatpush3.bf16.msra.mxu0 %v8445_v53  ;;  %7219 = vmatprep.mubr.bf16.mxu0 %v5127_v23  ;;  %v8494_v52 = vld [vmem:[%s9686_s23 + $0x7a0] sm:$0xff]   ;;  %v8495_v53 = vld [vmem:[%s9686_s23 + $0x768] sm:$0xff]  }
 0x23e   : > { %7180 = vmatmul.mubr.bf16.vlgmr.msra.gmra.mrb[20].mxu1 %v5087_v55  ;;  %8098 = vmatprep.subr.bf16.mxu0 %v8447_v56  ;;  %v8497_v55 = vld [vmem:[%s9686_s23 + $0x728] sm:$0xff]  }
 0x23f   : > { %8119 = vmatpush3.bf16.msra.mxu1 %v8446_v54  ;;  %7259 = vmatprep.mubr.bf16.mxu1 %v5137_v26  ;;  %v8496_v54 = vld [vmem:[%s9686_s23 + $0x7e8] sm:$0xff]  }
 0x240   : > { %8120 = vmatprep.subr.bf16.mxu1 %v8448_v57  ;;  %v8498_v56 = vld [vmem:[%s9686_s23 + $0x7a8] sm:$0xff]   ;;  %v8499_v57 = vld [vmem:[%s9686_s23 + $0x770] sm:$0xff]  }
 0x241   : > { %8099 = vmatpush3.bf16.msra.mxu0 %v8449_v58  ;;  %v7561_v58 = vld [vmem:[%s4403_s14] ss:$0 sm:$0xff] }
 0x242   : > { %8100 = vmatprep.subr.bf16.mxu0 %v8451_v60 }
 0x243   : > { %8121 = vmatpush3.bf16.msra.mxu1 %v8450_v59  ;;  %v8500_v59 = vld [vmem:[%s9686_s23 + $0x7f0] sm:$0xff]  }
 0x244   : > { %8122 = vmatprep.subr.bf16.mxu1 %v8452_v61  ;;  %v8501_v61 = vld [vmem:[%s9686_s23 + $0x730] sm:$0xff]  }
 0x245   : > { %8101 = vmatpush3.bf16.msra.mxu0 %v8453_v62 }
 0x246   : > { %8102 = vmatprep.subr.bf16.mxu0 %v8455_v0 }
 0x247   : > { %8123 = vmatpush3.bf16.msra.mxu1 %v8454_v63  ;;  %v8503_v63 = vld [vmem:[%s9686_s23 + $0x778] sm:$0xff]  }
 0x248   : > { %8124 = vmatprep.subr.bf16.mxu1 %v8456_v1 }
 0x249   : > { %8103 = vmatpush3.bf16.msra.mxu0 %v8457_v2 }
 0x24a   : > { %8104 = vmatprep.subr.bf16.mxu0 %v8459_v4 }
 0x24b   : > { %8125 = vmatpush3.bf16.msra.mxu1 %v8458_v3  ;;  %v8502_v3 = vld [vmem:[%s9686_s23 + $0x7b0] sm:$0xff]  }
 0x24c   : > { %8126 = vmatprep.subr.bf16.mxu1 %v8460_v5 }
 0x24d   : > { %8105 = vmatpush3.bf16.msra.mxu0 %v8461_v6 }
 0x24e   : > { %8106 = vmatprep.subr.bf16.mxu0 %v8463_v8 }
 0x24f   : > { %8127 = vmatpush3.bf16.msra.mxu1 %v8462_v7 }
 0x250   : > { %8128 = vmatprep.subr.bf16.mxu1 %v8464_v9  ;;  %v8504_v9 = vld [vmem:[%s9686_s23 + $0x7f8] sm:$0xff]  }
 0x251   : > { %8107 = vmatpush3.bf16.msra.mxu0 %v8465_v10 }
 0x252   : > { %8108 = vmatprep.subr.bf16.mxu0 %v8467_v12 }
 0x253   : > { %8129 = vmatpush3.bf16.msra.mxu1 %v8466_v11  ;;  %v8505_v11 = vld [vmem:[%s9686_s23 + $0x738] sm:$0xff]  }
 0x254   : > { %8130 = vmatprep.subr.bf16.mxu1 %v8468_v14  ;;  %v8506_v14 = vld [vmem:[%s9686_s23 + $0x7b8] sm:$0xff]  }
 0x255   : > { %8109 = vmatpush3.bf16.msra.mxu0 %v8469_v17 }
 0x256   : > { %8110 = vmatprep.subr.bf16.mxu0 %v8471_v18 }
 0x257   : > { %8131 = vmatpush3.bf16.msra.mxu1 %v8470_v21 }
 0x258   : > { %8132 = vmatprep.subr.bf16.mxu1 %v8472_v22 }
 0x259   : > { %8111 = vmatpush3.bf16.msra.mxu0 %v8473_v25 }
 0x25a   : > { %8140 = vmatprep.subr.bf16.mxu0 %v8475_v28 }
 0x25b   : > { %8133 = vmatpush3.bf16.msra.mxu1 %v8474_v29 }
 0x25c   : > { %7220 = vmatmul.mubr.bf16.vlgmr.msra.gmra.mrb[24].mxu0 %v5113_v27  ;;  %8162 = vmatprep.subr.bf16.mxu1 %v8476_v31 }
 0x25d   : > { %8141 = vmatpush3.bf16.msra.mxu0 %v8477_v32  ;;  %7299 = vmatprep.mubr.bf16.mxu0 %v5134_v30 }
 0x25e   : > { %7260 = vmatmul.mubr.bf16.vlgmr.msra.gmra.mrb[24].mxu1 %v5135_v33  ;;  %8142 = vmatprep.subr.bf16.mxu0 %v8479_v34 }
 0x25f   : > { %8163 = vmatpush3.bf16.msra.mxu1 %v8478_v35  ;;  %7339 = vmatprep.mubr.bf16.mxu1 %v5138_v36 }
 0x260   : > { %8164 = vmatprep.subr.bf16.mxu1 %v8480_v37 }
 0x261   : > { %8143 = vmatpush3.bf16.msra.mxu0 %v8481_v38 }
 0x262   : > { %8144 = vmatprep.subr.bf16.mxu0 %v8483_v39  ;;  %v8508_v39 = vld [vmem:[%s9684_s20] sm:$0xff]  }
 0x263   : > { %8165 = vmatpush3.bf16.msra.mxu1 %v8482_v40  ;;  %v8572_v40 = vmov 0.0  }
 0x264   : > { %8166 = vmatprep.subr.bf16.mxu1 %v8484_v41  ;;  %v8509_v41 = vld [vmem:[%s9684_s20 + $0x8] sm:$0xff]  }
 0x265   : > { %8145 = vmatpush3.bf16.msra.mxu0 %v8485_v43  ;;  %v8510_v43 = vld [vmem:[%s9684_s20 + $0x10] sm:$0xff]  }
 0x266   : > { %8146 = vmatprep.subr.bf16.mxu0 %v8487_v44  ;;  %v8511_v44 = vld [vmem:[%s9684_s20 + $0x18] sm:$0xff]  }
 0x267   : > { %8167 = vmatpush3.bf16.msra.mxu1 %v8486_v45  ;;  %v8512_v45 = vld [vmem:[%s9684_s20 + $0x20] sm:$0xff]  }
 0x268   : > { %8168 = vmatprep.subr.bf16.mxu1 %v8488_v46 }
 0x269   : > { %8147 = vmatpush3.bf16.msra.mxu0 %v8489_v47 }
 0x26a   : > { %8148 = vmatprep.subr.bf16.mxu0 %v8491_v49 }
 0x26b   : > { %8169 = vmatpush3.bf16.msra.mxu1 %v8490_v48  ;;  %v8513_v48 = vld [vmem:[%s9684_s20 + $0x28] sm:$0xff]  }
 0x26c   : > { %8170 = vmatprep.subr.bf16.mxu1 %v8492_v50 }
 0x26d   : > { %8149 = vmatpush3.bf16.msra.mxu0 %v8493_v51 }
 0x26e   : > { %8150 = vmatprep.subr.bf16.mxu0 %v8495_v53 }
 0x26f   : > { %8171 = vmatpush3.bf16.msra.mxu1 %v8494_v52  ;;  %v7848_v60 = vpop.f32.mrb[0].mxu0 }
 0x270   : > { %v7849_v62 = vpop.f32.mrb[1].mxu0  ;;  %8172 = vmatprep.subr.bf16.mxu1 %v8496_v54  ;;  %v7870_v0 = vpop.f32.mrb[0].mxu1 }
 0x271   : > { %v7850_v1 = vadd.f32 %v7849_v62, %v7848_v60  ;;  %v7851_v2 = vpop.f32.mrb[2].mxu0  ;;  %8151 = vmatpush3.bf16.msra.mxu0 %v8497_v55  ;;  %v7871_v4 = vpop.f32.mrb[1].mxu1  ;;  %v8515_v60 = vld [vmem:[%s9684_s20 + $0x38] sm:$0xff]  }
 0x272   : > { %v7852_v5 = vpop.f32.mrb[3].mxu0  ;;  %8152 = vmatprep.subr.bf16.mxu0 %v8499_v57  ;;  %v7872_v7 = vadd.f32 %v7871_v4, %v7870_v0  ;;  %v7873_v8 = vpop.f32.mrb[2].mxu1 }
 0x273   : > { %v6742_v6 = vadd.f32 %v7850_v1, %v7561_v58  ;;  %8173 = vmatpush3.bf16.msra.mxu1 %v8498_v56  ;;  %v7874_v10 = vpop.f32.mrb[3].mxu1  ;;  %v8514_v58 = vld [vmem:[%s9684_s20 + $0x30] sm:$0xff]  }
 0x274   : > { %8174 = vmatprep.subr.bf16.mxu1 %v8500_v59 }
 0x275   : > { %v6782_v12 = vadd.f32 %v7872_v7, %v6742_v6  ;;  %8153 = vmatpush3.bf16.msra.mxu0 %v8501_v61 }
 0x276   : > { %8154 = vmatprep.subr.bf16.mxu0 %v8503_v63 }
 0x277   : > { %8175 = vmatpush3.bf16.msra.mxu1 %v8502_v3 }
 0x278   : > { %8176 = vmatprep.subr.bf16.mxu1 %v8504_v9 }
 0x279   : > { %8155 = vmatpush3.bf16.msra.mxu0 %v8505_v11 }
 0x27a   : > { %8193 = vmatprep.subr.bf16.mxu0 %v8572_v40 }
 0x27b   : > { %8177 = vmatpush3.bf16.msra.mxu1 %v8506_v14 }
 0x27c   : > { %7300 = vmatmul.mubr.bf16.vlgmr.msra.gmra.mrb[28].mxu0 %v5120_v13 }
 0x27d   : > { %8194 = vmatpush3.bf16.msra.mxu0 %v8508_v39  ;;  %8209 = vmatprep.mubr.msk.bf16.mxu0 %vm8573_vm0, %v8572_v40 }
 0x27e   : > { %7340 = vmatmul.mubr.bf16.vlgmr.msra.gmra.mrb[28].mxu1 %v5136_v15  ;;  %8195 = vmatprep.subr.bf16.mxu0 %v8572_v40 }
 0x281   : > { %8196 = vmatpush3.bf16.msra.mxu0 %v8509_v41 }
 0x282   : > { %8197 = vmatprep.subr.bf16.mxu0 %v8572_v40 }
 0x285   : > { %8198 = vmatpush3.bf16.msra.mxu0 %v8510_v43 }
 0x286   : > { %8199 = vmatprep.subr.bf16.mxu0 %v8572_v40 }
 0x289   : > { %8200 = vmatpush3.bf16.msra.mxu0 %v8511_v44 }
 0x28a   : > { %8201 = vmatprep.subr.bf16.mxu0 %v8572_v40 }
 0x28d   : > { %8202 = vmatpush3.bf16.msra.mxu0 %v8512_v45 }
 0x28e   : > { %8203 = vmatprep.subr.bf16.mxu0 %v8572_v40 }
 0x28f   : > { %v7892_v16 = vpop.f32.mrb[4].mxu0 }
 0x290   : > { %v7893_v17 = vpop.f32.mrb[5].mxu0  ;;  %v7914_v18 = vpop.f32.mrb[4].mxu1 }
 0x291   : > { %v7894_v19 = vadd.f32 %v7893_v17, %v7892_v16  ;;  %v7895_v21 = vpop.f32.mrb[6].mxu0  ;;  %v7915_v22 = vpop.f32.mrb[5].mxu1  ;;  %8204 = vmatpush3.bf16.msra.mxu0 %v8513_v48 }
 0x292   : > { %v7896_v23 = vpop.f32.mrb[7].mxu0  ;;  %v7916_v25 = vadd.f32 %v7915_v22, %v7914_v18  ;;  %v7917_v26 = vpop.f32.mrb[6].mxu1  ;;  %8205 = vmatprep.subr.bf16.mxu0 %v8572_v40 }
 0x293   : > { %v6822_v24 = vadd.f32 %v7894_v19, %v6782_v12  ;;  %v7918_v42 = vpop.f32.mrb[7].mxu1 }
 0x295   : > { %v6862_v20 = vadd.f32 %v7916_v25, %v6822_v24  ;;  %8206 = vmatpush3.bf16.msra.mxu0 %v8514_v58 }
 0x296   : > { %8207 = vmatprep.subr.bf16.mxu0 %v8572_v40 }
 0x299   : > { %8208 = vmatpush3.bf16.msra.mxu0 %v8515_v60 }
 0x2af   : > { %v7936_v27 = vpop.f32.mrb[8].mxu0 }
 0x2b0   : > { %v7937_v28 = vpop.f32.mrb[9].mxu0 }
 0x2b1   : > { %v7958_v29 = vpop.f32.mrb[8].mxu1  ;;  %v7938_v30 = vadd.f32 %v7937_v28, %v7936_v27  ;;  %v7939_v31 = vpop.f32.mrb[10].mxu0 }
 0x2b2   : > { %v7959_v32 = vpop.f32.mrb[9].mxu1  ;;  %v7940_v33 = vpop.f32.mrb[11].mxu0 }
 0x2b3   : > { %v6902_v34 = vadd.f32 %v7938_v30, %v6862_v20  ;;  %v7960_v35 = vadd.f32 %v7959_v32, %v7958_v29  ;;  %v7961_v36 = vpop.f32.mrb[10].mxu1 }
 0x2b4   : > { %v7962_v37 = vpop.f32.mrb[11].mxu1 }
 0x2b5   : > { %v6942_v38 = vadd.f32 %v7960_v35, %v6902_v34 }
 0x2cf   : > { %v7980_v46 = vpop.f32.mrb[12].mxu0 }
 0x2d0   : > { %v7981_v47 = vpop.f32.mrb[13].mxu0 }
 0x2d1   : > { %v8002_v49 = vpop.f32.mrb[12].mxu1  ;;  %v7982_v50 = vadd.f32 %v7981_v47, %v7980_v46  ;;  %v7983_v51 = vpop.f32.mrb[14].mxu0  ;;  %v7349_v47 = vld [vmem:[#allocation2] sm:$0x3] }
 0x2d2   : > { %v8003_v52 = vpop.f32.mrb[13].mxu1  ;;  %v7984_v53 = vpop.f32.mrb[15].mxu0 }
 0x2d3   : > { %v6982_v54 = vadd.f32 %v7982_v50, %v6942_v38  ;;  %v8004_v55 = vadd.f32 %v8003_v52, %v8002_v49  ;;  %v8005_v56 = vpop.f32.mrb[14].mxu1 }
 0x2d4   : > { %v8006_v57 = vpop.f32.mrb[15].mxu1 }
 0x2d5   : > { %v7022_v59 = vadd.f32 %v8004_v55, %v6982_v54  ;;  %v7827_v54 = vld [vmem:[%s10057_s4] ss:$0 sm:$0xff] (!%p7826_p11) }
 0x2ef   : > { %v8024_v61 = vpop.f32.mrb[16].mxu0 }
 0x2f0   : > { %v8025_v62 = vpop.f32.mrb[17].mxu0 }
 0x2f1   : > { %v8046_v63 = vpop.f32.mrb[16].mxu1  ;;  %v8026_v0 = vadd.f32 %v8025_v62, %v8024_v61  ;;  %v8027_v1 = vpop.f32.mrb[18].mxu0 }
 0x2f2   : > { %v8047_v2 = vpop.f32.mrb[17].mxu1  ;;  %v8028_v3 = vpop.f32.mrb[19].mxu0 }
 0x2f3   : > { %v7062_v4 = vadd.f32 %v8026_v0, %v7022_v59  ;;  %v8048_v5 = vadd.f32 %v8047_v2, %v8046_v63  ;;  %v8049_v6 = vpop.f32.mrb[18].mxu1 }
 0x2f4   : > { %v8050_v7 = vpop.f32.mrb[19].mxu1 }
 0x2f5   : > { %v7102_v8 = vadd.f32 %v8048_v5, %v7062_v4 }
 0x30f   : > { %v8068_v9 = vpop.f32.mrb[20].mxu0 }
 0x310   : > { %v8069_v10 = vpop.f32.mrb[21].mxu0 }
 0x311   : > { %v8090_v11 = vpop.f32.mrb[20].mxu1  ;;  %v8070_v12 = vadd.f32 %v8069_v10, %v8068_v9  ;;  %v8071_v13 = vpop.f32.mrb[22].mxu0 }
 0x312   : > { %v8091_v14 = vpop.f32.mrb[21].mxu1  ;;  %v8072_v15 = vpop.f32.mrb[23].mxu0 }
 0x313   : > { %v7142_v16 = vadd.f32 %v8070_v12, %v7102_v8  ;;  %v8092_v17 = vadd.f32 %v8091_v14, %v8090_v11  ;;  %v8093_v18 = vpop.f32.mrb[22].mxu1 }
 0x314   : > { %v8094_v19 = vpop.f32.mrb[23].mxu1 }
 0x315   : > { %v7182_v21 = vadd.f32 %v8092_v17, %v7142_v16 }
 0x32f   : > { %v8112_v22 = vpop.f32.mrb[24].mxu0 }
 0x330   : > { %v8113_v23 = vpop.f32.mrb[25].mxu0 }
 0x331   : > { %v8134_v24 = vpop.f32.mrb[24].mxu1  ;;  %v8114_v25 = vadd.f32 %v8113_v23, %v8112_v22  ;;  %v8115_v26 = vpop.f32.mrb[26].mxu0 }
 0x332   : > { %v8135_v42 = vpop.f32.mrb[25].mxu1  ;;  %v8116_v20 = vpop.f32.mrb[27].mxu0 }
 0x333   : > { %v7222_v27 = vadd.f32 %v8114_v25, %v7182_v21  ;;  %v8136_v28 = vadd.f32 %v8135_v42, %v8134_v24  ;;  %v8137_v29 = vpop.f32.mrb[26].mxu1 }
 0x334   : > { %v8138_v30 = vpop.f32.mrb[27].mxu1 }
 0x335   : > { %v7262_v31 = vadd.f32 %v8136_v28, %v7222_v27 }
 0x34f   : > { %v8156_v32 = vpop.f32.mrb[28].mxu0 }
 0x350   : > { %v8157_v33 = vpop.f32.mrb[29].mxu0 }
 0x351   : > { %v8178_v34 = vpop.f32.mrb[28].mxu1  ;;  %v8158_v35 = vadd.f32 %v8157_v33, %v8156_v32  ;;  %v8159_v36 = vpop.f32.mrb[30].mxu0 }
 0x352   : > { %v8179_v37 = vpop.f32.mrb[29].mxu1  ;;  %v8160_v38 = vpop.f32.mrb[31].mxu0 }
 0x353   : > { %v7302_v39 = vadd.f32 %v8158_v35, %v7262_v31  ;;  %v8180_v40 = vadd.f32 %v8179_v37, %v8178_v34  ;;  %v8181_v41 = vpop.f32.mrb[30].mxu1 }
 0x354   : > { %v8182_v43 = vpop.f32.mrb[31].mxu1 }
 0x355   : > { %v7342_v44 = vadd.f32 %v8180_v40, %v7302_v39 }
 0x357   : > { %v7347_v45 = vmax.f32 %v7342_v44, 0.0 }
 0x359   : > { %v7348_v46 = vpack.c.bf16 %v7347_v45, %v7347_v45 }
 0x35b   : > { %8210 = vmatmul.mubr.bf16.vlgmr.msra.gmra.mrb[32].mxu0 %v7348_v46 }
 0x42b   : > { %7459 = sbr.rel (%p7826_p11) target bundleno = 1084 (0x43c), region = 100 }
 0x42e   : > { %v7448_v48 = vpop.f32.mrb[32].mxu0 }
 0x42f   : > { %v7454_v49 = vadd.f32 %v7448_v48, %v7349_v47  ;;  %v8211_v50 = vpop.f32.mrb[33].mxu0 }
 0x430   : > { %v7451_v51 = vpop.f32.mrb[34].mxu0 }
 0x431   : > { %7455 = vst [vmem:[#allocation2] sm:$0x3] %v7454_v49  ;;  %v8212_v52 = vpop.f32.mrb[35].mxu0 }
 0x438   : > { %v7460_v53 = vld [vmem:[#allocation2] sm:$0x3] }
 0x439   : > { %v7468_v55 = vadd.f32 %v7827_v54, %v7460_v53 }
 0x43b   : > { %7469 = vst [vmem:[#allocation4] sm:$0x3] %v7468_v55 }
 0x43c PF: > { %p8217_p12 = scmp.eq.s32.totalorder %s8621_s21, 3  ;;  %s8574_s11 = smov [#allocation4]  }
 0x43d   : > { %s7477_s12 = sshll.u32 %s8574_s11, 4  ;;  %s7478_s12 = int_to_ptr.vmem [resolvable:$true] %s7477_s12 }
 0x43e   : > { %s8516_s13 = scalar_lea.vmem %s7478_s12, 32  ;;  %p8523_p2 = scmp.lt.s32.totalorder %s7478_s12, %s7478_s12 }
 0x43f   : > { %p8517_p13 = scmp.ne.s32.totalorder %s7478_s12, %s8516_s13  ;;  %p8524_p3 = scmp.lt.s32.totalorder %s8516_s13, %s8516_s13 }
 0x441   : > { %p8518_p0 = pnand %p8517_p13, %p8217_p12  ;;  %p8525_p4 = por %p8524_p3, %p8523_p2 }
 0x443   : > { %p8519_p1 = pneg %p8518_p0 }
 0x445   : > { %p8526_p5 = pnand %p8525_p4, %p8519_p1 }
 0x447   : > { %8529 = shalt.err (!%p8526_p5)
}
 0x448   : > { %s8530_s16 = scalar_lea.hbm %s10058_s5, 32 }
 0x449   : > { %p8531_p6 = scmp.ne.s32.totalorder %s10058_s5, %s8530_s16  ;;  %p8536_p9 = scmp.lt.u32.totalorder %s8530_s16, %s10058_s5 }
 0x44b   : > { %p8532_p7 = pnand %p8531_p6, %p8217_p12 }
 0x44d   : > { %p8533_p8 = pneg %p8532_p7 }
 0x44f   : > { %p8538_p10 = pnand %p8536_p9, %p8533_p8 }
 0x451   : > { %8541 = shalt.err (!%p8538_p10)
}
 0x452   : > { %8214 = dma.vmem_to_hbm [thread:$0]  (%p8217_p12), %s7478_s12, 32, %s10058_s5, [#allocation5]  }
 0x453   : > { %8555 = dma.done.wait (%p8217_p12), [#allocation5], 32  }
 0x454   : > { %8557 = vsyncadd (%p8217_p12), [#allocation5], 4294967264 }
 0x455 PF: > { %p13_p11 = scmp.ge.s32.totalorder %s8624_s22, 6   ;;  %s10059_s18 = smov %s8564_s19 }
 0x456   : > { %s10060_s19 = smov %s8633_s25  ;;  %s10061_s20 = smov %s8624_s22 }
 0x457   :  { %15 = sbr.rel (!%p13_p11) target bundleno = 2 (0x2), region = 142 }
 0x45e   :  { %7490 = vsyncpa [#allocation5], 1 }
 0x45f   :  { %7492 = vsyncpa [#allocation5 + $0x1], 1 }

// kernel: dqn_forward.2
= control target key start
LH: loop header
LB: loop body
LE: loop exit
PB: predicated region body
PF: predicated region fallthrough
CT: control target
= control target key end

     0   :  { %s6131_s15 = smov 0   ;;  %s7034_s0 = inlined_call_operand.vmem [shape: bf16[2,121,1024], index: 0, kind: input, shape index: {}]   ;;  %s7035_s1 = inlined_call_operand.vmem [shape: bf16[1024,128], index: 1, kind: input, shape index: {}]   ;;  %s7036_s2 = inlined_call_operand.vmem [shape: bf16[512,64], index: 2, kind: input, shape index: {}]   ;;  %s7037_s3 = inlined_call_operand.vmem [shape: bf16[576,64], index: 3, kind: input, shape index: {}]   ;;  %s7038_s4 = inlined_call_operand.vmem [shape: bf16[2,64,64], index: 4, kind: output, shape index: {}]  }
   0x1 LB: > { %s4509_s16 = sadd.s32 4294967295, %s6102_s15   ;;  %p4513_p0 = scmp.ge.s32.totalorder %s6102_s15, 1  ;;  %s6102_s15 = sphi %s6131_s15, %s14_s15  }
   0x2   : > { %p162_p1 = scmp.lt.s32.totalorder %s6102_s15, 3 }
   0x4   : > { %p163_p2 = pnand %p4513_p0, %p162_p1 }
   0x5   : > { %v5911_v0 = vld [vmem:[%s7035_s1 + $0x40] sm:$0xff] (!%p163_p2)   ;;  %v5915_v4 = vld [vmem:[%s7035_s1 + $0x48] sm:$0xff] (!%p163_p2)   ;;  %v5919_v8 = vld [vmem:[%s7035_s1 + $0x50] sm:$0xff] (!%p163_p2)   ;;  %p188_p3 = scmp.lt.s32.totalorder (!%p163_p2), %s4509_s16, 1  ;;  %vm6105_vm0 = vmmov (!%p163_p2), 0   ;;  %vm1578_vm2 = vcmask (!%p163_p2), 1040384  }
   0x6   : > { %166 = sbr.rel (%p163_p2) target bundleno = 1209 (0x4b9), region = 36  ;;  %v5912_v1 = vld [vmem:[%s7035_s1 + $0xc0] sm:$0xff] (!%p163_p2)   ;;  %4959 = vmatprep.subr.bf16.mxu0 (!%p163_p2), %v5911_v0  ;;  %v5916_v5 = vld [vmem:[%s7035_s1 + $0xc8] sm:$0xff] (!%p163_p2)   ;;  %v5920_v9 = vld [vmem:[%s7035_s1 + $0xd0] sm:$0xff] (!%p163_p2)   ;;  %vm1665_vm1 = vsmask.f32 (!%p163_p2), 7424 }
   0x7   : > { %v5913_v2 = vld [vmem:[%s7035_s1] sm:$0xff] (!%p163_p2)   ;;  %5023 = vmatprep.subr.bf16.mxu1 (!%p163_p2), %v5912_v1  ;;  %v5917_v6 = vld [vmem:[%s7035_s1 + $0x8] sm:$0xff] (!%p163_p2)   ;;  %v5921_v10 = vld [vmem:[%s7035_s1 + $0x10] sm:$0xff] (!%p163_p2)   ;;  %vm1579_vm3 = vsmask.f32 (!%p163_p2), 256  ;;  %vm2364_vm6 = vcmask (!%p163_p2), 1045504  }
   0x8   : > { %v5914_v3 = vld [vmem:[%s7035_s1 + $0x80] sm:$0xff] (!%p163_p2)   ;;  %4960 = vmatpush3.bf16.msra.mxu0 (!%p163_p2), %v5913_v2  ;;  %v5918_v7 = vld [vmem:[%s7035_s1 + $0x88] sm:$0xff] (!%p163_p2)   ;;  %v5922_v11 = vld [vmem:[%s7035_s1 + $0x90] sm:$0xff] (!%p163_p2)   ;;  %vm2074_vm5 = vsmask.f32 (!%p163_p2), 6400  ;;  %vm2608_vm7 = vcmask (!%p163_p2), 519168  }
   0x9   : > { %5024 = vmatpush3.bf16.msra.mxu1 (!%p163_p2), %v5914_v3  ;;  %4961 = vmatprep.subr.bf16.mxu0 (!%p163_p2), %v5915_v4  ;;  %v5923_v12 = vld [vmem:[%s7035_s1 + $0x58] sm:$0xff] (!%p163_p2)   ;;  %v5927_v16 = vld [vmem:[%s7035_s1 + $0x60] sm:$0xff] (!%p163_p2)   ;;  %v5931_v20 = vld [vmem:[%s7035_s1 + $0x68] sm:$0xff] (!%p163_p2)   ;;  %vm2754_vm8 = vcmask (!%p163_p2), 523264   ;;  %vm2622_vm9 = vcmask (!%p163_p2), 518144   ;;  %vm2985_vm12 = vcmask (!%p163_p2), 1046528  }
   0xa   : > { %5025 = vmatprep.subr.bf16.mxu1 (!%p163_p2), %v5916_v5  ;;  %v5924_v13 = vld [vmem:[%s7035_s1 + $0xd8] sm:$0xff] (!%p163_p2)   ;;  %v5928_v17 = vld [vmem:[%s7035_s1 + $0xe0] sm:$0xff] (!%p163_p2)   ;;  %v5932_v21 = vld [vmem:[%s7035_s1 + $0xe8] sm:$0xff] (!%p163_p2)   ;;  %vm2623_vm10 = vsmask.f32 (!%p163_p2), 2304  ;;  %vm3802_vm14 = vcmask (!%p163_p2), 1044480  }
   0xb   : > { %v5925_v14 = vld [vmem:[%s7035_s1 + $0x18] sm:$0xff] (!%p163_p2)   ;;  %v5929_v18 = vld [vmem:[%s7035_s1 + $0x20] sm:$0xff] (!%p163_p2)   ;;  %v5933_v22 = vld [vmem:[%s7035_s1 + $0x28] sm:$0xff] (!%p163_p2)   ;;  %vm3565_vm13 = vsmask.f32 (!%p163_p2), 5376 }
   0xc   : > { %4962 = vmatpush3.bf16.msra.mxu0 (!%p163_p2), %v5917_v6  ;;  %v5926_v15 = vld [vmem:[%s7035_s1 + $0x98] sm:$0xff] (!%p163_p2)   ;;  %v5930_v19 = vld [vmem:[%s7035_s1 + $0xa0] sm:$0xff] (!%p163_p2)   ;;  %v5934_v23 = vld [vmem:[%s7035_s1 + $0xa8] sm:$0xff] (!%p163_p2)   ;;  %vm3955_vm15 = vsmask.f32 (!%p163_p2), 4352 }
   0xd   : > { %5026 = vmatpush3.bf16.msra.mxu1 %v5918_v7  ;;  %4963 = vmatprep.subr.bf16.mxu0 %v5919_v8  ;;  %s7046_s16 = smov (!%p188_p3, %s4509_s16), 1  ;;  %v5935_v24 = vld [vmem:[%s7035_s1 + $0x70] sm:$0xff]   ;;  %v5939_v28 = vld [vmem:[%s7035_s1 + $0x78] sm:$0xff]   ;;  %v5943_v40 = vld [vmem:[%s7035_s1 + $0x140] sm:$0xff]  }
   0xe   : > { %5027 = vmatprep.subr.bf16.mxu1 %v5920_v9  ;;  %v5936_v25 = vld [vmem:[%s7035_s1 + $0xf0] sm:$0xff]   ;;  %s4872_s23 = sshll.u32 %s7046_s16, 9  ;;  %v5940_v29 = vld [vmem:[%s7035_s1 + $0xf8] sm:$0xff]   ;;  %v5944_v41 = vld [vmem:[%s7035_s1 + $0x100] sm:$0xff]  }
   0xf   : > { %v5937_v26 = vld [vmem:[%s7035_s1 + $0x30] sm:$0xff]   ;;  %s6239_s6 = scalar_lea.vmem %s7034_s0, %s4872_s23  ;;  %v5941_v30 = vld [vmem:[%s7035_s1 + $0x38] sm:$0xff]   ;;  %v5945_v42 = vld [vmem:[%s7035_s1 + $0x1c0] sm:$0xff]   ;;  %s4873_s23 = sshll.u32 %s7046_s16, 5 }
  0x10   : > { %4964 = vmatpush3.bf16.msra.mxu0 %v5921_v10  ;;  %v5938_v27 = vld [vmem:[%s7035_s1 + $0xb0] sm:$0xff]   ;;  %v5942_v31 = vld [vmem:[%s7035_s1 + $0xb8] sm:$0xff]   ;;  %v199_v32 = vld [vmem:[%s6239_s6] sm:$0xff]  ;;  %s6987_s26 = scalar_lea.vmem %s7038_s4, %s4873_s23 }
  0x11   : > { %5028 = vmatpush3.bf16.msra.mxu1 %v5922_v11  ;;  %4965 = vmatprep.subr.bf16.mxu0 %v5923_v12  ;;  %v203_v33 = vld [vmem:[%s6239_s6 + $0x20] sm:$0xff]  ;;  %v200_v34 = vld [vmem:[%s6239_s6 + $0x8] sm:$0xff]  ;;  %v5951_v62 = vld [vmem:[%s7035_s1 + $0x150] sm:$0xff]  }
  0x12   : > { %5029 = vmatprep.subr.bf16.mxu1 %v5924_v13  ;;  %v4518_v35 = vcombine.low %v199_v32, %v203_v33  ;;  %v4519_v36 = vcombine.high %v199_v32, %v203_v33  ;;  %v204_v37 = vld [vmem:[%s6239_s6 + $0x28] sm:$0xff]  ;;  %v5946_v43 = vld [vmem:[%s7035_s1 + $0x180] sm:$0xff]   ;;  %v5952_v63 = vld [vmem:[%s7035_s1 + $0x110] sm:$0xff]  }
  0x13   : > { %v4520_v38 = vcombine.low %v200_v34, %v204_v37  ;;  %v4521_v39 = vcombine.high %v200_v34, %v204_v37  ;;  %v207_v44 = vld [vmem:[%s6239_s6 + $0x40] sm:$0xff]  ;;  %v208_v47 = vld [vmem:[%s6239_s6 + $0x48] sm:$0xff]  ;;  %v5953_v0 = vld [vmem:[%s7035_s1 + $0x1d0] sm:$0xff]  }
  0x14   : > { %4966 = vmatpush3.bf16.msra.mxu0 %v5925_v14  ;;  %1127 = vmatprep.mubr.bf16.mxu0 %v4519_v36  ;;  %v211_v45 = vld [vmem:[%s6239_s6 + $0x60] sm:$0xff]  ;;  %v212_v48 = vld [vmem:[%s6239_s6 + $0x68] sm:$0xff]  ;;  %v5954_v1 = vld [vmem:[%s7035_s1 + $0x190] sm:$0xff]  }
  0x15   : > { %5030 = vmatpush3.bf16.msra.mxu1 %v5926_v15  ;;  %4967 = vmatprep.subr.bf16.mxu0 %v5927_v16  ;;  %v4527_v46 = vcombine.high %v207_v44, %v211_v45  ;;  %v4529_v49 = vcombine.high %v208_v47, %v212_v48  ;;  %v5947_v50 = vld [vmem:[%s7035_s1 + $0x148] sm:$0xff]   ;;  %v4526_v51 = vcombine.low %v207_v44, %v211_v45  ;;  %v215_v56 = vld [vmem:[%s6239_s6 + $0x80] sm:$0xff]  ;;  %v5955_v10 = vld [vmem:[%s7035_s1 + $0x158] sm:$0xff]  }
  0x16   : > { %5031 = vmatprep.subr.bf16.mxu1 %v5928_v17  ;;  %1224 = vmatprep.mubr.bf16.mxu1 %v4521_v39  ;;  %v5948_v52 = vld [vmem:[%s7035_s1 + $0x108] sm:$0xff]   ;;  %v4528_v53 = vcombine.low %v208_v47, %v212_v48  ;;  %v219_v57 = vld [vmem:[%s6239_s6 + $0xa0] sm:$0xff]  ;;  %v5956_v11 = vld [vmem:[%s7035_s1 + $0x118] sm:$0xff]  }
  0x17   : > { %v5949_v54 = vld [vmem:[%s7035_s1 + $0x1c8] sm:$0xff]   ;;  %v4535_v60 = vcombine.high %v215_v56, %v219_v57  ;;  %v4534_v2 = vcombine.low %v215_v56, %v219_v57  ;;  %v223_v3 = vld [vmem:[%s6239_s6 + $0xc0] sm:$0xff]  ;;  %v5957_v12 = vld [vmem:[%s7035_s1 + $0x1d8] sm:$0xff]  }
  0x18   : > { %4968 = vmatpush3.bf16.msra.mxu0 %v5929_v18  ;;  %v5950_v55 = vld [vmem:[%s7035_s1 + $0x188] sm:$0xff]   ;;  %v227_v4 = vld [vmem:[%s6239_s6 + $0xe0] sm:$0xff]  ;;  %v5958_v13 = vld [vmem:[%s7035_s1 + $0x198] sm:$0xff]  }
  0x19   : > { %5032 = vmatpush3.bf16.msra.mxu1 %v5930_v19  ;;  %4969 = vmatprep.subr.bf16.mxu0 %v5931_v20  ;;  %v216_v58 = vld [vmem:[%s6239_s6 + $0x88] sm:$0xff]  ;;  %v4543_v7 = vcombine.high %v223_v3, %v227_v4  ;;  %v231_v14 = vld [vmem:[%s6239_s6 + $0x100] sm:$0xff]  ;;  %v4542_v19 = vcombine.low %v223_v3, %v227_v4  ;;  %v5968_v39 = vld [vmem:[%s7035_s1 + $0x130] sm:$0xff]  }
  0x1a   : > { %5033 = vmatprep.subr.bf16.mxu1 %v5932_v21  ;;  %v220_v59 = vld [vmem:[%s6239_s6 + $0xa8] sm:$0xff]  ;;  %v235_v15 = vld [vmem:[%s6239_s6 + $0x120] sm:$0xff]  ;;  %v5972_v48 = vld [vmem:[%s7035_s1 + $0x138] sm:$0xff]  }
  0x1b   : > { %v4537_v61 = vcombine.high %v216_v58, %v220_v59  ;;  %v224_v5 = vld [vmem:[%s6239_s6 + $0xc8] sm:$0xff]  ;;  %v4536_v6 = vcombine.low %v216_v58, %v220_v59  ;;  %v5959_v18 = vld [vmem:[%s7035_s1 + $0x160] sm:$0xff]   ;;  %v4550_v34 = vcombine.low %v231_v14, %v235_v15  ;;  %vm1580_vm4 = vmand %vm1578_vm2, %vm1579_vm3 }
  0x1c   : > { %4970 = vmatpush3.bf16.msra.mxu0 %v5933_v22  ;;  %v228_v8 = vld [vmem:[%s6239_s6 + $0xe8] sm:$0xff]  ;;  %v5960_v20 = vld [vmem:[%s7035_s1 + $0x120] sm:$0xff]   ;;  %v4551_v22 = vcombine.high %v231_v14, %v235_v15  ;;  %v217_v14 = vld [vmem:[%s6239_s6 + $0x90] sm:$0xff] }
  0x1d   : > { %5034 = vmatpush3.bf16.msra.mxu1 %v5934_v23  ;;  %4971 = vmatprep.subr.bf16.mxu0 %v5935_v24  ;;  %v4545_v9 = vcombine.high %v224_v5, %v228_v8  ;;  %v232_v16 = vld [vmem:[%s6239_s6 + $0x108] sm:$0xff]  ;;  %v4544_v21 = vcombine.low %v224_v5, %v228_v8  ;;  %v5961_v23 = vld [vmem:[%s7035_s1 + $0x1e0] sm:$0xff]   ;;  %v210_v8 = vld [vmem:[%s6239_s6 + $0x58] sm:$0xff] }
  0x1e   : > { %5035 = vmatprep.subr.bf16.mxu1 %v5936_v25  ;;  %v236_v17 = vld [vmem:[%s6239_s6 + $0x128] sm:$0xff]  ;;  %v5962_v25 = vld [vmem:[%s7035_s1 + $0x1a0] sm:$0xff]   ;;  %v221_v15 = vld [vmem:[%s6239_s6 + $0xb0] sm:$0xff] }
  0x1f   : > { %v4553_v24 = vcombine.high %v232_v16, %v236_v17  ;;  %v5965_v32 = vld [vmem:[%s7035_s1 + $0x1e8] sm:$0xff]   ;;  %vm2624_vm11 = vmand %vm2622_vm9, %vm2623_vm10  ;;  %vm4379_vm9 = vcmask 1045508  }
  0x20   : > { %4972 = vmatpush3.bf16.msra.mxu0 %v5937_v26  ;;  %v239_v26 = vld [vmem:[%s6239_s6 + $0x140] sm:$0xff]  ;;  %v5966_v33 = vld [vmem:[%s7035_s1 + $0x1a8] sm:$0xff]  }
  0x21   : > { %5036 = vmatpush3.bf16.msra.mxu1 %v5938_v27  ;;  %4973 = vmatprep.subr.bf16.mxu0 %v5939_v28  ;;  %v243_v27 = vld [vmem:[%s6239_s6 + $0x160] sm:$0xff]  ;;  %v5963_v28 = vld [vmem:[%s7035_s1 + $0x168] sm:$0xff]  }
  0x22   : > { %5037 = vmatprep.subr.bf16.mxu1 %v5940_v29  ;;  %v240_v29 = vld [vmem:[%s6239_s6 + $0x148] sm:$0xff]  ;;  %v4559_v36 = vcombine.high %v239_v26, %v243_v27  ;;  %v4558_v47 = vcombine.low %v239_v26, %v243_v27  ;;  %v4538_v26 = vcombine.low %v217_v14, %v221_v15 }
  0x23   : > { %v248_v44 = vld [vmem:[%s6239_s6 + $0x188] sm:$0xff] }
  0x24   : > { %4974 = vmatpush3.bf16.msra.mxu0 %v5941_v30  ;;  %v244_v30 = vld [vmem:[%s6239_s6 + $0x168] sm:$0xff] }
  0x25   : > { %5038 = vmatpush3.bf16.msra.mxu1 %v5942_v31  ;;  %5087 = vmatprep.subr.bf16.mxu0 %v5943_v40  ;;  %v5964_v31 = vld [vmem:[%s7035_s1 + $0x128] sm:$0xff]   ;;  %v4561_v37 = vcombine.high %v240_v29, %v244_v30  ;;  %v5969_v40 = vld [vmem:[%s7035_s1 + $0x1f0] sm:$0xff]  }
  0x26   : > { %5151 = vmatprep.subr.bf16.mxu1 %v5945_v42  ;;  %v251_v42 = vld [vmem:[%s6239_s6 + $0x1a0] sm:$0xff]  ;;  %v252_v45 = vld [vmem:[%s6239_s6 + $0x1a8] sm:$0xff] }
  0x27   : > { %1128 = vmatmul.mubr.bf16.vlgmr.msra.gmra.mrb[0].mxu0 %v4518_v35  ;;  %v4552_v35 = vcombine.low %v232_v16, %v236_v17  ;;  %v256_v56 = vld [vmem:[%s6239_s6 + $0x1c8] sm:$0xff]  ;;  %v4568_v59 = vcombine.low %v248_v44, %v252_v45  ;;  %v218_v16 = vld [vmem:[%s6239_s6 + $0x98] sm:$0xff] }
  0x28   : > { %1225 = vmatmul.mubr.bf16.vlgmr.msra.gmra.mrb[0].mxu1 %v4520_v38  ;;  %5088 = vmatpush3.bf16.msra.mxu0 %v5944_v41  ;;  %v5967_v38 = vld [vmem:[%s7035_s1 + $0x170] sm:$0xff]   ;;  %v247_v41 = vld [vmem:[%s6239_s6 + $0x180] sm:$0xff]  ;;  %v260_v57 = vld [vmem:[%s6239_s6 + $0x1e8] sm:$0x11] }
  0x29   : > { %5152 = vmatpush3.bf16.msra.mxu1 %v5946_v43  ;;  %1135 = vmatprep.mubr.bf16.mxu0 %v4527_v46  ;;  %v5970_v43 = vld [vmem:[%s7035_s1 + $0x1b0] sm:$0xff]   ;;  %v5971_v46 = vld [vmem:[%s7035_s1 + $0x178] sm:$0xff]   ;;  %v4566_v58 = vcombine.low %v247_v41, %v251_v42  ;;  %v4576_v3 = vcombine.low %v256_v56, %v260_v57 }
  0x2a   : > { %1232 = vmatprep.mubr.bf16.mxu1 %v4529_v49  ;;  %5089 = vmatprep.subr.bf16.mxu0 %v5947_v50  ;;  %v4560_v49 = vcombine.low %v240_v29, %v244_v30  ;;  %v4567_v50 = vcombine.high %v247_v41, %v251_v42  ;;  %v222_v17 = vld [vmem:[%s6239_s6 + $0xb8] sm:$0xff]  ;;  %v233_v30 = vld [vmem:[%s6239_s6 + $0x110] sm:$0xff] }
  0x2b   : > { %5153 = vmatprep.subr.bf16.mxu1 %v5949_v54  ;;  %v255_v54 = vld [vmem:[%s6239_s6 + $0x1c0] sm:$0xff]  ;;  %v4540_v27 = vcombine.low %v218_v16, %v222_v17  ;;  %v246_v41 = vld [vmem:[%s6239_s6 + $0x178] sm:$0xff] }
  0x2c   : > { %5090 = vmatpush3.bf16.msra.mxu0 %v5948_v52  ;;  %v4569_v52 = vcombine.high %v248_v44, %v252_v45 }
  0x2d   : > { %5154 = vmatpush3.bf16.msra.mxu1 %v5950_v55  ;;  %5091 = vmatprep.subr.bf16.mxu0 %v5951_v62  ;;  %v259_v55 = vld [vmem:[%s6239_s6 + $0x1e0] sm:$0x11]  ;;  %v201_v62 = vld [vmem:[%s6239_s6 + $0x10] sm:$0xff] }
  0x2e   : > { %5155 = vmatprep.subr.bf16.mxu1 %v5953_v0  ;;  %v202_v0 = vld [vmem:[%s6239_s6 + $0x18] sm:$0xff] }
  0x2f   : > { %1136 = vmatmul.mubr.bf16.gmra.mrb[4].mxu0 %v4526_v51  ;;  %v5973_v51 = vld [vmem:[%s7035_s1 + $0x1f8] sm:$0xff]  }
  0x30   : > { %1233 = vmatmul.mubr.bf16.gmra.mrb[4].mxu1 %v4528_v53  ;;  %1143 = vmatprep.mubr.bf16.mxu0 %v4535_v60  ;;  %v5974_v53 = vld [vmem:[%s7035_s1 + $0x1b8] sm:$0xff]   ;;  %v4575_v60 = vcombine.high %v255_v54, %v259_v55 }
  0x31   : > { %1240 = vmatprep.mubr.bf16.mxu1 %v4537_v61  ;;  %5092 = vmatpush3.bf16.msra.mxu0 %v5952_v63  ;;  %v4577_v61 = vcombine.high %v256_v56, %v260_v57  ;;  %v205_v63 = vld [vmem:[%s6239_s6 + $0x30] sm:$0xff]  ;;  %v258_v56 = vld [vmem:[%s6239_s6 + $0x1d8] sm:$0xff] }
  0x32   : > { %5156 = vmatpush3.bf16.msra.mxu1 %v5954_v1  ;;  %5093 = vmatprep.subr.bf16.mxu0 %v5955_v10  ;;  %v206_v1 = vld [vmem:[%s6239_s6 + $0x38] sm:$0xff]  ;;  %v4523_v4 = vcombine.high %v201_v62, %v205_v63  ;;  %v4522_v10 = vcombine.low %v201_v62, %v205_v63 }
  0x33   : > { %5157 = vmatprep.subr.bf16.mxu1 %v5957_v12  ;;  %v4525_v5 = vcombine.high %v202_v0, %v206_v1  ;;  %v262_v57 = vld [vmem:[%s6239_s6 + $0x1f8] sm:$0x11] }
  0x34   : > { %v4580_v63 = vcombine.low %v258_v56, %v262_v57 }
  0x35   : > { %5094 = vmatpush3.bf16.msra.mxu0 %v5956_v11  ;;  %v4524_v11 = vcombine.low %v202_v0, %v206_v1  ;;  %v5975_v0 = vld [vmem:[%s7036_s2 + $0x40] sm:$0xff]   ;;  %v6104_v1 = vmov 0.0  }
  0x36   : > { %5158 = vmatpush3.bf16.msra.mxu1 %v5958_v13  ;;  %5095 = vmatprep.subr.bf16.mxu0 %v5959_v18 }
  0x37   : > { %1144 = vmatmul.mubr.bf16.gmra.mrb[8].mxu0 %v4534_v2  ;;  %5159 = vmatprep.subr.bf16.mxu1 %v5961_v23  ;;  %v4574_v2 = vcombine.low %v255_v54, %v259_v55  ;;  %v229_v23 = vld [vmem:[%s6239_s6 + $0xf0] sm:$0xff] }
  0x38   : > { %1241 = vmatmul.mubr.bf16.gmra.mrb[8].mxu1 %v4536_v6  ;;  %1151 = vmatprep.mubr.bf16.mxu0 %v4543_v7  ;;  %v209_v6 = vld [vmem:[%s6239_s6 + $0x50] sm:$0xff] }
  0x39   : > { %1248 = vmatprep.mubr.bf16.mxu1 %v4545_v9  ;;  %5096 = vmatpush3.bf16.msra.mxu0 %v5960_v20  ;;  %v213_v7 = vld [vmem:[%s6239_s6 + $0x70] sm:$0xff]  ;;  %v214_v9 = vld [vmem:[%s6239_s6 + $0x78] sm:$0xff]  ;;  %v4539_v20 = vcombine.high %v217_v14, %v221_v15 }
  0x3a   : > { %5160 = vmatpush3.bf16.msra.mxu1 %v5962_v25  ;;  %5097 = vmatprep.subr.bf16.mxu0 %v5963_v28  ;;  %v4531_v12 = vcombine.high %v209_v6, %v213_v7  ;;  %v4533_v13 = vcombine.high %v210_v8, %v214_v9  ;;  %v4530_v18 = vcombine.low %v209_v6, %v213_v7  ;;  %v230_v25 = vld [vmem:[%s6239_s6 + $0xf8] sm:$0xff]  ;;  %v257_v54 = vld [vmem:[%s6239_s6 + $0x1d0] sm:$0xff]  ;;  %v5980_v6 = vld [vmem:[%s7036_s2 + $0x68] sm:$0xff]  }
  0x3b   : > { %5161 = vmatprep.subr.bf16.mxu1 %v5965_v32  ;;  %v234_v32 = vld [vmem:[%s6239_s6 + $0x118] sm:$0xff]  ;;  %v261_v55 = vld [vmem:[%s6239_s6 + $0x1f0] sm:$0x11] }
  0x3c   : > { %v4578_v62 = vcombine.low %v257_v54, %v261_v55  ;;  %v5981_v7 = vld [vmem:[%s7036_s2 + $0x70] sm:$0xff]  }
  0x3d   : > { %5098 = vmatpush3.bf16.msra.mxu0 %v5964_v31  ;;  %v237_v31 = vld [vmem:[%s6239_s6 + $0x130] sm:$0xff] }
  0x3e   : > { %5162 = vmatpush3.bf16.msra.mxu1 %v5966_v33  ;;  %5099 = vmatprep.subr.bf16.mxu0 %v5967_v38  ;;  %v238_v33 = vld [vmem:[%s6239_s6 + $0x138] sm:$0xff]  ;;  %v241_v38 = vld [vmem:[%s6239_s6 + $0x150] sm:$0xff]  ;;  %v4554_v42 = vcombine.low %v233_v30, %v237_v31 }
  0x3f   : > { %1152 = vmatmul.mubr.bf16.gmra.mrb[12].mxu0 %v4542_v19  ;;  %5163 = vmatprep.subr.bf16.mxu1 %v5969_v40  ;;  %v4532_v19 = vcombine.low %v210_v8, %v214_v9  ;;  %v242_v40 = vld [vmem:[%s6239_s6 + $0x158] sm:$0xff] }
  0x40   : > { %1249 = vmatmul.mubr.bf16.gmra.mrb[12].mxu1 %v4544_v21  ;;  %1159 = vmatprep.mubr.bf16.mxu0 %v4551_v22  ;;  %v4541_v21 = vcombine.high %v218_v16, %v222_v17  ;;  %v225_v22 = vld [vmem:[%s6239_s6 + $0xd0] sm:$0xff]  ;;  %v4565_v45 = vcombine.high %v242_v40, %v246_v41  ;;  %v5982_v8 = vld [vmem:[%s7036_s2 + $0x78] sm:$0xff]  }
  0x41   : > { %1256 = vmatprep.mubr.bf16.mxu1 %v4553_v24  ;;  %5100 = vmatpush3.bf16.msra.mxu0 %v5968_v39  ;;  %v226_v24 = vld [vmem:[%s6239_s6 + $0xd8] sm:$0xff]  ;;  %v4547_v28 = vcombine.high %v225_v22, %v229_v23  ;;  %v245_v39 = vld [vmem:[%s6239_s6 + $0x170] sm:$0xff] }
  0x42   : > { %5164 = vmatpush3.bf16.msra.mxu1 %v5970_v43  ;;  %5101 = vmatprep.subr.bf16.mxu0 %v5971_v46  ;;  %v4549_v29 = vcombine.high %v226_v24, %v230_v25  ;;  %v4556_v43 = vcombine.low %v234_v32, %v238_v33  ;;  %v4563_v44 = vcombine.high %v241_v38, %v245_v39  ;;  %v249_v46 = vld [vmem:[%s6239_s6 + $0x190] sm:$0xff] }
  0x43   : > { %5165 = vmatprep.subr.bf16.mxu1 %v5973_v51  ;;  %v4564_v51 = vcombine.low %v242_v40, %v246_v41 }
  0x45   : > { %5102 = vmatpush3.bf16.msra.mxu0 %v5972_v48  ;;  %v250_v48 = vld [vmem:[%s6239_s6 + $0x198] sm:$0xff] }
  0x46   : > { %5166 = vmatpush3.bf16.msra.mxu1 %v5974_v53  ;;  %5365 = vmatprep.subr.bf16.mxu0 %v6104_v1 }
  0x47   : > { %1160 = vmatmul.mubr.bf16.gmra.mrb[16].mxu0 %v4550_v34  ;;  %v4546_v34 = vcombine.low %v225_v22, %v229_v23 }
  0x48   : > { %1257 = vmatmul.mubr.bf16.gmra.mrb[16].mxu1 %v4552_v35  ;;  %1167 = vmatprep.mubr.bf16.mxu0 %v4559_v36  ;;  %v4548_v35 = vcombine.low %v226_v24, %v230_v25  ;;  %v4555_v36 = vcombine.high %v233_v30, %v237_v31 }
  0x49   : > { %1264 = vmatprep.mubr.bf16.mxu1 %v4561_v37  ;;  %v4557_v37 = vcombine.high %v234_v32, %v238_v33 }
  0x4f   : > { %1168 = vmatmul.mubr.bf16.gmra.mrb[20].mxu0 %v4558_v47  ;;  %v253_v47 = vld [vmem:[%s6239_s6 + $0x1b0] sm:$0xff] }
  0x50   : > { %1265 = vmatmul.mubr.bf16.gmra.mrb[20].mxu1 %v4560_v49  ;;  %1175 = vmatprep.mubr.bf16.mxu0 %v4567_v50  ;;  %v254_v49 = vld [vmem:[%s6239_s6 + $0x1b8] sm:$0xff]  ;;  %v4562_v50 = vcombine.low %v241_v38, %v245_v39 }
  0x51   : > { %1272 = vmatprep.mubr.bf16.mxu1 %v4569_v52  ;;  %v4571_v52 = vcombine.high %v249_v46, %v253_v47  ;;  %v4573_v53 = vcombine.high %v250_v48, %v254_v49 }
  0x57   : > { %1176 = vmatmul.mubr.bf16.gmra.mrb[24].mxu0 %v4566_v58  ;;  %v4570_v58 = vcombine.low %v249_v46, %v253_v47 }
  0x58   : > { %1273 = vmatmul.mubr.bf16.gmra.mrb[24].mxu1 %v4568_v59  ;;  %1183 = vmatprep.mubr.bf16.mxu0 %v4575_v60  ;;  %v4572_v59 = vcombine.low %v250_v48, %v254_v49  ;;  %v4579_v60 = vcombine.high %v257_v54, %v261_v55 }
  0x59   : > { %1280 = vmatprep.mubr.bf16.mxu1 %v4577_v61  ;;  %v4581_v61 = vcombine.high %v258_v56, %v262_v57 }
  0x5f   : > { %1184 = vmatmul.mubr.bf16.gmra.mrb[28].mxu0 %v4574_v2  ;;  %v5976_v2 = vld [vmem:[%s7036_s2 + $0x48] sm:$0xff]  }
  0x60   : > { %1281 = vmatmul.mubr.bf16.gmra.mrb[28].mxu1 %v4576_v3  ;;  %1321 = vmatprep.mubr.bf16.mxu0 %v4523_v4  ;;  %v5977_v3 = vld [vmem:[%s7036_s2 + $0x50] sm:$0xff]   ;;  %v5978_v4 = vld [vmem:[%s7036_s2 + $0x58] sm:$0xff]  }
  0x61   : > { %1418 = vmatprep.mubr.bf16.mxu1 %v4525_v5  ;;  %v5979_v5 = vld [vmem:[%s7036_s2 + $0x60] sm:$0xff]  }
  0x67   : > { %1322 = vmatmul.mubr.bf16.vlgmr.msra.gmra.mrb[32].mxu0 %v4522_v10 }
  0x68   : > { %1419 = vmatmul.mubr.bf16.vlgmr.msra.gmra.mrb[32].mxu1 %v4524_v11  ;;  %1329 = vmatprep.mubr.bf16.mxu0 %v4531_v12 }
  0x69   : > { %1426 = vmatprep.mubr.bf16.mxu1 %v4533_v13  ;;  %5366 = vmatpush3.bf16.msra.mxu0 %v5975_v0 }
  0x6a   : > { %5367 = vmatprep.subr.bf16.mxu0 %v6104_v1 }
  0x6d   : > { %5368 = vmatpush3.bf16.msra.mxu0 %v5976_v2 }
  0x6e   : > { %5369 = vmatprep.subr.bf16.mxu0 %v6104_v1 }
  0x6f   : > { %1330 = vmatmul.mubr.bf16.gmra.mrb[36].mxu0 %v4530_v18 }
  0x70   : > { %1427 = vmatmul.mubr.bf16.gmra.mrb[36].mxu1 %v4532_v19  ;;  %1337 = vmatprep.mubr.bf16.mxu0 %v4539_v20 }
  0x71   : > { %1434 = vmatprep.mubr.bf16.mxu1 %v4541_v21  ;;  %5370 = vmatpush3.bf16.msra.mxu0 %v5977_v3 }
  0x72   : > { %5371 = vmatprep.subr.bf16.mxu0 %v6104_v1 }
  0x75   : > { %5372 = vmatpush3.bf16.msra.mxu0 %v5978_v4 }
  0x76   : > { %5373 = vmatprep.subr.bf16.mxu0 %v6104_v1 }
  0x77   : > { %1338 = vmatmul.mubr.bf16.gmra.mrb[40].mxu0 %v4538_v26 }
  0x78   : > { %1435 = vmatmul.mubr.bf16.gmra.mrb[40].mxu1 %v4540_v27  ;;  %1345 = vmatprep.mubr.bf16.mxu0 %v4547_v28 }
  0x79   : > { %1442 = vmatprep.mubr.bf16.mxu1 %v4549_v29  ;;  %5374 = vmatpush3.bf16.msra.mxu0 %v5979_v5 }
  0x7a   : > { %5375 = vmatprep.subr.bf16.mxu0 %v6104_v1 }
  0x7d   : > { %5376 = vmatpush3.bf16.msra.mxu0 %v5980_v6 }
  0x7e   : > { %5377 = vmatprep.subr.bf16.mxu0 %v6104_v1 }
  0x7f   : > { %1346 = vmatmul.mubr.bf16.gmra.mrb[44].mxu0 %v4546_v34 }
  0x80   : > { %1443 = vmatmul.mubr.bf16.gmra.mrb[44].mxu1 %v4548_v35  ;;  %1353 = vmatprep.mubr.bf16.mxu0 %v4555_v36 }
  0x81   : > { %1450 = vmatprep.mubr.bf16.mxu1 %v4557_v37  ;;  %5378 = vmatpush3.bf16.msra.mxu0 %v5981_v7 }
  0x82   : > { %5379 = vmatprep.subr.bf16.mxu0 %v6104_v1 }
  0x85   : > { %5380 = vmatpush3.bf16.msra.mxu0 %v5982_v8 }
  0x86   : > { %5409 = vmatprep.subr.bf16.mxu0 %v6104_v1 }
  0x87   : > { %1354 = vmatmul.mubr.bf16.gmra.mrb[48].mxu0 %v4554_v42 }
  0x88   : > { %1451 = vmatmul.mubr.bf16.gmra.mrb[48].mxu1 %v4556_v43  ;;  %1361 = vmatprep.mubr.bf16.mxu0 %v4563_v44 }
  0x89   : > { %1458 = vmatprep.mubr.bf16.mxu1 %v4565_v45 }
  0x8f   : > { %1362 = vmatmul.mubr.bf16.gmra.mrb[52].mxu0 %v4562_v50 }
  0x90   : > { %1459 = vmatmul.mubr.bf16.gmra.mrb[52].mxu1 %v4564_v51  ;;  %1369 = vmatprep.mubr.bf16.mxu0 %v4571_v52 }
  0x91   : > { %1466 = vmatprep.mubr.bf16.mxu1 %v4573_v53 }
  0x97   : > { %1370 = vmatmul.mubr.bf16.gmra.mrb[56].mxu0 %v4570_v58 }
  0x98   : > { %1467 = vmatmul.mubr.bf16.gmra.mrb[56].mxu1 %v4572_v59  ;;  %1377 = vmatprep.mubr.bf16.mxu0 %v4579_v60 }
  0x99   : > { %1474 = vmatprep.mubr.bf16.mxu1 %v4581_v61 }
  0x9f   : > { %1378 = vmatmul.mubr.bf16.gmra.mrb[60].mxu0 %v4578_v62 }
  0xa0   : > { %1475 = vmatmul.mubr.bf16.gmra.mrb[60].mxu1 %v4580_v63  ;;  %5381 = vmatprep.mubr.msk.bf16.mxu0 %vm6105_vm0, %v6104_v1 }
  0xfa   : > { %v4975_v9 = vpop.f32.mrb[0].mxu0 }
  0xfb   : > { %v5039_v10 = vpop.f32.mrb[0].mxu1  ;;  %v4976_v11 = vpop.f32.mrb[1].mxu0 }
  0xfc   : > { %v4977_v12 = vadd.f32 %v4976_v11, %v4975_v9  ;;  %v5040_v13 = vpop.f32.mrb[1].mxu1  ;;  %v4978_v14 = vpop.f32.mrb[2].mxu0 }
  0xfd   : > { %v5041_v15 = vadd.f32 %v5040_v13, %v5039_v10  ;;  %v5042_v16 = vpop.f32.mrb[2].mxu1  ;;  %v4979_v17 = vpop.f32.mrb[3].mxu0 }
  0xfe   : > { %v4980_v18 = vadd.f32 %v4979_v17, %v4978_v14  ;;  %v5043_v19 = vpop.f32.mrb[3].mxu1 }
  0xff   : > { %v6442_v20 = vadd.f32 %v5041_v15, %v4977_v12  ;;  %v5044_v21 = vadd.f32 %v5043_v19, %v5042_v16 }
 0x101   : > { %v6444_v22 = vadd.f32 %v5044_v21, %v4980_v18 }
 0x102   : > { %v4981_v23 = vpop.f32.mrb[4].mxu0 }
 0x103   : > { %v5045_v24 = vpop.f32.mrb[4].mxu1  ;;  %v4982_v25 = vpop.f32.mrb[5].mxu0 }
 0x104   : > { %v4983_v26 = vadd.f32 %v4982_v25, %v4981_v23  ;;  %v5046_v27 = vpop.f32.mrb[5].mxu1  ;;  %v4984_v28 = vpop.f32.mrb[6].mxu0 }
 0x105   : > { %v5047_v29 = vadd.f32 %v5046_v27, %v5045_v24  ;;  %v5048_v30 = vpop.f32.mrb[6].mxu1  ;;  %v4985_v31 = vpop.f32.mrb[7].mxu0 }
 0x106   : > { %v4986_v32 = vadd.f32 %v4985_v31, %v4984_v28  ;;  %v5049_v33 = vpop.f32.mrb[7].mxu1 }
 0x107   : > { %v6446_v34 = vadd.f32 %v5047_v29, %v4983_v26  ;;  %v5050_v35 = vadd.f32 %v5049_v33, %v5048_v30 }
 0x109   : > { %v6448_v36 = vadd.f32 %v5050_v35, %v4986_v32 }
 0x10a   : > { %v4987_v37 = vpop.f32.mrb[8].mxu0 }
 0x10b   : > { %v5051_v38 = vpop.f32.mrb[8].mxu1  ;;  %v4988_v39 = vpop.f32.mrb[9].mxu0 }
 0x10c   : > { %v4989_v40 = vadd.f32 %v4988_v39, %v4987_v37  ;;  %v5052_v41 = vpop.f32.mrb[9].mxu1  ;;  %v4990_v42 = vpop.f32.mrb[10].mxu0 }
 0x10d   : > { %v5053_v43 = vadd.f32 %v5052_v41, %v5051_v38  ;;  %v5054_v44 = vpop.f32.mrb[10].mxu1  ;;  %v4991_v45 = vpop.f32.mrb[11].mxu0 }
 0x10e   : > { %v4992_v46 = vadd.f32 %v4991_v45, %v4990_v42  ;;  %v5055_v47 = vpop.f32.mrb[11].mxu1 }
 0x10f   : > { %v6450_v48 = vadd.f32 %v5053_v43, %v4989_v40  ;;  %v5056_v49 = vadd.f32 %v5055_v47, %v5054_v44 }
 0x111   : > { %v6452_v50 = vadd.f32 %v5056_v49, %v4992_v46 }
 0x112   : > { %v4993_v51 = vpop.f32.mrb[12].mxu0 }
 0x113   : > { %v5057_v52 = vpop.f32.mrb[12].mxu1  ;;  %v4994_v53 = vpop.f32.mrb[13].mxu0 }
 0x114   : > { %v4995_v54 = vadd.f32 %v4994_v53, %v4993_v51  ;;  %v5058_v55 = vpop.f32.mrb[13].mxu1  ;;  %v4996_v56 = vpop.f32.mrb[14].mxu0 }
 0x115   : > { %v5059_v57 = vadd.f32 %v5058_v55, %v5057_v52  ;;  %v5060_v58 = vpop.f32.mrb[14].mxu1  ;;  %v4997_v59 = vpop.f32.mrb[15].mxu0 }
 0x116   : > { %v4998_v60 = vadd.f32 %v4997_v59, %v4996_v56  ;;  %v5061_v61 = vpop.f32.mrb[15].mxu1 }
 0x117   : > { %v6454_v62 = vadd.f32 %v5059_v57, %v4995_v54  ;;  %v5062_v63 = vadd.f32 %v5061_v61, %v5060_v58 }
 0x119   : > { %v6456_v0 = vadd.f32 %v5062_v63, %v4998_v60 }
 0x11a   : > { %v4999_v2 = vpop.f32.mrb[16].mxu0 }
 0x11b   : > { %v5063_v3 = vpop.f32.mrb[16].mxu1  ;;  %v5000_v4 = vpop.f32.mrb[17].mxu0 }
 0x11c   : > { %v5001_v5 = vadd.f32 %v5000_v4, %v4999_v2  ;;  %v5064_v6 = vpop.f32.mrb[17].mxu1  ;;  %v5002_v7 = vpop.f32.mrb[18].mxu0 }
 0x11d   : > { %v5065_v8 = vadd.f32 %v5064_v6, %v5063_v3  ;;  %v5066_v9 = vpop.f32.mrb[18].mxu1  ;;  %v5003_v10 = vpop.f32.mrb[19].mxu0 }
 0x11e   : > { %v5004_v11 = vadd.f32 %v5003_v10, %v5002_v7  ;;  %v5067_v12 = vpop.f32.mrb[19].mxu1 }
 0x11f   : > { %v6458_v13 = vadd.f32 %v5065_v8, %v5001_v5  ;;  %v5068_v14 = vadd.f32 %v5067_v12, %v5066_v9 }
 0x121   : > { %v6460_v15 = vadd.f32 %v5068_v14, %v5004_v11 }
 0x122   : > { %v5005_v16 = vpop.f32.mrb[20].mxu0 }
 0x123   : > { %v5069_v17 = vpop.f32.mrb[20].mxu1  ;;  %v5006_v18 = vpop.f32.mrb[21].mxu0 }
 0x124   : > { %v5007_v19 = vadd.f32 %v5006_v18, %v5005_v16  ;;  %v5070_v21 = vpop.f32.mrb[21].mxu1  ;;  %v5008_v23 = vpop.f32.mrb[22].mxu0 }
 0x125   : > { %v5071_v24 = vadd.f32 %v5070_v21, %v5069_v17  ;;  %v5072_v25 = vpop.f32.mrb[22].mxu1  ;;  %v5009_v26 = vpop.f32.mrb[23].mxu0 }
 0x126   : > { %v5010_v27 = vadd.f32 %v5009_v26, %v5008_v23  ;;  %v5073_v28 = vpop.f32.mrb[23].mxu1 }
 0x127   : > { %v6462_v29 = vadd.f32 %v5071_v24, %v5007_v19  ;;  %v5074_v30 = vadd.f32 %v5073_v28, %v5072_v25 }
 0x129   : > { %v6464_v31 = vadd.f32 %v5074_v30, %v5010_v27 }
 0x12a   : > { %v5011_v32 = vpop.f32.mrb[24].mxu0 }
 0x12b   : > { %v5075_v33 = vpop.f32.mrb[24].mxu1  ;;  %v5012_v35 = vpop.f32.mrb[25].mxu0 }
 0x12c   : > { %v5013_v37 = vadd.f32 %v5012_v35, %v5011_v32  ;;  %v5076_v38 = vpop.f32.mrb[25].mxu1  ;;  %v5014_v39 = vpop.f32.mrb[26].mxu0 }
 0x12d   : > { %v5077_v40 = vadd.f32 %v5076_v38, %v5075_v33  ;;  %v5078_v41 = vpop.f32.mrb[26].mxu1  ;;  %v5015_v42 = vpop.f32.mrb[27].mxu0 }
 0x12e   : > { %v5016_v43 = vadd.f32 %v5015_v42, %v5014_v39  ;;  %v5079_v44 = vpop.f32.mrb[27].mxu1 }
 0x12f   : > { %v6466_v45 = vadd.f32 %v5077_v40, %v5013_v37  ;;  %v5080_v46 = vadd.f32 %v5079_v44, %v5078_v41 }
 0x131   : > { %v6468_v47 = vadd.f32 %v5080_v46, %v5016_v43 }
 0x132   : > { %v5017_v49 = vpop.f32.mrb[28].mxu0 }
 0x133   : > { %v5081_v51 = vpop.f32.mrb[28].mxu1  ;;  %v5018_v52 = vpop.f32.mrb[29].mxu0 }
 0x134   : > { %v5019_v53 = vadd.f32 %v5018_v52, %v5017_v49  ;;  %v5082_v54 = vpop.f32.mrb[29].mxu1  ;;  %v5020_v55 = vpop.f32.mrb[30].mxu0 }
 0x135   : > { %v5083_v56 = vadd.f32 %v5082_v54, %v5081_v51  ;;  %v5084_v57 = vpop.f32.mrb[30].mxu1  ;;  %v5021_v58 = vpop.f32.mrb[31].mxu0 }
 0x136   : > { %v5022_v59 = vadd.f32 %v5021_v58, %v5020_v55  ;;  %v5085_v60 = vpop.f32.mrb[31].mxu1 }
 0x137   : > { %v6470_v61 = vadd.f32 %v5083_v56, %v5019_v53  ;;  %v5086_v63 = vadd.f32 %v5085_v60, %v5084_v57 }
 0x139   : > { %v6472_v2 = vadd.f32 %v5086_v63, %v5022_v59 }
 0x13a   : > { %v5103_v3 = vpop.f32.mrb[32].mxu0 }
 0x13b   : > { %v5167_v4 = vpop.f32.mrb[32].mxu1  ;;  %v5104_v5 = vpop.f32.mrb[33].mxu0 }
 0x13c   : > { %v5105_v6 = vadd.f32 %v5104_v5, %v5103_v3  ;;  %v5168_v7 = vpop.f32.mrb[33].mxu1  ;;  %v5106_v8 = vpop.f32.mrb[34].mxu0 }
 0x13d   : > { %v5169_v9 = vadd.f32 %v5168_v7, %v5167_v4  ;;  %v5170_v10 = vpop.f32.mrb[34].mxu1  ;;  %v5107_v11 = vpop.f32.mrb[35].mxu0 }
 0x13e   : > { %v1324_v12 = vadd.f32 %v5105_v6, %v6442_v20  ;;  %v5108_v14 = vadd.f32 %v5107_v11, %v5106_v8  ;;  %v5171_v16 = vpop.f32.mrb[35].mxu1 }
 0x13f   : > { %v5172_v17 = vadd.f32 %v5171_v16, %v5170_v10 }
 0x140   : > { %v1421_v18 = vadd.f32 %v5169_v9, %v1324_v12  ;;  %v1327_v19 = vadd.f32 %v5108_v14, %v6444_v22 }
 0x142   : > { %v1424_v21 = vadd.f32 %v5172_v17, %v1327_v19  ;;  %v5109_v23 = vpop.f32.mrb[36].mxu0  ;;  %v1483_v26 = vmax.f32 %v1421_v18, 0.0 }
 0x143   : > { %v5173_v24 = vpop.f32.mrb[36].mxu1  ;;  %v5110_v25 = vpop.f32.mrb[37].mxu0 }
 0x144   : > { %v1484_v27 = vmax.f32 %v1424_v21, 0.0  ;;  %v5111_v28 = vadd.f32 %v5110_v25, %v5109_v23  ;;  %v5174_v30 = vpop.f32.mrb[37].mxu1  ;;  %v5112_v32 = vpop.f32.mrb[38].mxu0 }
 0x145   : > { %v5175_v33 = vadd.f32 %v5174_v30, %v5173_v24  ;;  %v5176_v35 = vpop.f32.mrb[38].mxu1  ;;  %v5113_v37 = vpop.f32.mrb[39].mxu0 }
 0x146   : > { %v4921_v38 = vpack.c.bf16 %v1484_v27, %v1483_v26  ;;  %v1332_v20 = vadd.f32 %v5111_v28, %v6446_v34  ;;  %v5114_v39 = vadd.f32 %v5113_v37, %v5112_v32  ;;  %v5177_v40 = vpop.f32.mrb[39].mxu1 }
 0x147   : > { %v5178_v41 = vadd.f32 %v5177_v40, %v5176_v35  ;;  %v5985_v40 = vld [vmem:[%s7036_s2] sm:$0xff]  }
 0x148   : > { %4922 = vst [vmem:[#allocation2] sm:$0xff] %v4921_v38   ;;  %v1429_v22 = vadd.f32 %v5175_v33, %v1332_v20  ;;  %v1335_v42 = vadd.f32 %v5114_v39, %v6448_v36 }
 0x14a   : > { %v1432_v43 = vadd.f32 %v5178_v41, %v1335_v42  ;;  %v5115_v44 = vpop.f32.mrb[40].mxu0  ;;  %v1485_v51 = vmax.f32 %v1429_v22, 0.0 }
 0x14b   : > { %v5179_v46 = vpop.f32.mrb[40].mxu1  ;;  %v5116_v49 = vpop.f32.mrb[41].mxu0 }
 0x14c   : > { %v1486_v52 = vmax.f32 %v1432_v43, 0.0  ;;  %v5117_v53 = vadd.f32 %v5116_v49, %v5115_v44  ;;  %v5180_v54 = vpop.f32.mrb[41].mxu1  ;;  %v5118_v55 = vpop.f32.mrb[42].mxu0 }
 0x14d   : > { %v5181_v56 = vadd.f32 %v5180_v54, %v5179_v46  ;;  %v5182_v57 = vpop.f32.mrb[42].mxu1  ;;  %v5119_v58 = vpop.f32.mrb[43].mxu0 }
 0x14e   : > { %v4926_v34 = vpack.c.bf16 %v1486_v52, %v1485_v51  ;;  %v1340_v59 = vadd.f32 %v5117_v53, %v6450_v48  ;;  %v5120_v60 = vadd.f32 %v5119_v58, %v5118_v55  ;;  %v5183_v63 = vpop.f32.mrb[43].mxu1 }
 0x14f   : > { %v5184_v3 = vadd.f32 %v5183_v63, %v5182_v57  ;;  %v6479_v4 = vld [vmem:[#allocation2] sm:$0xff]  }
 0x150   : > { %4953 = vst [vmem:[#allocation2 + $0x8] sm:$0xff] %v4926_v34   ;;  %v1437_v36 = vadd.f32 %v5181_v56, %v1340_v59  ;;  %v1343_v5 = vadd.f32 %v5120_v60, %v6452_v50  ;;  %v1669_v10 = vshll.u32 %v6479_v4, 16  ;;  %v1667_v32 = vshrl.u32 %v6479_v4, 16  ;;  %v5987_v56 = vld [vmem:[%s7036_s2 + $0x8] sm:$0xff]  }
 0x152   : > { %v1440_v6 = vadd.f32 %v5184_v3, %v1343_v5  ;;  %v5121_v7 = vpop.f32.mrb[44].mxu0  ;;  %v1487_v11 = vmax.f32 %v1437_v36, 0.0  ;;  %v1671_v27 = vrot.slane %v1669_v10, 1 }
 0x153   : > { %v5185_v8 = vpop.f32.mrb[44].mxu1  ;;  %v5122_v9 = vpop.f32.mrb[45].mxu0 }
 0x154   : > { %v1488_v12 = vmax.f32 %v1440_v6, 0.0  ;;  %v5123_v14 = vadd.f32 %v5122_v9, %v5121_v7  ;;  %v5186_v16 = vpop.f32.mrb[45].mxu1  ;;  %v5124_v48 = vpop.f32.mrb[46].mxu0 }
 0x155   : > { %v5187_v17 = vadd.f32 %v5186_v16, %v5185_v8  ;;  %v5188_v18 = vpop.f32.mrb[46].mxu1  ;;  %v5125_v19 = vpop.f32.mrb[47].mxu0  ;;  %v5988_v8 = vld [vmem:[%s7036_s2 + $0x10] sm:$0xff]  }
 0x156   : > { %v4931_v21 = vpack.c.bf16 %v1488_v12, %v1487_v11  ;;  %v1348_v23 = vadd.f32 %v5123_v14, %v6454_v62  ;;  %v5126_v24 = vadd.f32 %v5125_v19, %v5124_v48  ;;  %v5189_v25 = vpop.f32.mrb[47].mxu1  ;;  %v1672_v62 = vor.u32 %v1671_v27, %v1667_v32 }
 0x157   : > { %v5190_v50 = vadd.f32 %v5189_v25, %v5188_v18  ;;  %v6484_v26 = vld [vmem:[#allocation2 + $0x8] sm:$0xff]  }
 0x158   : > { %4954 = vst [vmem:[#allocation2 + $0x10] sm:$0xff] %v4931_v21   ;;  %v1445_v28 = vadd.f32 %v5187_v17, %v1348_v23  ;;  %v1351_v30 = vadd.f32 %v5126_v24, %v6456_v0  ;;  %v1674_v33 = vshll.u32 %v6484_v26, 16  ;;  %v5990_v24 = vld [vmem:[%s7036_s2 + $0x18] sm:$0xff]  }
 0x15a   : > { %v1448_v35 = vadd.f32 %v5190_v50, %v1351_v30  ;;  %v5127_v37 = vpop.f32.mrb[48].mxu0  ;;  %v1676_v39 = vrot.slane %v1674_v33, 1  ;;  %v1489_v41 = vmax.f32 %v1445_v28, 0.0 }
 0x15b   : > { %v5191_v38 = vpop.f32.mrb[48].mxu1  ;;  %v5128_v20 = vpop.f32.mrb[49].mxu0 }
 0x15c   : > { %v1490_v22 = vmax.f32 %v1448_v35, 0.0  ;;  %v5129_v42 = vadd.f32 %v5128_v20, %v5127_v37  ;;  %v5192_v43 = vpop.f32.mrb[49].mxu1  ;;  %v5130_v0 = vpop.f32.mrb[50].mxu0  ;;  %v1677_v51 = vsel %vm1665_vm1, %v1672_v62, %v1676_v39  ;;  %v5992_v62 = vld [vmem:[%s7036_s2 + $0x20] sm:$0xff]  }
 0x15d   : > { %v5193_v44 = vadd.f32 %v5192_v43, %v5191_v38  ;;  %v5194_v46 = vpop.f32.mrb[50].mxu1  ;;  %v5131_v49 = vpop.f32.mrb[51].mxu0  ;;  %5382 = vmatmul.mubr.bf16.vlgmr.msra.gmra.mrb[64].mxu0 %v1677_v51 }
 0x15e   : > { %v4936_v52 = vpack.c.bf16 %v1490_v22, %v1489_v41  ;;  %v1356_v53 = vadd.f32 %v5129_v42, %v6458_v13  ;;  %v5132_v54 = vadd.f32 %v5131_v49, %v5130_v0  ;;  %v5195_v55 = vpop.f32.mrb[51].mxu1  ;;  %5410 = vmatpush3.bf16.msra.mxu0 %v5985_v40  ;;  %5385 = vmatprep.mubr.msk.bf16.mxu0 %vm6105_vm0, %v6104_v1  ;;  %v1678_v13 = vshrl.u32 %v6484_v26, 16 }
 0x15f   : > { %v5196_v57 = vadd.f32 %v5195_v55, %v5194_v46  ;;  %v6499_v58 = vld [vmem:[#allocation2 + $0x10] sm:$0xff]   ;;  %5411 = vmatprep.subr.bf16.mxu0 %v6104_v1 }
 0x160   : > { %4955 = vst [vmem:[#allocation2 + $0x18] sm:$0xff] %v4936_v52   ;;  %v1453_v34 = vadd.f32 %v5193_v44, %v1356_v53  ;;  %v1359_v59 = vadd.f32 %v5132_v54, %v6460_v15  ;;  %v1682_v60 = vshll.u32 %v6499_v58, 16  ;;  %v1680_v6 = vor.u32 %v1678_v13, %v1676_v39  ;;  %v5994_v53 = vld [vmem:[%s7036_s2 + $0x28] sm:$0xff]  }
 0x162   : > { %v1456_v63 = vadd.f32 %v5196_v57, %v1359_v59  ;;  %v5133_v3 = vpop.f32.mrb[52].mxu0  ;;  %v1684_v7 = vrot.slane %v1682_v60, 1  ;;  %5412 = vmatpush3.bf16.msra.mxu0 %v5987_v56  ;;  %v1491_v9 = vmax.f32 %v1453_v34, 0.0 }
 0x163   : > { %v5197_v36 = vpop.f32.mrb[52].mxu1  ;;  %v5134_v5 = vpop.f32.mrb[53].mxu0  ;;  %5413 = vmatprep.subr.bf16.mxu0 %v6104_v1 }
 0x164   : > { %v1492_v10 = vmax.f32 %v1456_v63, 0.0  ;;  %v5135_v15 = vadd.f32 %v5134_v5, %v5133_v3  ;;  %v5198_v11 = vpop.f32.mrb[53].mxu1  ;;  %v5136_v12 = vpop.f32.mrb[54].mxu0  ;;  %v1685_v17 = vsel %vm1665_vm1, %v1680_v6, %v1684_v7  ;;  %v5996_v5 = vld [vmem:[%s7036_s2 + $0x30] sm:$0xff]  }
 0x165   : > { %v5199_v14 = vadd.f32 %v5198_v11, %v5197_v36  ;;  %v5200_v16 = vpop.f32.mrb[54].mxu1  ;;  %v5137_v48 = vpop.f32.mrb[55].mxu0  ;;  %5386 = vmatmul.mubr.bf16.gmra.mrb[68].mxu0 %v1685_v17 }
 0x166   : > { %v4941_v18 = vpack.c.bf16 %v1492_v10, %v1491_v9  ;;  %v1364_v19 = vadd.f32 %v5135_v15, %v6462_v29  ;;  %v5138_v21 = vadd.f32 %v5137_v48, %v5136_v12  ;;  %v5201_v23 = vpop.f32.mrb[55].mxu1  ;;  %5389 = vmatprep.mubr.msk.bf16.mxu0 %vm6105_vm0, %v6104_v1  ;;  %5414 = vmatpush3.bf16.msra.mxu0 %v5988_v8  ;;  %v1686_v29 = vshrl.u32 %v6499_v58, 16 }
 0x167   : > { %v5202_v25 = vadd.f32 %v5201_v23, %v5200_v16  ;;  %v6516_v50 = vld [vmem:[#allocation2 + $0x18] sm:$0xff]   ;;  %5415 = vmatprep.subr.bf16.mxu0 %v6104_v1 }
 0x168   : > { %4956 = vst [vmem:[#allocation2 + $0x20] sm:$0xff] %v4941_v18   ;;  %v1461_v27 = vadd.f32 %v5199_v14, %v1364_v19  ;;  %v1367_v28 = vadd.f32 %v5138_v21, %v6464_v31  ;;  %v1690_v30 = vshll.u32 %v6516_v50, 16  ;;  %v1688_v38 = vor.u32 %v1686_v29, %v1684_v7  ;;  %v5997_v18 = vld [vmem:[%s7036_s2 + $0x38] sm:$0xff]  }
 0x16a   : > { %v1464_v32 = vadd.f32 %v5202_v25, %v1367_v28  ;;  %v5139_v33 = vpop.f32.mrb[56].mxu0  ;;  %v1692_v20 = vrot.slane %v1690_v30, 1  ;;  %5416 = vmatpush3.bf16.msra.mxu0 %v5990_v24  ;;  %v1493_v39 = vmax.f32 %v1461_v27, 0.0 }
 0x16b   : > { %v5203_v35 = vpop.f32.mrb[56].mxu1  ;;  %v5140_v37 = vpop.f32.mrb[57].mxu0  ;;  %5417 = vmatprep.subr.bf16.mxu0 %v6104_v1 }
 0x16c   : > { %v1494_v40 = vmax.f32 %v1464_v32, 0.0  ;;  %v5141_v31 = vadd.f32 %v5140_v37, %v5139_v33  ;;  %v5204_v41 = vpop.f32.mrb[57].mxu1  ;;  %v5142_v22 = vpop.f32.mrb[58].mxu0  ;;  %v1693_v44 = vsel %vm1665_vm1, %v1688_v38, %v1692_v20 }
 0x16d   : > { %v5205_v42 = vadd.f32 %v5204_v41, %v5203_v35  ;;  %v5206_v43 = vpop.f32.mrb[58].mxu1  ;;  %v5143_v0 = vpop.f32.mrb[59].mxu0  ;;  %5390 = vmatmul.mubr.bf16.gmra.mrb[72].mxu0 %v1693_v44  ;;  %v6000_v44 = vld [vmem:[%s7036_s2 + $0x90] sm:$0xff]  }
 0x16e   : > { %v4946_v46 = vpack.c.bf16 %v1494_v40, %v1493_v39  ;;  %v1372_v49 = vadd.f32 %v5141_v31, %v6466_v45  ;;  %v5144_v51 = vadd.f32 %v5143_v0, %v5142_v22  ;;  %v5207_v52 = vpop.f32.mrb[59].mxu1  ;;  %5393 = vmatprep.mubr.msk.bf16.mxu0 %vm6105_vm0, %v6104_v1  ;;  %5418 = vmatpush3.bf16.msra.mxu0 %v5992_v62  ;;  %v1694_v45 = vshrl.u32 %v6516_v50, 16  ;;  %v5999_v0 = vld [vmem:[%s7036_s2 + $0x88] sm:$0xff]  }
 0x16f   : > { %v5208_v54 = vadd.f32 %v5207_v52, %v5206_v43  ;;  %v6533_v55 = vld [vmem:[#allocation2 + $0x20] sm:$0xff]   ;;  %5419 = vmatprep.subr.bf16.mxu0 %v6104_v1  ;;  %v6007_v52 = vld [vmem:[#allocation2 + $0xc] sm:$0xff]  }
 0x170   : > { %4957 = vst [vmem:[#allocation2 + $0x28] sm:$0xff] %v4946_v46   ;;  %v1469_v56 = vadd.f32 %v5205_v42, %v1372_v49  ;;  %v1375_v57 = vadd.f32 %v5144_v51, %v6468_v47  ;;  %v1698_v34 = vshll.u32 %v6533_v55, 16  ;;  %v1696_v3 = vor.u32 %v1694_v45, %v1692_v20  ;;  %v5998_v43 = vld [vmem:[%s7036_s2 + $0x80] sm:$0xff]   ;;  %v6004_v49 = vld [vmem:[%s7036_s2 + $0xb0] sm:$0xff]  }
 0x171   : > { %v6002_v46 = vld [vmem:[%s7036_s2 + $0xa0] sm:$0xff]  }
 0x172   : > { %v1472_v59 = vadd.f32 %v5208_v54, %v1375_v57  ;;  %v5145_v13 = vpop.f32.mrb[60].mxu0  ;;  %v1700_v36 = vrot.slane %v1698_v34, 1  ;;  %5420 = vmatpush3.bf16.msra.mxu0 %v5994_v53  ;;  %v1495_v6 = vmax.f32 %v1469_v56, 0.0  ;;  %v6029_v51 = vld [vmem:[%s7037_s3 + $0x20] sm:$0xff]   ;;  %v2084_v54 = vshrl.u32 %v6007_v52, 16 }
 0x173   : > { %v5146_v60 = vpop.f32.mrb[61].mxu0  ;;  %v5209_v63 = vpop.f32.mrb[60].mxu1  ;;  %5421 = vmatprep.subr.bf16.mxu0 %v6104_v1  ;;  %5541 = vmatprep.subr.bf16.mxu1 %v6029_v51  ;;  %v6006_v53 = vld [vmem:[#allocation2 + $0x4] sm:$0xfe]  }
 0x174   : > { %v1496_v7 = vmax.f32 %v1472_v59, 0.0  ;;  %v5147_v47 = vadd.f32 %v5146_v60, %v5145_v13  ;;  %v5148_v8 = vpop.f32.mrb[62].mxu0  ;;  %v5210_v9 = vpop.f32.mrb[61].mxu1  ;;  %v1701_v12 = vsel %vm1665_vm1, %v1696_v3, %v1700_v36  ;;  %5542 = vmatpush3.bf16.msra.mxu1 %v6029_v51  ;;  %v2076_v56 = vshrl.u32 %v6006_v53, 16  ;;  %v6009_v59 = vld [vmem:[#allocation2 + $0x14] sm:$0xff]  }
 0x175   : > { %v5149_v10 = vpop.f32.mrb[63].mxu0  ;;  %v5211_v15 = vadd.f32 %v5210_v9, %v5209_v63  ;;  %v5212_v11 = vpop.f32.mrb[62].mxu1  ;;  %5394 = vmatmul.mubr.bf16.gmra.mrb[76].mxu0 %v1701_v12  ;;  %v2079_v57 = vshll.u32 %v6006_v53, 16  ;;  %v2086_v45 = vrot.slane %v2084_v54, 1  ;;  %v2093_v3 = vshrl.u32 %v6009_v59, 16  ;;  %v6012_v9 = vld [vmem:[#allocation2 + $0x1c] sm:$0xff]  }
 0x176   : > { %v4951_v14 = vpack.c.bf16 %v1496_v7, %v1495_v6  ;;  %v1380_v16 = vadd.f32 %v5147_v47, %v6470_v61  ;;  %v5150_v48 = vadd.f32 %v5149_v10, %v5148_v8  ;;  %v5213_v17 = vpop.f32.mrb[63].mxu1  ;;  %5397 = vmatprep.mubr.msk.bf16.mxu0 %vm6105_vm0, %v6104_v1  ;;  %5422 = vmatpush3.bf16.msra.mxu0 %v5996_v5  ;;  %v1702_v61 = vshrl.u32 %v6533_v55, 16  ;;  %v6008_v6 = vld [vmem:[%s7036_s2 + $0xc0] sm:$0xff]   ;;  %v6010_v10 = vld [vmem:[%s7036_s2 + $0xc8] sm:$0xff]   ;;  %v6023_v51 = vld [vmem:[#allocation2 + $0x14] sm:$0xff]  }
 0x177   : > { %v5214_v19 = vadd.f32 %v5213_v17, %v5212_v11  ;;  %v6550_v21 = vld [vmem:[#allocation2 + $0x28] sm:$0xff]   ;;  %5423 = vmatprep.subr.bf16.mxu0 %v6104_v1  ;;  %v2078_v13 = vrot.slane %v2076_v56, 1  ;;  %v2081_v60 = vrot.slane %v2079_v57, 2  ;;  %v2095_v47 = vrot.slane %v2093_v3, 1  ;;  %v6024_v53 = vld [vmem:[#allocation2 + $0x1c] sm:$0xff]  }
 0x178   : > { %4958 = vst [vmem:[#allocation2 + $0x30] sm:$0xff] %v4951_v14   ;;  %v1383_v23 = vadd.f32 %v5150_v48, %v6472_v2  ;;  %v1477_v24 = vadd.f32 %v5211_v15, %v1380_v16  ;;  %v1706_v25 = vshll.u32 %v6550_v21, 16  ;;  %v1704_v29 = vor.u32 %v1702_v61, %v1700_v36  ;;  %v1581_v2 = vld [vmem:[#allocation2 + $0x3c] sm:$0x1]  ;;  %v6011_v14 = vld [vmem:[%s7036_s2 + $0xd0] sm:$0xff]   ;;  %v6015_v61 = vld [vmem:[%s7036_s2 + $0xe0] sm:$0xff]  }
 0x179   : > { %v1710_v62 = vshrl.u32 %v6550_v21, 16  ;;  %v2096_v36 = vshll.u32 %v6009_v59, 16  ;;  %v2082_v5 = vor.u32 %v2081_v60, %v2078_v13  ;;  %v2102_v11 = vshrl.u32 %v6012_v9, 16  ;;  %v6025_v56 = vld [vmem:[#allocation2 + $0x24] sm:$0xff]  }
 0x17a   : > { %v1497_v27 = vmax.f32 %v1477_v24, 0.0  ;;  %v1480_v28 = vadd.f32 %v5214_v19, %v1383_v23  ;;  %v1708_v30 = vrot.slane %v1706_v25, 1  ;;  %5424 = vmatpush3.bf16.msra.mxu0 %v5997_v18  ;;  %v2105_v12 = vshll.u32 %v6012_v9, 16  ;;  %v6014_v18 = vld [vmem:[#allocation2 + $0x24] sm:$0xff]   ;;  %v6013_v19 = vld [vmem:[%s7036_s2 + $0xd8] sm:$0xff]  }
 0x17b   : > { %5453 = vmatprep.subr.bf16.mxu0 %v6104_v1  ;;  %v2098_v8 = vrot.slane %v2096_v36, 2  ;;  %v2104_v48 = vrot.slane %v2102_v11, 1  ;;  %v2111_v23 = vshrl.u32 %v6014_v18, 16  ;;  %v2114_v24 = vshll.u32 %v6014_v18, 16 }
 0x17c   : > { %v4888_v32 = vpack.c.bf16 %v1497_v27, %v1497_v27  ;;  %v1498_v33 = vmax.f32 %v1480_v28, 0.0  ;;  %v1709_v35 = vsel %vm1665_vm1, %v1704_v29, %v1708_v30  ;;  %v1712_v40 = vor.u32 %v1710_v62, %v1708_v30  ;;  %v6017_v30 = vld [vmem:[%s7036_s2 + $0xe8] sm:$0xff]  }
 0x17d   : > { %5398 = vmatmul.mubr.bf16.gmra.mrb[80].mxu0 %v1709_v35  ;;  %v2099_v15 = vor.u32 %v2098_v8, %v2095_v47  ;;  %v2107_v17 = vrot.slane %v2105_v12, 2  ;;  %v2113_v27 = vrot.slane %v2111_v23, 1  ;;  %v2116_v28 = vrot.slane %v2114_v24, 2  ;;  %v6019_v35 = vld [vmem:[%s7036_s2 + $0xf0] sm:$0xff]   ;;  %v6032_v47 = vld [vmem:[%s7037_s3 + $0x38] sm:$0xff]  }
 0x17e   : > { %1577 = vst [vmem:[#allocation2 + $0x38] sm:$0xf] %v4888_v32  ;;  %v4889_v37 = vpack.c.bf16 %v1498_v33, %v1498_v33  ;;  %5401 = vmatprep.mubr.msk.bf16.mxu0 %vm6105_vm0, %v6104_v1  ;;  %v2370_v54 = vrot.slane %v6024_v53, 2  ;;  %v2372_v57 = vrot.slane %v6025_v56, 2 }
 0x17f   : > { %v6562_v38 = vld [vmem:[#allocation2 + $0x30] sm:$0x7f]   ;;  %v2117_v32 = vor.u32 %v2116_v28, %v2113_v27 }
 0x180   : > { %v1582_v20 = vsel %vm1580_vm4, %v4889_v37, %v1581_v2  ;;  %v1714_v39 = vshll.u32 %v6562_v38, 16  ;;  %v1718_v22 = vshrl.u32 %v6562_v38, 16  ;;  %v6016_v29 = vld [vmem:[#allocation2 + $0x2c] sm:$0xff]   ;;  %vm4311_vm4 = vsmask.f32 6416 }
 0x181   : > { %1583 = vst [vmem:[#allocation2 + $0x3c] sm:$0x1] %v1582_v20  ;;  %v2120_v33 = vshrl.u32 %v6016_v29, 16  ;;  %v2123_v2 = vshll.u32 %v6016_v29, 16 }
 0x182   : > { %v1716_v31 = vrot.slane %v1714_v39, 1  ;;  %v6020_v39 = vld [vmem:[%s7036_s2 + $0xf8] sm:$0xff]  }
 0x183   : > { %v2125_v20 = vrot.slane %v2123_v2, 2 }
 0x184   : > { %v1717_v41 = vsel %vm1665_vm1, %v1712_v40, %v1716_v31  ;;  %v1720_v42 = vor.u32 %v1718_v22, %v1716_v31 }
 0x185   : > { %5402 = vmatmul.mubr.bf16.gmra.mrb[84].mxu0 %v1717_v41  ;;  %v6018_v62 = vld [vmem:[#allocation2 + $0x34] sm:$0xff]  }
 0x186   : > { %5405 = vmatprep.mubr.msk.bf16.mxu0 %vm6105_vm0, %v6104_v1  ;;  %v2129_v31 = vshrl.u32 %v6018_v62, 16  ;;  %v2132_v41 = vshll.u32 %v6018_v62, 16  ;;  %v6027_v60 = vld [vmem:[#allocation2 + $0x34] sm:$0xff]  }
 0x188   : > { %v6028_v36 = vld [vmem:[#allocation2 + $0x3c] ss:$0 sps:$4 sm:$0x11]  }
 0x18d   : > { %5406 = vmatmul.mubr.bf16.gmra.mrb[88].mxu0 %v1720_v42  ;;  %v2131_v42 = vrot.slane %v2129_v31, 1 }
 0x18e   : > { %5425 = vmatprep.mubr.msk.bf16.mxu0 %vm6105_vm0, %v6104_v1 }
 0x195   : > { %5426 = vmatmul.mubr.bf16.vlgmr.msra.gmra.mrb[64].mxu0 %v6479_v4  ;;  %v6001_v4 = vld [vmem:[%s7036_s2 + $0x98] sm:$0xff]  }
 0x196   : > { %5454 = vmatpush3.bf16.msra.mxu0 %v5998_v43  ;;  %5429 = vmatprep.mubr.msk.bf16.mxu0 %vm6105_vm0, %v6104_v1  ;;  %v2134_v43 = vrot.slane %v2132_v41, 2 }
 0x197   : > { %5455 = vmatprep.subr.bf16.mxu0 %v6104_v1 }
 0x19a   : > { %5456 = vmatpush3.bf16.msra.mxu0 %v5999_v0  ;;  %v2135_v0 = vor.u32 %v2134_v43, %v2131_v42 }
 0x19b   : > { %5457 = vmatprep.subr.bf16.mxu0 %v6104_v1 }
 0x19d   : > { %5430 = vmatmul.mubr.bf16.gmra.mrb[68].mxu0 %v6484_v26  ;;  %v6003_v26 = vld [vmem:[%s7036_s2 + $0xa8] sm:$0xff]  }
 0x19e   : > { %5433 = vmatprep.mubr.msk.bf16.mxu0 %vm6105_vm0, %v6104_v1  ;;  %5458 = vmatpush3.bf16.msra.mxu0 %v6000_v44 }
 0x19f   : > { %5459 = vmatprep.subr.bf16.mxu0 %v6104_v1 }
 0x1a2   : > { %5460 = vmatpush3.bf16.msra.mxu0 %v6001_v4  ;;  %v6022_v4 = vld [vmem:[#allocation2 + $0xc] sm:$0xff]  }
 0x1a3   : > { %5461 = vmatprep.subr.bf16.mxu0 %v6104_v1 }
 0x1a5   : > { %5434 = vmatmul.mubr.bf16.gmra.mrb[72].mxu0 %v6499_v58  ;;  %v6005_v58 = vld [vmem:[%s7036_s2 + $0xb8] sm:$0xff]  }
 0x1a6   : > { %5437 = vmatprep.mubr.msk.bf16.mxu0 %vm6105_vm0, %v6104_v1  ;;  %5462 = vmatpush3.bf16.msra.mxu0 %v6002_v46  ;;  %v6021_v46 = vld [vmem:[#allocation2 + $0x4] sm:$0xfc]  }
 0x1a7   : > { %5463 = vmatprep.subr.bf16.mxu0 %v6104_v1 }
 0x1aa   : > { %5464 = vmatpush3.bf16.msra.mxu0 %v6003_v26  ;;  %v2366_v26 = vrot.slane %v6022_v4, 2 }
 0x1ab   : > { %5465 = vmatprep.subr.bf16.mxu0 %v6104_v1 }
 0x1ad   : > { %5438 = vmatmul.mubr.bf16.gmra.mrb[76].mxu0 %v6516_v50  ;;  %v6030_v50 = vld [vmem:[%s7037_s3 + $0x28] sm:$0xff]  }
 0x1ae   : > { %5441 = vmatprep.mubr.msk.bf16.mxu0 %vm6105_vm0, %v6104_v1  ;;  %5466 = vmatpush3.bf16.msra.mxu0 %v6004_v49  ;;  %v2365_v49 = vrot.slane %v6021_v46, 2 }
 0x1af   : > { %5467 = vmatprep.subr.bf16.mxu0 %v6104_v1  ;;  %5543 = vmatprep.subr.bf16.mxu1 %v6030_v50 }
 0x1b0   : > { %5544 = vmatpush3.bf16.msra.mxu1 %v6030_v50  ;;  %v2368_v50 = vrot.slane %v6023_v51, 2 }
 0x1b2   : > { %5468 = vmatpush3.bf16.msra.mxu0 %v6005_v58  ;;  %v2367_v58 = vsel %vm2364_vm6, %v2365_v49, %v2366_v26 }
 0x1b3   : > { %5497 = vmatprep.subr.bf16.mxu0 %v6104_v1 }
 0x1b5   : > { %5442 = vmatmul.mubr.bf16.gmra.mrb[80].mxu0 %v6533_v55  ;;  %v2087_v55 = vshll.u32 %v6007_v52, 16  ;;  %v2369_v52 = vsel %vm2364_vm6, %v2366_v26, %v2368_v50 }
 0x1b6   : > { %5445 = vmatprep.mubr.msk.bf16.mxu0 %vm6105_vm0, %v6104_v1 }
 0x1b7   : > { %v2089_v34 = vrot.slane %v2087_v55, 2  ;;  %v2371_v55 = vsel %vm2364_vm6, %v2368_v50, %v2370_v54 }
 0x1b9   : > { %v2090_v63 = vor.u32 %v2089_v34, %v2086_v45  ;;  %v2373_v45 = vsel %vm2364_vm6, %v2370_v54, %v2372_v57  ;;  %v6026_v34 = vld [vmem:[#allocation2 + $0x2c] sm:$0xff]  }
 0x1ba   : > { %v2374_v59 = vrot.slane %v6026_v34, 2 }
 0x1bb   : > { %v2091_v7 = vsel %vm2074_vm5, %v2082_v5, %v2090_v63  ;;  %v2100_v16 = vsel %vm2074_vm5, %v2090_v63, %v2099_v15  ;;  %v2376_v63 = vrot.slane %v6027_v60, 2  ;;  %v2378_v5 = vrot.slane %v6028_v36, 2  ;;  %v6038_v60 = vld [vmem:[%s7037_s3 + $0x8] sm:$0xff]  }
 0x1bc   : > { %v2375_v13 = vsel %vm2364_vm6, %v2372_v57, %v2374_v59 }
 0x1bd   : > { %5446 = vmatmul.mubr.bf16.gmra.mrb[84].mxu0 %v6550_v21  ;;  %v2108_v21 = vor.u32 %v2107_v17, %v2104_v48  ;;  %v2377_v3 = vsel %vm2364_vm6, %v2374_v59, %v2376_v63 }
 0x1be   : > { %5449 = vmatprep.mubr.msk.bf16.mxu0 %vm6105_vm0, %v6104_v1 }
 0x1bf   : > { %v2109_v25 = vsel %vm2074_vm5, %v2099_v15, %v2108_v21  ;;  %v2118_v37 = vsel %vm2074_vm5, %v2108_v21, %v2117_v32 }
 0x1c5   : > { %5450 = vmatmul.mubr.bf16.gmra.mrb[88].mxu0 %v6562_v38  ;;  %v2122_v38 = vrot.slane %v2120_v33, 1 }
 0x1c6   : > { %5469 = vmatprep.mubr.msk.bf16.mxu0 %vm6105_vm0, %v6104_v1 }
 0x1c7   : > { %v2126_v40 = vor.u32 %v2125_v20, %v2122_v38 }
 0x1c9   : > { %v2127_v22 = vsel %vm2074_vm5, %v2117_v32, %v2126_v40  ;;  %v2136_v44 = vsel %vm2074_vm5, %v2126_v40, %v2135_v0 }
 0x1cd   : > { %5470 = vmatmul.mubr.bf16.vlgmr.msra.gmra.mrb[64].mxu0 %v2091_v7  ;;  %v6031_v7 = vld [vmem:[%s7037_s3 + $0x30] sm:$0xff]  }
 0x1ce   : > { %5498 = vmatpush3.bf16.msra.mxu0 %v6008_v6  ;;  %5473 = vmatprep.mubr.msk.bf16.mxu0 %vm6105_vm0, %v6104_v1  ;;  %v2379_v6 = vsel %vm2364_vm6, %v2376_v63, %v2378_v5  ;;  %v6040_v5 = vld [vmem:[%s7037_s3 + $0x10] sm:$0xff]  }
 0x1cf   : > { %5499 = vmatprep.subr.bf16.mxu0 %v6104_v1  ;;  %5545 = vmatprep.subr.bf16.mxu1 %v6031_v7 }
 0x1d0   : > { %5546 = vmatpush3.bf16.msra.mxu1 %v6031_v7 }
 0x1d1   : > { %5547 = vmatprep.subr.bf16.mxu1 %v6032_v47 }
 0x1d2   : > { %5500 = vmatpush3.bf16.msra.mxu0 %v6010_v10 }
 0x1d3   : > { %5501 = vmatprep.subr.bf16.mxu0 %v6104_v1 }
 0x1d4   : > { %5548 = vmatpush3.bf16.msra.mxu1 %v6032_v47 }
 0x1d5   : > { %5474 = vmatmul.mubr.bf16.gmra.mrb[68].mxu0 %v2100_v16 }
 0x1d6   : > { %5477 = vmatprep.mubr.msk.bf16.mxu0 %vm6105_vm0, %v6104_v1  ;;  %5502 = vmatpush3.bf16.msra.mxu0 %v6011_v14 }
 0x1d7   : > { %5503 = vmatprep.subr.bf16.mxu0 %v6104_v1 }
 0x1da   : > { %5504 = vmatpush3.bf16.msra.mxu0 %v6013_v19 }
 0x1db   : > { %5505 = vmatprep.subr.bf16.mxu0 %v6104_v1 }
 0x1dd   : > { %5478 = vmatmul.mubr.bf16.gmra.mrb[72].mxu0 %v2109_v25 }
 0x1de   : > { %5481 = vmatprep.mubr.msk.bf16.mxu0 %vm6105_vm0, %v6104_v1  ;;  %5506 = vmatpush3.bf16.msra.mxu0 %v6015_v61 }
 0x1df   : > { %5507 = vmatprep.subr.bf16.mxu0 %v6104_v1 }
 0x1e2   : > { %5508 = vmatpush3.bf16.msra.mxu0 %v6017_v30 }
 0x1e3   : > { %5509 = vmatprep.subr.bf16.mxu0 %v6104_v1 }
 0x1e5   : > { %5482 = vmatmul.mubr.bf16.gmra.mrb[76].mxu0 %v2118_v37 }
 0x1e6   : > { %5485 = vmatprep.mubr.msk.bf16.mxu0 %vm6105_vm0, %v6104_v1  ;;  %5510 = vmatpush3.bf16.msra.mxu0 %v6019_v35 }
 0x1e7   : > { %5511 = vmatprep.subr.bf16.mxu0 %v6104_v1 }
 0x1ea   : > { %5512 = vmatpush3.bf16.msra.mxu0 %v6020_v39 }
 0x1ed   : > { %5486 = vmatmul.mubr.bf16.gmra.mrb[80].mxu0 %v2127_v22 }
 0x1ee   : > { %5489 = vmatprep.mubr.msk.bf16.mxu0 %vm6105_vm0, %v6104_v1 }
 0x1f5   : > { %5490 = vmatmul.mubr.bf16.gmra.mrb[84].mxu0 %v2136_v44 }
 0x1f6   : > { %5493 = vmatprep.mubr.msk.bf16.mxu0 %vm6105_vm0, %v6104_v1 }
 0x1fd   : > { %5494 = vmatmul.mubr.bf16.gmra.mrb[88].mxu0 %v2135_v0 }
 0x1fe   : > { %5513 = vmatprep.mubr.msk.bf16.mxu0 %vm6105_vm0, %v6104_v1 }
 0x205   : > { %5514 = vmatmul.mubr.bf16.vlgmr.msra.gmra.mrb[64].mxu0 %v2367_v58 }
 0x206   : > { %5517 = vmatprep.mubr.msk.bf16.mxu0 %vm6105_vm0, %v6104_v1 }
 0x20d   : > { %5518 = vmatmul.mubr.bf16.gmra.mrb[68].mxu0 %v2369_v52 }
 0x20e   : > { %5521 = vmatprep.mubr.msk.bf16.mxu0 %vm6105_vm0, %v6104_v1 }
 0x215   : > { %5522 = vmatmul.mubr.bf16.gmra.mrb[72].mxu0 %v2371_v55 }
 0x216   : > { %5525 = vmatprep.mubr.msk.bf16.mxu0 %vm6105_vm0, %v6104_v1 }
 0x21d   : > { %5526 = vmatmul.mubr.bf16.gmra.mrb[76].mxu0 %v2373_v45 }
 0x21e   : > { %5529 = vmatprep.mubr.msk.bf16.mxu0 %vm6105_vm0, %v6104_v1 }
 0x225   : > { %5530 = vmatmul.mubr.bf16.gmra.mrb[80].mxu0 %v2375_v13 }
 0x226   : > { %5533 = vmatprep.mubr.msk.bf16.mxu0 %vm6105_vm0, %v6104_v1 }
 0x22d   : > { %5534 = vmatmul.mubr.bf16.gmra.mrb[84].mxu0 %v2377_v3 }
 0x22e   : > { %5537 = vmatprep.mubr.msk.bf16.mxu0 %vm6105_vm0, %v6104_v1  ;;  %v6710_v1 = vld [vmem:[%s7037_s3] sm:$0xff]   ;;  %vm4339_vm0 = vcmask 1044484  }
 0x22f   : > { %5561 = vmatprep.subr.bf16.mxu1 %v6710_v1 }
 0x235   : > { %5538 = vmatmul.mubr.bf16.gmra.mrb[88].mxu0 %v2379_v6 }
 0x2d8   : > { %v2469_v8 = vpop.f32.mrb[64].mxu0 }
 0x2d9   : > { %v2538_v9 = vmax.f32 %v2469_v8, 0.0  ;;  %v5515_v10 = vpop.f32.mrb[65].mxu0 }
 0x2da   : > { %v2472_v15 = vpop.f32.mrb[66].mxu0 }
 0x2db   : > { %v4890_v11 = vpack.c.bf16 %v2538_v9, %v2538_v9  ;;  %v2539_v12 = vmax.f32 %v2472_v15, 0.0  ;;  %v5516_v14 = vpop.f32.mrb[67].mxu0 }
 0x2dd   : > { %2609 = vst.msk [vmem:[#allocation3] sm:$0xf] %vm2608_vm7, %v4890_v11  ;;  %v4891_v16 = vpack.c.bf16 %v2539_v12, %v2539_v12 }
 0x2df   : > { %2610 = vst.msk [vmem:[#allocation3 + $0x4] sm:$0xf] %vm2608_vm7, %v4891_v16  ;;  %v6042_v16 = vld [vmem:[%s7037_s3 + $0x18] sm:$0xff]  }
 0x2e0   : > { %v2477_v48 = vpop.f32.mrb[68].mxu0 }
 0x2e1   : > { %v2540_v17 = vmax.f32 %v2477_v48, 0.0  ;;  %v5519_v18 = vpop.f32.mrb[69].mxu0 }
 0x2e2   : > { %v2480_v19 = vpop.f32.mrb[70].mxu0 }
 0x2e3   : > { %v4892_v21 = vpack.c.bf16 %v2540_v17, %v2540_v17  ;;  %v2541_v23 = vmax.f32 %v2480_v19, 0.0  ;;  %v5520_v24 = vpop.f32.mrb[71].mxu0  ;;  %v6043_v19 = vld [vmem:[%s7037_s3 + $0x40] sm:$0xff]  }
 0x2e4   : > { %v2628_v25 = vld [vmem:[#allocation3] sm:$0xf] }
 0x2e5   : > { %2611 = vst.msk [vmem:[#allocation3 + $0x8] sm:$0xf] %vm2608_vm7, %v4892_v21  ;;  %v4893_v61 = vpack.c.bf16 %v2541_v23, %v2541_v23 }
 0x2e6   : > { %v6716_v27 = vld [vmem:[#allocation3 + $0x4] sm:$0xf] }
 0x2e7   : > { %2612 = vst.msk [vmem:[#allocation3 + $0xc] sm:$0xf] %vm2608_vm7, %v4893_v61  ;;  %v6720_v28 = vcombine.low %v2628_v25, %v6716_v27 }
 0x2e8   : > { %v2485_v29 = vpop.f32.mrb[72].mxu0 }
 0x2e9   : > { %v2542_v30 = vmax.f32 %v2485_v29, 0.0  ;;  %v5523_v32 = vpop.f32.mrb[73].mxu0  ;;  %v2686_v2 = vshll.u32 %v6720_v28, 16  ;;  %v2684_v31 = vshrl.u32 %v6720_v28, 16 }
 0x2ea   : > { %v2488_v33 = vpop.f32.mrb[74].mxu0 }
 0x2eb   : > { %v4894_v35 = vpack.c.bf16 %v2542_v30, %v2542_v30  ;;  %v2543_v37 = vmax.f32 %v2488_v33, 0.0  ;;  %v5524_v38 = vpop.f32.mrb[75].mxu0  ;;  %v2688_v39 = vrot.slane %v2686_v2, 1 }
 0x2ed   : > { %2613 = vst.msk [vmem:[#allocation3 + $0x10] sm:$0xf] %vm2608_vm7, %v4894_v35  ;;  %v4895_v20 = vpack.c.bf16 %v2543_v37, %v2543_v37  ;;  %v2689_v0 = vor.u32 %v2688_v39, %v2684_v31  ;;  %v2625_v35 = vld [vmem:[#allocation3 + $0x34] sm:$0x7] }
 0x2ee   : > { %v6724_v62 = vld [vmem:[#allocation3 + $0x8] sm:$0xff]  }
 0x2ef   : > { %2614 = vst.msk [vmem:[#allocation3 + $0x14] sm:$0xf] %vm2608_vm7, %v4895_v20  ;;  %v2691_v41 = vshll.u32 %v6724_v62, 16  ;;  %v2695_v50 = vshrl.u32 %v6724_v62, 16 }
 0x2f0   : > { %v2493_v40 = vpop.f32.mrb[76].mxu0 }
 0x2f1   : > { %v2544_v22 = vmax.f32 %v2493_v40, 0.0  ;;  %v5527_v42 = vpop.f32.mrb[77].mxu0  ;;  %v2693_v44 = vrot.slane %v2691_v41, 1 }
 0x2f2   : > { %v2496_v43 = vpop.f32.mrb[78].mxu0 }
 0x2f3   : > { %v4896_v4 = vpack.c.bf16 %v2544_v22, %v2544_v22  ;;  %v2545_v46 = vmax.f32 %v2496_v43, 0.0  ;;  %v5528_v26 = vpop.f32.mrb[79].mxu0  ;;  %v2694_v49 = vsel %vm1665_vm1, %v2689_v0, %v2693_v44  ;;  %v2697_v56 = vor.u32 %v2695_v50, %v2693_v44 }
 0x2f4   : > { %5549 = vmatprep.mubr.msk.bf16.mxu1 %vm2754_vm8, %v2694_v49  ;;  %v2969_v26 = vld [vmem:[#allocation3] sm:$0xe]  ;;  %v2987_v50 = vrot.slane %v6724_v62, 1 }
 0x2f5   : > { %2615 = vst.msk [vmem:[#allocation3 + $0x18] sm:$0xf] %vm2608_vm7, %v4896_v4  ;;  %v4897_v58 = vpack.c.bf16 %v2545_v46, %v2545_v46  ;;  %v6044_v4 = vld [vmem:[%s7037_s3 + $0x48] sm:$0xff]   ;;  %v6045_v46 = vld [vmem:[%s7037_s3 + $0x50] sm:$0xff]   ;;  %v4756_v49 = vcombine.low %v2969_v26, %v6716_v27 }
 0x2f6   : > { %v6732_v51 = vld [vmem:[#allocation3 + $0x10] sm:$0xff]   ;;  %v6061_v26 = vld [vmem:[#allocation3 + $0x4] sm:$0xfc]  }
 0x2f7   : > { %2616 = vst.msk [vmem:[#allocation3 + $0x1c] sm:$0xf] %vm2608_vm7, %v4897_v58  ;;  %v2699_v53 = vshll.u32 %v6732_v51, 16  ;;  %v2703_v7 = vshrl.u32 %v6732_v51, 16  ;;  %v6047_v58 = vld [vmem:[%s7037_s3 + $0x60] sm:$0xff]  }
 0x2f8   : > { %v2501_v52 = vpop.f32.mrb[80].mxu0 }
 0x2f9   : > { %v2546_v54 = vmax.f32 %v2501_v52, 0.0  ;;  %v5531_v55 = vpop.f32.mrb[81].mxu0  ;;  %v2701_v45 = vrot.slane %v2699_v53, 1  ;;  %v2986_v52 = vrot.slane %v4756_v49, 1  ;;  %v6065_v49 = vld [vmem:[%s7037_s3 + $0xa0] sm:$0xff]  }
 0x2fa   : > { %v2504_v57 = vpop.f32.mrb[82].mxu0  ;;  %v6048_v55 = vld [vmem:[%s7037_s3 + $0x68] sm:$0xff]  }
 0x2fb   : > { %v4898_v34 = vpack.c.bf16 %v2546_v54, %v2546_v54  ;;  %v2547_v59 = vmax.f32 %v2504_v57, 0.0  ;;  %v5532_v13 = vpop.f32.mrb[83].mxu0  ;;  %v2702_v63 = vsel %vm1665_vm1, %v2697_v56, %v2701_v45  ;;  %v2705_v15 = vor.u32 %v2703_v7, %v2701_v45  ;;  %v6052_v45 = vld [vmem:[#allocation3 + $0xc] sm:$0xff]  }
 0x2fc   : > { %5550 = vmatmul.mubr.msk.bf16.vlgmr.msra.gmra.mrb[64].mxu1 %vm2754_vm8, %v2702_v63  ;;  %v2988_v53 = vsel %vm2985_vm12, %v2986_v52, %v2987_v50  ;;  %v2989_v54 = vrot.slane %v6732_v51, 1  ;;  %v3189_v63 = vshll.u32 %v6052_v45, 16  ;;  %v6054_v7 = vld [vmem:[#allocation3 + $0x14] sm:$0xff]  }
 0x2fd   : > { %2617 = vst.msk [vmem:[#allocation3 + $0x20] sm:$0xf] %vm2608_vm7, %v4898_v34  ;;  %v4899_v3 = vpack.c.bf16 %v2547_v59, %v2547_v59  ;;  %5562 = vmatpush3.bf16.msra.mxu1 %v6710_v1  ;;  %v6051_v34 = vld [vmem:[#allocation3 + $0x4] sm:$0xfe]   ;;  %v6064_v52 = vld [vmem:[#allocation3 + $0x14] sm:$0xff]  }
 0x2fe   : > { %v6743_v36 = vld [vmem:[#allocation3 + $0x18] sm:$0xff]   ;;  %5563 = vmatprep.subr.bf16.mxu1 %v6038_v60 }
 0x2ff   : > { %2618 = vst.msk [vmem:[#allocation3 + $0x24] sm:$0xf] %vm2608_vm7, %v4899_v3  ;;  %v2707_v47 = vshll.u32 %v6743_v36, 16  ;;  %v2711_v23 = vshrl.u32 %v6743_v36, 16  ;;  %v2991_v27 = vrot.slane %v6743_v36, 1  ;;  %v3178_v3 = vshrl.u32 %v6051_v34, 16 }
 0x300   : > { %v2509_v6 = vpop.f32.mrb[84].mxu0 }
 0x301   : > { %v2548_v8 = vmax.f32 %v2509_v6, 0.0  ;;  %v5535_v9 = vpop.f32.mrb[85].mxu0  ;;  %v2709_v11 = vrot.slane %v2707_v47, 1  ;;  %5564 = vmatpush3.bf16.msra.mxu1 %v6038_v60  ;;  %v2992_v56 = vsel %vm2985_vm12, %v2989_v54, %v2991_v27  ;;  %v3186_v60 = vshrl.u32 %v6052_v45, 16 }
 0x302   : > { %v2512_v10 = vpop.f32.mrb[86].mxu0  ;;  %5565 = vmatprep.subr.bf16.mxu1 %v6040_v5  ;;  %v3191_v9 = vrot.slane %v3189_v63, 2 }
 0x303   : > { %v4900_v12 = vpack.c.bf16 %v2548_v8, %v2548_v8  ;;  %v2549_v1 = vmax.f32 %v2512_v10, 0.0  ;;  %v5536_v14 = vpop.f32.mrb[87].mxu0  ;;  %v2710_v48 = vsel %vm1665_vm1, %v2705_v15, %v2709_v11  ;;  %v2713_v30 = vor.u32 %v2711_v23, %v2709_v11 }
 0x304   : > { %5553 = vmatprep.mubr.msk.bf16.mxu1 %vm2754_vm8, %v2710_v48  ;;  %v3188_v8 = vrot.slane %v3186_v60, 1  ;;  %v6056_v10 = vld [vmem:[#allocation3 + $0x1c] sm:$0xff]   ;;  %v3180_v15 = vrot.slane %v3178_v3, 1  ;;  %v3198_v14 = vshll.u32 %v6054_v7, 16  ;;  %v3567_v3 = vshrl.u32 %v6061_v26, 16 }
 0x305   : > { %2619 = vst.msk [vmem:[#allocation3 + $0x28] sm:$0xf] %vm2608_vm7, %v4900_v12  ;;  %v4901_v17 = vpack.c.bf16 %v2549_v1, %v2549_v1  ;;  %5566 = vmatpush3.bf16.msra.mxu1 %v6040_v5  ;;  %v6053_v5 = vld [vmem:[%s7037_s3 + $0x78] sm:$0xff]   ;;  %v6055_v12 = vld [vmem:[%s7037_s3 + $0x80] sm:$0xff]   ;;  %v3195_v1 = vshrl.u32 %v6054_v7, 16  ;;  %v3204_v48 = vshrl.u32 %v6056_v10, 16 }
 0x306   : > { %v6758_v18 = vld [vmem:[#allocation3 + $0x20] sm:$0xff]   ;;  %5567 = vmatprep.subr.bf16.mxu1 %v6042_v16 }
 0x307   : > { %2620 = vst.msk [vmem:[#allocation3 + $0x2c] sm:$0xf] %vm2608_vm7, %v4901_v17  ;;  %v2715_v24 = vshll.u32 %v6758_v18, 16  ;;  %v2719_v40 = vshrl.u32 %v6758_v18, 16  ;;  %v2993_v59 = vrot.slane %v6758_v18, 1  ;;  %v3207_v17 = vshll.u32 %v6056_v10, 16 }
 0x308   : > { %v2517_v21 = vpop.f32.mrb[88].mxu0 }
 0x309   : > { %v2550_v61 = vmax.f32 %v2517_v21, 0.0  ;;  %v5539_v25 = vpop.f32.mrb[89].mxu0  ;;  %v2717_v32 = vrot.slane %v2715_v24, 1  ;;  %5568 = vmatpush3.bf16.msra.mxu1 %v6042_v16  ;;  %v2994_v6 = vsel %vm2985_vm12, %v2991_v27, %v2993_v59  ;;  %v3192_v16 = vor.u32 %v3191_v9, %v3188_v8 }
 0x30a   : > { %v2520_v29 = vpop.f32.mrb[90].mxu0  ;;  %5581 = vmatprep.subr.bf16.mxu1 %v6043_v19  ;;  %v3200_v21 = vrot.slane %v3198_v14, 2  ;;  %v3209_v25 = vrot.slane %v3207_v17, 2  ;;  %v3416_v27 = vrot.slane %v6064_v52, 2  ;;  %v3569_v9 = vrot.slane %v3567_v3, 2 }
 0x30b   : > { %v4902_v33 = vpack.c.bf16 %v2550_v61, %v2550_v61  ;;  %v2551_v2 = vmax.f32 %v2520_v29, 0.0  ;;  %v5540_v37 = vpop.f32.mrb[91].mxu0  ;;  %v2718_v38 = vsel %vm1665_vm1, %v2713_v30, %v2717_v32  ;;  %v2721_v22 = vor.u32 %v2719_v40, %v2717_v32 }
 0x30c   : > { %v6041_v20 = vld [vmem:[#allocation3 + $0x28] ss:$0 sps:$4 sm:$0x77]   ;;  %5554 = vmatmul.mubr.msk.bf16.gmra.mrb[68].mxu1 %vm2754_vm8, %v2718_v38  ;;  %v3206_v61 = vrot.slane %v3204_v48, 1 }
 0x30d   : > { %2621 = vst.msk [vmem:[#allocation3 + $0x30] sm:$0xf] %vm2608_vm7, %v4902_v33  ;;  %v4903_v39 = vpack.c.bf16 %v2551_v2, %v2551_v2  ;;  %v2723_v31 = vshll.u32 %v6041_v20, 16  ;;  %v2727_v43 = vshrl.u32 %v6041_v20, 16  ;;  %v6049_v57 = vld [vmem:[#allocation3 + $0x28] ss:$0 sps:$4 sm:$0xff]  }
 0x30e   : > { %v2995_v13 = vrot.slane %v6049_v57, 1  ;;  %v6058_v23 = vld [vmem:[#allocation3 + $0x24] sm:$0xff]   ;;  %v6059_v29 = vld [vmem:[#allocation3 + $0x2c] ss:$0 sps:$4 sm:$0xff]   ;;  %v3210_v2 = vor.u32 %v3209_v25, %v3206_v61 }
 0x30f   : > { %v2626_v41 = vsel %vm2624_vm11, %v4903_v39, %v2625_v35  ;;  %v2725_v42 = vrot.slane %v2723_v31, 1  ;;  %v3213_v32 = vshrl.u32 %v6058_v23, 16  ;;  %v3216_v33 = vshll.u32 %v6058_v23, 16  ;;  %v6057_v38 = vld [vmem:[%s7037_s3 + $0x88] sm:$0xff]  }
 0x310   : > { %2627 = vst [vmem:[#allocation3 + $0x34] sm:$0x7] %v2626_v41  ;;  %v2996_v47 = vsel %vm2985_vm12, %v2993_v59, %v2995_v13  ;;  %v3222_v35 = vshrl.u32 %v6059_v29, 16  ;;  %v3225_v37 = vshll.u32 %v6059_v29, 16  ;;  %v6068_v57 = vld [vmem:[#allocation3 + $0x24] sm:$0xff]  }
 0x311   : > { %v2726_v0 = vsel %vm1665_vm1, %v2721_v22, %v2725_v42  ;;  %v2729_v44 = vor.u32 %v2727_v43, %v2725_v42  ;;  %v3215_v39 = vrot.slane %v3213_v32, 1  ;;  %v3218_v40 = vrot.slane %v3216_v33, 2  ;;  %v6060_v42 = vld [vmem:[%s7037_s3 + $0x90] sm:$0xff]   ;;  %v6073_v33 = vld [vmem:[%s7037_s3 + $0xc8] sm:$0xff]   ;;  %vm4340_vm1 = vmor %vm1578_vm2, %vm4339_vm0 }
 0x312   : > { %5557 = vmatprep.mubr.msk.bf16.mxu1 %vm2754_vm8, %v2726_v0  ;;  %v3224_v41 = vrot.slane %v3222_v35, 1  ;;  %v3227_v22 = vrot.slane %v3225_v37, 2  ;;  %v3420_v59 = vrot.slane %v6068_v57, 2  ;;  %v3602_v61 = vshrl.u32 %v6068_v57, 16 }
 0x313   : > { %v3219_v43 = vor.u32 %v3218_v40, %v3215_v39  ;;  %v3605_v25 = vshll.u32 %v6068_v57, 16  ;;  %v6074_v40 = vld [vmem:[%s7037_s3 + $0xd0] sm:$0xff]   ;;  %vm4393_vm2 = vsmask.f32 4368  ;;  %vm4354_vm11 = vsmask.f32 7440 }
 0x314   : > { %5558 = vmatmul.mubr.msk.bf16.gmra.mrb[72].mxu1 %vm2754_vm8, %v2729_v44  ;;  %v3228_v0 = vor.u32 %v3227_v22, %v3224_v41  ;;  %v6063_v44 = vld [vmem:[%s7037_s3 + $0x98] sm:$0xff]   ;;  %v3604_v35 = vrot.slane %v3602_v61, 2  ;;  %v6883_v22 = vld [vmem:[#allocation3 + $0x14] sm:$0xf]  ;;  %v6927_v3 = vld [vmem:[#allocation3 + $0x30] sm:$0xf] }
 0x315   : > { %5569 = vmatprep.mubr.msk.bf16.mxu1 %vm2754_vm8, %v6720_v28  ;;  %v6046_v28 = vld [vmem:[%s7037_s3 + $0x58] sm:$0xff]   ;;  %v3607_v37 = vrot.slane %v3605_v25, 3  ;;  %vm4431_vm0 = vsmask.f32 1280 }
 0x31c   : > { %5570 = vmatmul.mubr.msk.bf16.vlgmr.msra.gmra.mrb[64].mxu1 %vm2754_vm8, %v6724_v62  ;;  %v2990_v62 = vsel %vm2985_vm12, %v2987_v50, %v2989_v54  ;;  %v3413_v50 = vrot.slane %v6061_v26, 2  ;;  %v6066_v54 = vld [vmem:[#allocation3 + $0x1c] sm:$0xff]  }
 0x31d   : > { %5573 = vmatprep.mubr.msk.bf16.mxu1 %vm2754_vm8, %v6732_v51  ;;  %5582 = vmatpush3.bf16.msra.mxu1 %v6043_v19  ;;  %v6050_v51 = vld [vmem:[%s7037_s3 + $0x70] sm:$0xff]   ;;  %v3197_v19 = vrot.slane %v3195_v1, 1  ;;  %v3593_v14 = vshrl.u32 %v6066_v54, 16 }
 0x31e   : > { %5583 = vmatprep.subr.bf16.mxu1 %v6044_v4 }
 0x31f   : > { %v3201_v30 = vor.u32 %v3200_v21, %v3197_v19  ;;  %v3595_v21 = vrot.slane %v3593_v14, 2 }
 0x321   : > { %5584 = vmatpush3.bf16.msra.mxu1 %v6044_v4  ;;  %v3211_v31 = vsel %vm2074_vm5, %v3201_v30, %v3210_v2  ;;  %v3220_v4 = vsel %vm2074_vm5, %v3210_v2, %v3219_v43 }
 0x322   : > { %5585 = vmatprep.subr.bf16.mxu1 %v6045_v46 }
 0x324   : > { %5574 = vmatmul.mubr.msk.bf16.gmra.mrb[68].mxu1 %vm2754_vm8, %v6743_v36  ;;  %v3181_v36 = vshll.u32 %v6051_v34, 16  ;;  %v6070_v34 = vld [vmem:[%s7037_s3 + $0xb0] sm:$0xff]  }
 0x325   : > { %5577 = vmatprep.mubr.msk.bf16.mxu1 %vm2754_vm8, %v6758_v18  ;;  %5586 = vmatpush3.bf16.msra.mxu1 %v6045_v46  ;;  %v3229_v46 = vsel %vm2074_vm5, %v3219_v43, %v3228_v0 }
 0x326   : > { %5587 = vmatprep.subr.bf16.mxu1 %v6046_v28  ;;  %v3183_v11 = vrot.slane %v3181_v36, 2  ;;  %v3570_v36 = vshll.u32 %v6061_v26, 16 }
 0x328   : > { %v3184_v18 = vor.u32 %v3183_v11, %v3180_v15  ;;  %v3572_v10 = vrot.slane %v3570_v36, 3  ;;  %v6072_v15 = vld [vmem:[%s7037_s3 + $0xc0] sm:$0xff]   ;;  %v3584_v11 = vshrl.u32 %v6064_v52, 16 }
 0x329   : > { %5588 = vmatpush3.bf16.msra.mxu1 %v6046_v28  ;;  %v6062_v28 = vld [vmem:[#allocation3 + $0xc] sm:$0xff]  }
 0x32a   : > { %5601 = vmatprep.subr.bf16.mxu1 %v6047_v58  ;;  %v3193_v24 = vsel %vm2074_vm5, %v3184_v18, %v3192_v16  ;;  %v3575_v60 = vshrl.u32 %v6062_v28, 16  ;;  %v3578_v63 = vshll.u32 %v6062_v28, 16  ;;  %v3573_v48 = vor.u32 %v3572_v10, %v3569_v9 }
 0x32b   : > { %v3586_v17 = vrot.slane %v3584_v11, 2  ;;  %v6086_v11 = vld [vmem:[%s7037_s3 + $0xf8] sm:$0xff]  }
 0x32c   : > { %5578 = vmatmul.mubr.msk.bf16.gmra.mrb[72].mxu1 %vm2754_vm8, %v6041_v20  ;;  %v3202_v20 = vsel %vm2074_vm5, %v3192_v16, %v3201_v30  ;;  %v3580_v8 = vrot.slane %v3578_v63, 3  ;;  %v3596_v16 = vshll.u32 %v6066_v54, 16  ;;  %vm4353_vm5 = vsmask.f32 3328 }
 0x32d   : > { %5589 = vmatprep.mubr.msk.bf16.mxu1 %vm2754_vm8, %v2988_v53 }
 0x32e   : > { %v3598_v23 = vrot.slane %v3596_v16, 3 }
 0x330   : > { %v3599_v29 = vor.u32 %v3598_v23, %v3595_v21 }
 0x334   : > { %5590 = vmatmul.mubr.msk.bf16.vlgmr.msra.gmra.mrb[64].mxu1 %vm2754_vm8, %v2990_v62  ;;  %v6067_v62 = vld [vmem:[%s7037_s3 + $0xa8] sm:$0xff]  }
 0x335   : > { %5593 = vmatprep.mubr.msk.bf16.mxu1 %vm2754_vm8, %v2992_v56  ;;  %5602 = vmatpush3.bf16.msra.mxu1 %v6047_v58  ;;  %v3414_v58 = vrot.slane %v6062_v28, 2  ;;  %v3752_v28 = vld [vmem:[#allocation3 + $0x8] sm:$0x8] }
 0x336   : > { %5603 = vmatprep.subr.bf16.mxu1 %v6048_v55 }
 0x337   : > { %v3415_v53 = vsel %vm2364_vm6, %v3413_v50, %v3414_v58  ;;  %v3417_v56 = vsel %vm2364_vm6, %v3414_v58, %v3416_v27  ;;  %v6902_v58 = vld [vmem:[#allocation3 + $0x1c] sm:$0xf] }
 0x339   : > { %5604 = vmatpush3.bf16.msra.mxu1 %v6048_v55  ;;  %v3418_v55 = vrot.slane %v6066_v54, 2 }
 0x33a   : > { %5605 = vmatprep.subr.bf16.mxu1 %v6050_v51 }
 0x33b   : > { %v3419_v45 = vsel %vm2364_vm6, %v3416_v27, %v3418_v55 }
 0x33c   : > { %5594 = vmatmul.mubr.msk.bf16.gmra.mrb[68].mxu1 %vm2754_vm8, %v2994_v6  ;;  %v3421_v6 = vsel %vm2364_vm6, %v3418_v55, %v3420_v59  ;;  %v6910_v55 = vld [vmem:[#allocation3 + $0x20] sm:$0xf] }
 0x33d   : > { %5597 = vmatprep.mubr.msk.bf16.mxu1 %vm2754_vm8, %v2996_v47  ;;  %5606 = vmatpush3.bf16.msra.mxu1 %v6050_v51  ;;  %v6069_v51 = vld [vmem:[#allocation3 + $0x2c] sm:$0x1f]   ;;  %v3577_v47 = vrot.slane %v3575_v60, 2 }
 0x33e   : > { %5607 = vmatprep.subr.bf16.mxu1 %v6053_v5  ;;  %v3611_v30 = vshrl.u32 %v6069_v51, 16  ;;  %v3614_v32 = vshll.u32 %v6069_v51, 16 }
 0x33f   : > { %v3581_v1 = vor.u32 %v3580_v8, %v3577_v47 }
 0x340   : > { %v3616_v39 = vrot.slane %v3614_v32, 3 }
 0x341   : > { %5608 = vmatpush3.bf16.msra.mxu1 %v6053_v5  ;;  %v6071_v5 = vld [vmem:[%s7037_s3 + $0xb8] sm:$0xff]   ;;  %v3582_v19 = vsel %vm3565_vm13, %v3573_v48, %v3581_v1 }
 0x342   : > { %5621 = vmatprep.subr.bf16.mxu1 %v6055_v12 }
 0x344   : > { %5598 = vmatmul.mubr.msk.bf16.gmra.mrb[72].mxu1 %vm2754_vm8, %v2995_v13  ;;  %v3422_v13 = vrot.slane %v6069_v51, 2  ;;  %v6917_v51 = vld [vmem:[#allocation3 + $0x2c] sm:$0xf] }
 0x345   : > { %5609 = vmatprep.mubr.msk.bf16.mxu1 %vm2754_vm8, %v3193_v24 }
 0x346   : > { %v3423_v7 = vsel %vm2364_vm6, %v3420_v59, %v3422_v13  ;;  %v6082_v59 = vld [vmem:[%s7037_s3 + $0xe8] sm:$0xff]   ;;  %vm4312_vm6 = vmor %vm2623_vm10, %vm4311_vm4 }
 0x347   : > { %vm7003_vm10 = vmor %vm1579_vm3, %vm4393_vm2 }
 0x34c   : > { %5610 = vmatmul.mubr.msk.bf16.vlgmr.msra.gmra.mrb[64].mxu1 %vm2754_vm8, %v3202_v20  ;;  %v3613_v20 = vrot.slane %v3611_v30, 2 }
 0x34d   : > { %5613 = vmatprep.mubr.msk.bf16.mxu1 %vm2754_vm8, %v3211_v31  ;;  %5622 = vmatpush3.bf16.msra.mxu1 %v6055_v12  ;;  %v3587_v12 = vshll.u32 %v6064_v52, 16  ;;  %v3608_v31 = vor.u32 %v3607_v37, %v3604_v35  ;;  %v6904_v52 = vld [vmem:[#allocation3 + $0x24] sm:$0xf] }
 0x34e   : > { %5623 = vmatprep.subr.bf16.mxu1 %v6057_v38  ;;  %v3617_v41 = vor.u32 %v3616_v39, %v3613_v20 }
 0x34f   : > { %v3589_v18 = vrot.slane %v3587_v12, 3  ;;  %v3609_v43 = vsel %vm3565_vm13, %v3599_v29, %v3608_v31 }
 0x351   : > { %5624 = vmatpush3.bf16.msra.mxu1 %v6057_v38  ;;  %v3590_v24 = vor.u32 %v3589_v18, %v3586_v17  ;;  %v6087_v18 = vld [vmem:[%s7037_s3 + $0x100] sm:$0xff]  }
 0x352   : > { %5625 = vmatprep.subr.bf16.mxu1 %v6060_v42 }
 0x353   : > { %v3591_v2 = vsel %vm3565_vm13, %v3581_v1, %v3590_v24  ;;  %v3600_v38 = vsel %vm3565_vm13, %v3590_v24, %v3599_v29 }
 0x354   : > { %5614 = vmatmul.mubr.msk.bf16.gmra.mrb[68].mxu1 %vm2754_vm8, %v3220_v4  ;;  %v3618_v4 = vsel %vm3565_vm13, %v3608_v31, %v3617_v41  ;;  %v6088_v31 = vld [vmem:[%s7037_s3 + $0x108] sm:$0xff]   ;;  %vm4416_vm13 = vcmask 1042432  }
 0x355   : > { %5617 = vmatprep.mubr.msk.bf16.mxu1 %vm2754_vm8, %v3229_v46  ;;  %5626 = vmatpush3.bf16.msra.mxu1 %v6060_v42  ;;  %v6079_v42 = vld [vmem:[%s7037_s3 + $0xd8] sm:$0xff]  }
 0x356   : > { %5627 = vmatprep.subr.bf16.mxu1 %v6063_v44 }
 0x359   : > { %5628 = vmatpush3.bf16.msra.mxu1 %v6063_v44  ;;  %v6891_v44 = vld [vmem:[#allocation3 + $0x10] sm:$0xf] }
 0x35a   : > { %5641 = vmatprep.subr.bf16.mxu1 %v6065_v49  ;;  %v4811_v46 = vcombine.low %v6891_v44, %v6883_v22 }
 0x35c   : > { %5618 = vmatmul.mubr.msk.bf16.gmra.mrb[72].mxu1 %vm2754_vm8, %v3228_v0  ;;  %v6889_v0 = vld [vmem:[#allocation3 + $0xc] sm:$0xf]  ;;  %v3804_v50 = vrot.slane %v4811_v46, 3  ;;  %v3965_v8 = vshrl.u32 %v4811_v46, 16  ;;  %v3968_v9 = vshll.u32 %v4811_v46, 16 }
 0x35d   : > { %5629 = vmatprep.mubr.msk.bf16.mxu1 %vm2754_vm8, %v3415_v53  ;;  %v4810_v26 = vcombine.low %v3752_v28, %v6889_v0  ;;  %v6906_v53 = vld [vmem:[#allocation3 + $0x18] sm:$0xf] }
 0x35e   : > { %v4812_v27 = vcombine.low %v6906_v53, %v6902_v58  ;;  %v3967_v14 = vrot.slane %v3965_v8, 3  ;;  %v3970_v16 = vrot.slane %v3968_v9, 4 }
 0x35f   : > { %v3803_v54 = vrot.slane %v4810_v26, 3  ;;  %v3957_v10 = vshrl.u32 %v4810_v26, 16 }
 0x360   : > { %v3806_v57 = vrot.slane %v4812_v27, 3  ;;  %v3977_v21 = vshll.u32 %v4812_v27, 16  ;;  %v3971_v23 = vor.u32 %v3970_v16, %v3967_v14 }
 0x361   : > { %v3959_v48 = vrot.slane %v3957_v10, 3 }
 0x362   : > { %v3807_v60 = vsel %vm3802_vm14, %v3804_v50, %v3806_v57  ;;  %v3979_v30 = vrot.slane %v3977_v21, 4 }
 0x364   : > { %5630 = vmatmul.mubr.msk.bf16.vlgmr.msra.gmra.mrb[64].mxu1 %vm2754_vm8, %v3417_v56  ;;  %v4813_v56 = vcombine.low %v6910_v55, %v6904_v52 }
 0x365   : > { %5633 = vmatprep.mubr.msk.bf16.mxu1 %vm2754_vm8, %v3419_v45  ;;  %5642 = vmatpush3.bf16.msra.mxu1 %v6065_v49  ;;  %v6080_v49 = vld [vmem:[%s7037_s3 + $0xe0] sm:$0xff]  }
 0x366   : > { %5643 = vmatprep.subr.bf16.mxu1 %v6067_v62  ;;  %v3808_v45 = vrot.slane %v4813_v56, 3  ;;  %v3983_v24 = vshrl.u32 %v4813_v56, 16  ;;  %v3986_v61 = vshll.u32 %v4813_v56, 16  ;;  %v4836_v56 = vcombine.low %v6889_v0, %v6891_v44  ;;  %v6095_v44 = vld [vmem:[#allocation3 + $0x34] ss:$0 sps:$4 sm:$0x77]  }
 0x367   : > { %v4840_v0 = vcombine.low %v6917_v51, %v6927_v3 }
 0x368   : > { %v3809_v36 = vsel %vm3802_vm14, %v3806_v57, %v3808_v45  ;;  %v4837_v57 = vcombine.low %v6883_v22, %v6906_v53 }
 0x369   : > { %5644 = vmatpush3.bf16.msra.mxu1 %v6067_v62  ;;  %v3805_v62 = vsel %vm3802_vm14, %v3803_v54, %v3804_v50  ;;  %v6091_v54 = vld [vmem:[%s7037_s3 + $0x118] sm:$0xff]  }
 0x36a   : > { %5645 = vmatprep.subr.bf16.mxu1 %v6070_v34 }
 0x36c   : > { %5634 = vmatmul.mubr.msk.bf16.gmra.mrb[68].mxu1 %vm2754_vm8, %v3421_v6  ;;  %v6085_v6 = vld [vmem:[%s7037_s3 + $0xf0] sm:$0xff]  }
 0x36d   : > { %5637 = vmatprep.mubr.msk.bf16.mxu1 %vm2754_vm8, %v3423_v7  ;;  %5646 = vmatpush3.bf16.msra.mxu1 %v6070_v34  ;;  %v3763_v34 = vld [vmem:[#allocation3 + $0x34] sm:$0x3] }
 0x36e   : > { %5647 = vmatprep.subr.bf16.mxu1 %v6071_v5 }
 0x371   : > { %5648 = vmatpush3.bf16.msra.mxu1 %v6071_v5  ;;  %v4815_v5 = vcombine.low %v6927_v3, %v3763_v34 }
 0x372   : > { %5661 = vmatprep.subr.bf16.mxu1 %v6072_v15 }
 0x373   : > { %v3812_v47 = vrot.slane %v4815_v5, 3  ;;  %v4001_v39 = vshrl.u32 %v4815_v5, 16 }
 0x374   : > { %5638 = vmatmul.mubr.msk.bf16.gmra.mrb[72].mxu1 %vm2754_vm8, %v3422_v13  ;;  %v6922_v13 = vld [vmem:[#allocation3 + $0x28] sm:$0xf] }
 0x375   : > { %5649 = vmatprep.mubr.msk.bf16.mxu1 %vm2754_vm8, %v3582_v19  ;;  %v4814_v63 = vcombine.low %v6922_v13, %v6917_v51  ;;  %v3974_v19 = vshrl.u32 %v4812_v27, 16  ;;  %v4003_v46 = vrot.slane %v4001_v39, 3  ;;  %v4839_v34 = vcombine.low %v6904_v52, %v6922_v13 }
 0x377   : > { %v3810_v7 = vrot.slane %v4814_v63, 3  ;;  %v3976_v29 = vrot.slane %v3974_v19, 3  ;;  %v3992_v37 = vshrl.u32 %v4814_v63, 16 }
 0x379   : > { %v3811_v12 = vsel %vm3802_vm14, %v3808_v45, %v3810_v7  ;;  %v3813_v1 = vsel %vm3802_vm14, %v3810_v7, %v3812_v47  ;;  %v3980_v35 = vor.u32 %v3979_v30, %v3976_v29  ;;  %v4838_v45 = vcombine.low %v6902_v58, %v6910_v55 }
 0x37a   : > { %vm4417_vm14 = vcmask 1046532  }
 0x37b   : > { %vm4418_vm3 = vmor %vm4416_vm13, %vm4417_vm14 }
 0x37c   : > { %5650 = vmatmul.mubr.msk.bf16.vlgmr.msra.gmra.mrb[64].mxu1 %vm2754_vm8, %v3591_v2  ;;  %v3988_v2 = vrot.slane %v3986_v61, 4 }
 0x37d   : > { %5653 = vmatprep.mubr.msk.bf16.mxu1 %vm2754_vm8, %v3600_v38  ;;  %5662 = vmatpush3.bf16.msra.mxu1 %v6072_v15  ;;  %v3960_v15 = vshll.u32 %v4810_v26, 16  ;;  %v3995_v38 = vshll.u32 %v4814_v63, 16  ;;  %v6089_v26 = vld [vmem:[%s7037_s3 + $0x110] sm:$0xff]  }
 0x37e   : > { %5663 = vmatprep.subr.bf16.mxu1 %v6073_v33 }
 0x37f   : > { %v3962_v17 = vrot.slane %v3960_v15, 4 }
 0x381   : > { %5664 = vmatpush3.bf16.msra.mxu1 %v6073_v33  ;;  %v3963_v25 = vor.u32 %v3962_v17, %v3959_v48  ;;  %v3985_v33 = vrot.slane %v3983_v24, 3 }
 0x382   : > { %5665 = vmatprep.subr.bf16.mxu1 %v6074_v40 }
 0x383   : > { %v3972_v32 = vsel %vm3955_vm15, %v3963_v25, %v3971_v23  ;;  %v3989_v20 = vor.u32 %v3988_v2, %v3985_v33 }
 0x384   : > { %5654 = vmatmul.mubr.msk.bf16.gmra.mrb[68].mxu1 %vm2754_vm8, %v3609_v43  ;;  %v3997_v43 = vrot.slane %v3995_v38, 4 }
 0x385   : > { %5657 = vmatprep.mubr.msk.bf16.mxu1 %vm2754_vm8, %v3618_v4  ;;  %5666 = vmatpush3.bf16.msra.mxu1 %v6074_v40  ;;  %v4004_v40 = vshll.u32 %v4815_v5, 16  ;;  %v3990_v4 = vsel %vm3955_vm15, %v3980_v35, %v3989_v20 }
 0x386   : > { %5667 = vmatprep.subr.bf16.mxu1 %v6079_v42 }
 0x387   : > { %v4006_v28 = vrot.slane %v4004_v40, 4 }
 0x389   : > { %5668 = vmatpush3.bf16.msra.mxu1 %v6079_v42  ;;  %v3994_v42 = vrot.slane %v3992_v37, 3  ;;  %v4007_v50 = vor.u32 %v4006_v28, %v4003_v46 }
 0x38a   : > { %5681 = vmatprep.subr.bf16.mxu1 %v6080_v49 }
 0x38c   : > { %5658 = vmatmul.mubr.msk.bf16.gmra.mrb[72].mxu1 %vm2754_vm8, %v3617_v41  ;;  %v3981_v41 = vsel %vm3955_vm15, %v3971_v23, %v3980_v35 }
 0x38d   : > { %5669 = vmatprep.mubr.msk.bf16.mxu1 %vm2754_vm8, %v3805_v62 }
 0x394   : > { %5670 = vmatmul.mubr.msk.bf16.vlgmr.msra.gmra.mrb[64].mxu1 %vm2754_vm8, %v3807_v60 }
 0x395   : > { %5673 = vmatprep.mubr.msk.bf16.mxu1 %vm2754_vm8, %v3809_v36  ;;  %5682 = vmatpush3.bf16.msra.mxu1 %v6080_v49  ;;  %v3998_v49 = vor.u32 %v3997_v43, %v3994_v42 }
 0x396   : > { %5683 = vmatprep.subr.bf16.mxu1 %v6082_v59 }
 0x397   : > { %v3999_v27 = vsel %vm3955_vm15, %v3989_v20, %v3998_v49  ;;  %v4008_v62 = vsel %vm3955_vm15, %v3998_v49, %v4007_v50  ;;  %vm7009_vm15 = vmor %vm4353_vm5, %vm4354_vm11 }
 0x399   : > { %5684 = vmatpush3.bf16.msra.mxu1 %v6082_v59 }
 0x39a   : > { %5685 = vmatprep.subr.bf16.mxu1 %v6085_v6 }
 0x39c   : > { %5674 = vmatmul.mubr.msk.bf16.gmra.mrb[68].mxu1 %vm2754_vm8, %v3811_v12 }
 0x39d   : > { %5677 = vmatprep.mubr.msk.bf16.mxu1 %vm2754_vm8, %v3813_v1  ;;  %5686 = vmatpush3.bf16.msra.mxu1 %v6085_v6 }
 0x39e   : > { %5687 = vmatprep.subr.bf16.mxu1 %v6086_v11 }
 0x3a1   : > { %5688 = vmatpush3.bf16.msra.mxu1 %v6086_v11 }
 0x3a2   : > { %5701 = vmatprep.subr.bf16.mxu1 %v6087_v18 }
 0x3a4   : > { %5678 = vmatmul.mubr.msk.bf16.gmra.mrb[72].mxu1 %vm2754_vm8, %v3812_v47 }
 0x3a5   : > { %5689 = vmatprep.mubr.msk.bf16.mxu1 %vm2754_vm8, %v3972_v32 }
 0x3ac   : > { %5690 = vmatmul.mubr.msk.bf16.vlgmr.msra.gmra.mrb[64].mxu1 %vm2754_vm8, %v3981_v41 }
 0x3ad   : > { %5693 = vmatprep.mubr.msk.bf16.mxu1 %vm2754_vm8, %v3990_v4  ;;  %5702 = vmatpush3.bf16.msra.mxu1 %v6087_v18 }
 0x3ae   : > { %5703 = vmatprep.subr.bf16.mxu1 %v6088_v31 }
 0x3b1   : > { %5704 = vmatpush3.bf16.msra.mxu1 %v6088_v31 }
 0x3b2   : > { %5705 = vmatprep.subr.bf16.mxu1 %v6089_v26 }
 0x3b4   : > { %5694 = vmatmul.mubr.msk.bf16.gmra.mrb[68].mxu1 %vm2754_vm8, %v3999_v27 }
 0x3b5   : > { %5697 = vmatprep.mubr.msk.bf16.mxu1 %vm2754_vm8, %v4008_v62  ;;  %5706 = vmatpush3.bf16.msra.mxu1 %v6089_v26 }
 0x3b6   : > { %5707 = vmatprep.subr.bf16.mxu1 %v6091_v54 }
 0x3b9   : > { %5708 = vmatpush3.bf16.msra.mxu1 %v6091_v54 }
 0x3bc   : > { %5698 = vmatmul.mubr.msk.bf16.gmra.mrb[72].mxu1 %vm2754_vm8, %v4007_v50 }
 0x3bd   : > { %5709 = vmatprep.mubr.msk.bf16.mxu1 %vm2754_vm8, %v4836_v56 }
 0x3c4   : > { %5710 = vmatmul.mubr.msk.bf16.vlgmr.msra.gmra.mrb[64].mxu1 %vm2754_vm8, %v4837_v57 }
 0x3c5   : > { %5713 = vmatprep.mubr.msk.bf16.mxu1 %vm2754_vm8, %v4838_v45 }
 0x3cc   : > { %5714 = vmatmul.mubr.msk.bf16.gmra.mrb[68].mxu1 %vm2754_vm8, %v4839_v34 }
 0x3cd   : > { %5717 = vmatprep.mubr.msk.bf16.mxu1 %vm2754_vm8, %v4840_v0 }
 0x3d4   : > { %5718 = vmatmul.mubr.msk.bf16.gmra.mrb[72].mxu1 %vm2754_vm8, %v6095_v44  ;;  %vm4378_vm8 = vcmask 1041408  }
 0x3d5   : > { %vm6995_vm12 = vmor %vm4378_vm8, %vm4379_vm9 }
 0x497   : > { %v5711_v22 = vpop.f32.mrb[64].mxu1 }
 0x498   : > { %v4294_v58 = vmax.f32 %v5711_v22, 0.0  ;;  %v4235_v53 = vpop.f32.mrb[65].mxu1 }
 0x499   : > { %v4292_v55 = vmax.f32 %v4235_v53, 0.0  ;;  %v5712_v59 = vpop.f32.mrb[66].mxu1 }
 0x49a   : > { %v4905_v60 = vpack.c.bf16 %v4294_v58, %v4294_v58  ;;  %v4295_v52 = vmax.f32 %v5712_v59, 0.0  ;;  %v4238_v51 = vpop.f32.mrb[67].mxu1 }
 0x49b   : > { %v4303_v13 = vpack.c.bf16 %v4292_v55, %v4292_v55  ;;  %v4293_v63 = vmax.f32 %v4238_v51, 0.0 }
 0x49c   : > { %v4323_v3 = vshrl.u32 %v4905_v60, 16  ;;  %v4326_v36 = vshll.u32 %v4905_v60, 16  ;;  %v4907_v5 = vpack.c.bf16 %v4295_v52, %v4295_v52  ;;  %v4856_v7 = vrot.slane %v4905_v60, 11 }
 0x49d   : > { %4304 = vst.msk [vmem:[%s6987_s26] sm:$0xf] %vm2608_vm7, %v4303_v13  ;;  %v4904_v6 = vpack.c.bf16 %v4293_v63, %v4293_v63 }
 0x49e   : > { %v4343_v47 = vrot.slane %v4907_v5, 7  ;;  %v4325_v15 = vrot.slane %v4323_v3, 5  ;;  %v4328_v11 = vrot.slane %v4326_v36, 6 }
 0x49f   : > { %v4314_v8 = vshrl.u32 %v4904_v6, 16  ;;  %v4317_v9 = vshll.u32 %v4904_v6, 16  ;;  %v5715_v10 = vpop.f32.mrb[68].mxu1 }
 0x4a0   : > { %v4344_v12 = vsel %vm4340_vm1, %v4856_v7, %v4343_v47  ;;  %v4298_v1 = vmax.f32 %v5715_v10, 0.0  ;;  %v4251_v14 = vpop.f32.mrb[69].mxu1  ;;  %v4329_v29 = vor.u32 %v4328_v11, %v4325_v15  ;;  %vm4432_vm1 = vsmask.f32 5392 }
 0x4a1   : > { %4346 = vst.msk [vmem:[%s6987_s26 + $0x8] sm:$0xf] %vm2608_vm7, %v4344_v12  ;;  %v4316_v16 = vrot.slane %v4314_v8, 5  ;;  %v4319_v48 = vrot.slane %v4317_v9, 6  ;;  %v4296_v17 = vmax.f32 %v4251_v14, 0.0  ;;  %v5716_v18 = vpop.f32.mrb[70].mxu1  ;;  %vm4433_vm4 = vmor %vm4431_vm0, %vm4432_vm1 }
 0x4a2   : > { %v4911_v19 = vpack.c.bf16 %v4298_v1, %v4298_v1  ;;  %v4299_v21 = vmax.f32 %v5716_v18, 0.0  ;;  %v4254_v23 = vpop.f32.mrb[71].mxu1 }
 0x4a3   : > { %v4320_v24 = vor.u32 %v4319_v48, %v4316_v16  ;;  %v4908_v61 = vpack.c.bf16 %v4296_v17, %v4296_v17  ;;  %v4297_v25 = vmax.f32 %v4254_v23, 0.0 }
 0x4a4   : > { %v4913_v30 = vpack.c.bf16 %v4299_v21, %v4299_v21  ;;  %v4383_v37 = vrot.slane %v4911_v19, 6  ;;  %v4396_v38 = vshrl.u32 %v4911_v19, 16 }
 0x4a5   : > { %v4321_v32 = vrot.slane %v4320_v24, 4  ;;  %v4357_v33 = vshrl.u32 %v4908_v61, 16  ;;  %v4360_v2 = vshll.u32 %v4908_v61, 16  ;;  %v4909_v35 = vpack.c.bf16 %v4297_v25, %v4297_v25 }
 0x4a6   : > { %v4401_v20 = vshrl.u32 %v4913_v30, 16  ;;  %v4404_v46 = vshll.u32 %v4913_v30, 16  ;;  %v4864_v56 = vrot.slane %v4396_v38, 11 }
 0x4a7   : > { %v4330_v39 = vsel %vm4312_vm6, %v4321_v32, %v4329_v29  ;;  %v4359_v40 = vrot.slane %v4357_v33, 4  ;;  %v4362_v31 = vrot.slane %v4360_v2, 5  ;;  %v4366_v41 = vshll.u32 %v4909_v35, 16  ;;  %v5719_v43 = vpop.f32.mrb[72].mxu1 }
 0x4a8   : > { %4332 = vst.msk [vmem:[%s6987_s26 + $0x4] sm:$0xf] %vm2608_vm7, %v4330_v39  ;;  %v4403_v4 = vrot.slane %v4401_v20, 7  ;;  %v4861_v28 = vrot.slane %v4909_v35, 10  ;;  %v4302_v26 = vmax.f32 %v5719_v43, 0.0  ;;  %v4267_v49 = vpop.f32.mrb[73].mxu1 }
 0x4a9   : > { %v4363_v50 = vor.u32 %v4362_v31, %v4359_v40  ;;  %v4300_v27 = vmax.f32 %v4267_v49, 0.0  ;;  %v5720_v62 = vpop.f32.mrb[74].mxu1  ;;  %v4368_v58 = vrot.slane %v4366_v41, 5 }
 0x4aa   : > { %v4406_v57 = vor.u32 %v4404_v46, %v4403_v4  ;;  %v4384_v34 = vsel %vm6995_vm12, %v4861_v28, %v4383_v37  ;;  %v4917_v0 = vpack.c.bf16 %v4302_v26, %v4302_v26  ;;  %v4270_v44 = vpop.f32.mrb[75].mxu1 }
 0x4ab   : > { %v4364_v22 = vrot.slane %v4363_v50, 4  ;;  %4386 = vst.msk [vmem:[%s6987_s26 + $0x10] sm:$0xf] %vm2608_vm7, %v4384_v34  ;;  %v4914_v53 = vpack.c.bf16 %v4300_v27, %v4300_v27  ;;  %v4301_v55 = vmax.f32 %v4270_v44, 0.0 }
 0x4ac   : > { %v4407_v59 = vsel %vm7003_vm10, %v4864_v56, %v4406_v57  ;;  %v4444_v60 = vshrl.u32 %v4917_v0, 16  ;;  %v4447_v51 = vshll.u32 %v4917_v0, 16 }
 0x4ad   : > { %4409 = vst.msk [vmem:[%s6987_s26 + $0x14] sm:$0xf] %vm2608_vm7, %v4407_v59  ;;  %v4369_v52 = vsel %vm7009_vm15, %v4364_v22, %v4368_v58  ;;  %v4915_v13 = vpack.c.bf16 %v4301_v55, %v4301_v55  ;;  %v4867_v63 = vrot.slane %v4914_v53, 9 }
 0x4ae   : > { %4371 = vst.msk [vmem:[%s6987_s26 + $0xc] sm:$0xf] %vm2608_vm7, %v4369_v52  ;;  %v4446_v6 = vrot.slane %v4444_v60, 6  ;;  %v4449_v7 = vrot.slane %v4447_v51, 7 }
 0x4af   : > { %v4421_v3 = vrot.slane %v4915_v13, 5  ;;  %v4435_v36 = vshrl.u32 %v4915_v13, 16  ;;  %v4438_v5 = vshll.u32 %v4915_v13, 16 }
 0x4b0   : > { %v4450_v15 = vor.u32 %v4449_v7, %v4446_v6 }
 0x4b1   : > { %v4422_v47 = vsel %vm4418_vm3, %v4867_v63, %v4421_v3  ;;  %v4437_v8 = vrot.slane %v4435_v36, 6  ;;  %v4440_v9 = vrot.slane %v4438_v5, 7 }
 0x4b2   : > { %4424 = vst.msk [vmem:[%s6987_s26 + $0x18] sm:$0xf] %vm2608_vm7, %v4422_v47 }
 0x4b3   : > { %v4441_v10 = vor.u32 %v4440_v9, %v4437_v8 }
 0x4b5   : > { %v4442_v11 = vrot.slane %v4441_v10, 4 }
 0x4b7   : > { %v4451_v12 = vsel %vm4433_vm4, %v4442_v11, %v4450_v15 }
 0x4b8   : > { %4453 = vst.msk [vmem:[%s6987_s26 + $0x1c] sm:$0xf] %vm2608_vm7, %v4451_v12 }
 0x4b9 PF: > { %s14_s15 = sadd.s32 1, %s6102_s15  }
 0x4ba   : > { %p11_p4 = scmp.ge.s32.totalorder %s14_s15, 4  }
 0x4bc   :  { %13 = sbr.rel (!%p11_p4) target bundleno = 1 (0x1), region = 66 }

</bundles_post_ra>
